<compile_context>
chip_gen: v6e
topology: v6e:2x2x1
jax: 0.10.0
libtpu: 0.0.40
codegen_flags: <defaults>
</compile_context>

<pallas_src>
import functools

import numpy as np

import jax
import jax.numpy as jnp
from jax.experimental import pallas as pl
from jax.experimental.pallas import tpu as pltpu


# -----------------------------------------------------------------------------
# Small helpers
# -----------------------------------------------------------------------------
def _round_up(v, m):
    return (v + m - 1) // m * m


def _pick_tile(m):
    """Largest spatial tile (<=512, multiple of 8) that divides m."""
    for t in (512, 256, 128, 64, 32, 16, 8):
        if m % t == 0:
            return t
    return m


def _pick_head_tile(r):
    """One full-R block for small levels; only tile when R is genuinely large."""
    if r <= 512:
        return r
    for t in (512, 256, 128, 64, 32, 16, 8):
        if r % t == 0:
            return t
    return r


# -----------------------------------------------------------------------------
# Pallas kernels
# -----------------------------------------------------------------------------
def _conv_kernel(t_ref, w_ref, b_ref, o_ref):
    """Fused 3x3/stride-2 conv (BN-folded) + SiLU, channel-major, one deep MXU dot.

    t_ref : (1, 9*C1, tm) bf16  K-stacked taps, spatial tile on lanes
    w_ref : (C2, 9*C1)    bf16  transposed conv weights (BN scale folded in)
    b_ref : (C2, 1)       f32
    o_ref : (1, C2, tm)   bf16  lane-dense output tile
    """
    acc = jnp.dot(w_ref[...], t_ref[0], preferred_element_type=jnp.float32)
    acc = acc + b_ref[...]
    acc = acc * jax.nn.sigmoid(acc)                      # SiLU in f32 (v5e-safe)
    o_ref[0] = acc.astype(o_ref.dtype)


def _head_kernel(f_ref, w_ref, b_ref, cm_ref, o_ref, *, stride, nx, ny):
    """1x1 Detect conv with the YOLO decode fused into the matmul epilogue.

    f_ref  : (tm, C)   bf16  feature rows in (b, y, x) order
    w_ref  : (C, 128)  bf16  weights; cols [0,27) raw copy, cols [64,91) decode copy
    b_ref  : (1, 128)  f32
    cm_ref : (3, 128)  f32   per-col meta for the decode copy: [mode, use_gy, anchor]
    o_ref  : (tm, 128) f32   lanes <64: raw conv output; lanes >=64: decoded output
    """
    tm = f_ref.shape[0]
    acc = jnp.dot(f_ref[...], w_ref[...], preferred_element_type=jnp.float32)
    acc = acc + b_ref[...]

    # Grid coords computed in-kernel (rows are (b, y, x)-flattened; nx, ny pow2).
    row0 = pl.program_id(0) * tm
    ridx = row0 + jax.lax.broadcasted_iota(jnp.int32, (tm, 128), 0)
    xg = jnp.bitwise_and(ridx, nx - 1)
    rem = jnp.bitwise_and(ridx, nx * ny - 1)
    gx = xg.astype(jnp.float32) - 0.5
    gy = (rem - xg).astype(jnp.float32) * (1.0 / nx) - 0.5

    mode = cm_ref[0:1, :]
    use_gy = cm_ref[1:2, :]
    anc = cm_ref[2:3, :]
    g = gx * (1.0 - use_gy) + gy * use_gy

    sig = jax.nn.sigmoid(acc)
    xy = (sig * 2.0 + g) * jnp.float32(stride)
    wh = (sig * 2.0) ** 2 * anc
    dec = jnp.where(mode < 0.5, xy, jnp.where(mode < 1.5, wh, sig))

    lane = jax.lax.broadcasted_iota(jnp.int32, (tm, 128), 1)
    o_ref[...] = jnp.where(lane < 64, acc, dec)


# -----------------------------------------------------------------------------
# Conv wrapper: 9-tap K-stacking (channel-major) + pallas_call
# -----------------------------------------------------------------------------
def _pack9(act):
    """(N, C, H, W) channel-major bf16 -> (N, 9*C, Ho*Wp) K-stacked taps."""
    n, c, h, w = act.shape
    assert h % 2 == 0 and w % 2 == 0, "spatial dims must be even for stride-2 conv"
    ho, wo = h // 2, w // 2
    wp = _round_up(wo, 8)                                 # row pitch; junk cols are zero
    xp = jnp.pad(act, ((0, 0), (0, 0), (1, 1), (1, 1)))
    taps = [xp[:, :, dy:dy + 2 * ho:2, dx:dx + 2 * wo:2]  # (N, C, Ho, Wo) per tap
            for dy in range(3) for dx in range(3)]
    t = jnp.concatenate(taps, axis=1)                     # (N, 9C, Ho, Wo)
    if wp != wo:
        t = jnp.pad(t, ((0, 0), (0, 0), (0, 0), (0, wp - wo)))
    return t.reshape(n, 9 * c, ho * wp), ho, wo, wp


def conv3x3_s2_silu(act, wt, bias):
    """act: (N, C1, H, W) bf16 -> (N, C2, H//2, W//2) bf16 (conv + BN + SiLU fused)."""
    n = act.shape[0]
    c2 = wt.shape[0]
    t, ho, wo, wp = _pack9(act)
    k9 = t.shape[1]
    m = ho * wp
    tm = _pick_tile(m)

    out = pl.pallas_call(
        _conv_kernel,
        out_shape=jax.ShapeDtypeStruct((n, c2, m), jnp.bfloat16),
        grid=(n, m // tm),
        in_specs=[
            pl.BlockSpec((1, k9, tm), lambda i, j: (i, 0, j)),
            pl.BlockSpec((c2, k9), lambda i, j: (0, 0)),
            pl.BlockSpec((c2, 1), lambda i, j: (0, 0)),
        ],
        out_specs=pl.BlockSpec((1, c2, tm), lambda i, j: (i, 0, j)),
        compiler_params=pltpu.CompilerParams(
            dimension_semantics=("parallel", "parallel")),
    )(t, wt, bias)

    return out.reshape(n, c2, ho, wp)[:, :, :, :wo]        # drop junk x columns


def detect_level(f_rows, w_pad, b_pad, cmeta, stride, nx, ny):
    assert (nx & (nx - 1)) == 0 and (ny & (ny - 1)) == 0, "pow2 feature maps only"
    # TODO(synk): non-power-of-two maps would need an in-kernel int div or a tiny
    #             per-row grid-coordinate side input.
    r, c = f_rows.shape
    tm = _pick_head_tile(r)
    return pl.pallas_call(
        functools.partial(_head_kernel, stride=float(stride), nx=int(nx), ny=int(ny)),
        out_shape=jax.ShapeDtypeStruct((r, 128), jnp.float32),
        grid=(r // tm,),
        in_specs=[
            pl.BlockSpec((tm, c), lambda i: (i, 0)),
            pl.BlockSpec((c, 128), lambda i: (0, 0)),
            pl.BlockSpec((1, 128), lambda i: (0, 0)),
            pl.BlockSpec((3, 128), lambda i: (0, 0)),
        ],
        out_specs=pl.BlockSpec((tm, 128), lambda i: (i, 0)),
        compiler_params=pltpu.CompilerParams(dimension_semantics=("parallel",)),
    )(f_rows, w_pad, b_pad, cmeta)


# -----------------------------------------------------------------------------
# Model: parameter construction and orchestration (plain JAX glue)
# -----------------------------------------------------------------------------
class DetectionModelPallas:
    """Tiny YOLOv5-style DetectionModel (eval mode)."""

    NC = 4
    ANCHORS = [[10, 13, 16, 30, 33, 23],
               [30, 61, 62, 45, 59, 119],
               [116, 90, 156, 198, 373, 326]]
    STRIDES = (8.0, 16.0, 32.0)
    BACKBONE_CH = (3, 8, 16, 32, 64, 128)     # 5 conv blocks, stride 2 each
    FEATURE_TAPS = (2, 3, 4)                  # layers feeding Detect (P3, P4, P5)

    def __init__(self, key):
        self.nc = self.NC
        self.no = self.nc + 5
        self.nl = len(self.ANCHORS)
        self.na = len(self.ANCHORS[0]) // 2
        anchors_px = np.asarray(self.ANCHORS, np.float32).reshape(self.nl, self.na, 2)

        keys = jax.random.split(key, 16)
        bn_eps = 1e-3                            # initialize_weights(): BN eps=1e-3,
        bn_scale = 1.0 / np.sqrt(1.0 + bn_eps)   # gamma=1, beta=0, mean=0, var=1 -> fold

        # ---- backbone: Conv2d(3x3, s=2, no bias) + BN + SiLU ----
        # weights pre-transposed to (C2, 9*C1), tap-major (dy, dx, c1) to match _pack9.
        self.conv_w = []
        self.conv_b = []
        for li in range(len(self.BACKBONE_CH) - 1):
            c1, c2 = self.BACKBONE_CH[li], self.BACKBONE_CH[li + 1]
            w = jax.random.normal(keys[li], (3, 3, c1, c2), jnp.float32)
            w = w * np.sqrt(2.0 / (9 * c1)) * bn_scale
            wt = jnp.transpose(w, (3, 0, 1, 2)).reshape(c2, 9 * c1)
            self.conv_w.append(wt.astype(jnp.bfloat16))
            self.conv_b.append(jnp.zeros((c2, 1), jnp.float32))

        # ---- Detect head: nn.Conv2d(c, na*no, 1) + bias + _initialize_biases() ----
        # Weight columns [0, 27) carry the raw output; columns [64, 91) a second copy
        # decoded in-kernel -> a single packed (R, 128) output per level.
        self.head_w, self.head_b, self.head_cmeta = [], [], []
        head_chs = [self.BACKBONE_CH[t + 1] for t in self.FEATURE_TAPS]
        k = self.na * self.no
        for i, c in enumerate(head_chs):
            w = np.array(jax.random.normal(keys[8 + i], (c, k), jnp.float32)) * 0.01
            b = np.array(jax.random.normal(keys[12 + i], (k,), jnp.float32)) * 0.01
            b = b.reshape(self.na, self.no)
            s = float(self.STRIDES[i])
            b[:, 4] += np.log(8.0 / (640.0 / s) ** 2)
            b[:, 5:5 + self.nc] += np.log(0.6 / (self.nc - 0.99999))
            b = b.reshape(-1)

            w_pad = np.zeros((c, 128), np.float32)
            w_pad[:, :k] = w
            w_pad[:, 64:64 + k] = w
            b_pad = np.zeros((1, 128), np.float32)
            b_pad[0, :k] = b
            b_pad[0, 64:64 + k] = b
            self.head_w.append(jnp.asarray(w_pad, jnp.bfloat16))
            self.head_b.append(jnp.asarray(b_pad, jnp.float32))

            # per-column decode metadata for lanes [64, 91); everything else -> sigmoid
            col = np.arange(128)
            j = col - 64
            jn = np.where(j >= 0, j, 0)
            o = jn % self.no
            a = np.clip(jn // self.no, 0, self.na - 1)
            valid = (j >= 0) & (j < k)
            mode = np.where(valid & (o < 2), 0.0, np.where(valid & (o < 4), 1.0, 2.0))
            use_gy = np.where(valid & (o == 1), 1.0, 0.0)
            anc = np.where(valid & (o == 2), anchors_px[i, a, 0],
                           np.where(valid & (o == 3), anchors_px[i, a, 1], 0.0))
            cm = np.stack([mode, use_gy, anc]).astype(np.float32)
            self.head_cmeta.append(jnp.asarray(cm))

    def __call__(self, x_nchw):
        x = x_nchw.astype(jnp.bfloat16)          # NCHW is already channel-major
        bs = x.shape[0]

        # ---- backbone ----
        feats = []
        cur = x
        for li in range(len(self.conv_w)):
            cur = conv3x3_s2_silu(cur, self.conv_w[li], self.conv_b[li])
            if li in self.FEATURE_TAPS:
                feats.append(cur)

        # ---- Detect head (eval mode), decode fused into the matmul epilogue ----
        z_all, logit_all, xs = [], [], []
        k = self.na * self.no
        for i, f in enumerate(feats):
            _, c, ny, nx = f.shape
            rows = jnp.transpose(f, (0, 2, 3, 1)).reshape(bs * ny * nx, c)

            out = detect_level(rows, self.head_w[i], self.head_b[i],
                               self.head_cmeta[i], self.STRIDES[i], nx, ny)

            raw = out[:, :k].reshape(bs, ny, nx, self.na, self.no)
            raw = raw.transpose(0, 3, 1, 2, 4)                  # (bs, na, ny, nx, no)
            zz = out[:, 64:64 + k].reshape(bs, ny, nx, self.na, self.no)
            zz = zz.transpose(0, 3, 1, 2, 4)

            xs.append(raw)
            z_all.append(zz.reshape(bs, self.na * ny * nx, self.no))
            logit_all.append(raw[..., 5:].reshape(bs, self.na * ny * nx, self.nc))

        return jnp.concatenate(z_all, axis=1), jnp.concatenate(logit_all, axis=1), xs


# -----------------------------------------------------------------------------
if __name__ == "__main__":
    key = jax.random.PRNGKey(0)
    k_params, k_input = jax.random.split(key)

    model = DetectionModelPallas(k_params)
    x = jax.random.normal(k_input, (2, 3, 64, 64), jnp.float32)   # NCHW, like PyTorch

    fwd = jax.jit(lambda inp: model(inp))
    preds, logits, raw_maps = fwd(x)
    jax.block_until_ready((preds, logits, raw_maps))

    assert preds.shape == (2, 252, 9), preds.shape       # 3 anchors * (8*8 + 4*4 + 2*2)
    assert logits.shape == (2, 252, 4), logits.shape
    assert raw_maps[0].shape == (2, 3, 8, 8, 9), raw_maps[0].shape
    assert raw_maps[1].shape == (2, 3, 4, 4, 9)
    assert raw_maps[2].shape == (2, 3, 2, 2, 9)
    assert bool(jnp.all(jnp.isfinite(preds)))
    print("KERNEL_OK")
</pallas_src>

<mosaic_0001>
module attributes {stable_mosaic.version = 11 : i64} {
  func.func @_conv_kernel(%arg0: i32, %arg1: i32, %arg2: memref<1x27x512xbf16, #tpu.memory_space<vmem>>, %arg3: memref<8x27xbf16, #tpu.memory_space<vmem>>, %arg4: memref<8x1xf32, #tpu.memory_space<vmem>>, %arg5: memref<1x8x512xbf16, #tpu.memory_space<vmem>>) attributes {dimension_semantics = [#tpu.dimension_semantics<parallel>, #tpu.dimension_semantics<parallel>], iteration_bounds = array<i64: 2, 2>, scalar_prefetch = 0 : i64, scratch_operands = 0 : i64, tpu.core_type = #tpu.core_type<tc>, window_params = [{transform_indices = @transform_0, window_bounds = array<i64: 1, 27, 512>}, {pipeline_mode = #tpu.pipeline_mode<synchronous>, transform_indices = @transform_1, window_bounds = array<i64: 8, 27>}, {pipeline_mode = #tpu.pipeline_mode<synchronous>, transform_indices = @transform_2, window_bounds = array<i64: 8, 1>}, {transform_indices = @transform_3, window_bounds = array<i64: 1, 8, 512>}]} {
    %c0 = arith.constant 0 : index
    %c0_0 = arith.constant 0 : index
    %0 = vector.load %arg3[%c0, %c0_0] : memref<8x27xbf16, #tpu.memory_space<vmem>>, vector<8x27xbf16>
    %c0_1 = arith.constant 0 : index
    %c0_2 = arith.constant 0 : index
    %c0_3 = arith.constant 0 : index
    %1 = vector.load %arg2[%c0_1, %c0_2, %c0_3] : memref<1x27x512xbf16, #tpu.memory_space<vmem>>, vector<1x27x512xbf16>
    %2 = vector.shape_cast %1 : vector<1x27x512xbf16> to vector<27x512xbf16>
    %cst = arith.constant dense<0.000000e+00> : vector<8x512xf32>
    %3 = tpu.matmul %0, %2, %cst {dimension_numbers = #tpu.dot_dimension_numbers<[1], [0], [0], [1], [0, 0, 1, 1], [], []>} : vector<8x27xbf16>, vector<27x512xbf16>, vector<8x512xf32> -> vector<8x512xf32>
    %c0_4 = arith.constant 0 : index
    %c0_5 = arith.constant 0 : index
    %4 = vector.load %arg4[%c0_4, %c0_5] : memref<8x1xf32, #tpu.memory_space<vmem>>, vector<8x1xf32>
    %5 = vector.broadcast %4 : vector<8x1xf32> to vector<8x512xf32>
    %6 = arith.addf %3, %5 : vector<8x512xf32>
    %7 = arith.negf %6 : vector<8x512xf32>
    %8 = math.exp %7 : vector<8x512xf32>
    %cst_6 = arith.constant 1.000000e+00 : f32
    %9 = vector.broadcast %cst_6 : f32 to vector<8x512xf32>
    %10 = arith.addf %9, %8 : vector<8x512xf32>
    %11 = arith.divf %9, %10 : vector<8x512xf32>
    %12 = arith.mulf %6, %11 : vector<8x512xf32>
    %13 = arith.truncf %12 : vector<8x512xf32> to vector<8x512xbf16>
    %c0_7 = arith.constant 0 : index
    %c0_8 = arith.constant 0 : index
    %c0_9 = arith.constant 0 : index
    %14 = vector.load %arg5[%c0_7, %c0_8, %c0_9] : memref<1x8x512xbf16, #tpu.memory_space<vmem>>, vector<1x8x512xbf16>
    %15 = vector.shape_cast %14 : vector<1x8x512xbf16> to vector<8x512xbf16>
    %16 = vector.shape_cast %13 : vector<8x512xbf16> to vector<1x8x512xbf16>
    tpu.vector_store %arg5[%c0_7, %c0_8, %c0_9], %16 {strides = array<i32>} : memref<1x8x512xbf16, #tpu.memory_space<vmem>>, vector<1x8x512xbf16>,
    return
  }
  func.func @transform_0(%arg0: i32, %arg1: i32) -> (i32, i32, i32) {
    %c0_i32 = arith.constant 0 : i32
    %c0_i32_0 = arith.constant 0 : i32
    return %arg0, %c0_i32, %arg1 : i32, i32, i32
  }
  func.func @transform_1(%arg0: i32, %arg1: i32) -> (i32, i32) {
    %c0_i32 = arith.constant 0 : i32
    %c0_i32_0 = arith.constant 0 : i32
    %c0_i32_1 = arith.constant 0 : i32
    return %c0_i32, %c0_i32_0 : i32, i32
  }
  func.func @transform_2(%arg0: i32, %arg1: i32) -> (i32, i32) {
    %c0_i32 = arith.constant 0 : i32
    %c0_i32_0 = arith.constant 0 : i32
    %c0_i32_1 = arith.constant 0 : i32
    return %c0_i32, %c0_i32_0 : i32, i32
  }
  func.func @transform_3(%arg0: i32, %arg1: i32) -> (i32, i32, i32) {
    %c0_i32 = arith.constant 0 : i32
    %c0_i32_0 = arith.constant 0 : i32
    return %arg0, %c0_i32, %arg1 : i32, i32, i32
  }
}

module attributes {stable_mosaic.version = 11 : i64} {
  func.func @_conv_kernel(%arg0: i32, %arg1: i32, %arg2: memref<1x72x256xbf16, #tpu.memory_space<vmem>>, %arg3: memref<16x72xbf16, #tpu.memory_space<vmem>>, %arg4: memref<16x1xf32, #tpu.memory_space<vmem>>, %arg5: memref<1x16x256xbf16, #tpu.memory_space<vmem>>) attributes {dimension_semantics = [#tpu.dimension_semantics<parallel>, #tpu.dimension_semantics<parallel>], iteration_bounds = array<i64: 2, 1>, scalar_prefetch = 0 : i64, scratch_operands = 0 : i64, tpu.core_type = #tpu.core_type<tc>, window_params = [{transform_indices = @transform_0, window_bounds = array<i64: 1, 72, 256>}, {pipeline_mode = #tpu.pipeline_mode<synchronous>, transform_indices = @transform_1, window_bounds = array<i64: 16, 72>}, {pipeline_mode = #tpu.pipeline_mode<synchronous>, transform_indices = @transform_2, window_bounds = array<i64: 16, 1>}, {transform_indices = @transform_3, window_bounds = array<i64: 1, 16, 256>}]} {
    %c0 = arith.constant 0 : index
    %c0_0 = arith.constant 0 : index
    %0 = vector.load %arg3[%c0, %c0_0] : memref<16x72xbf16, #tpu.memory_space<vmem>>, vector<16x72xbf16>
    %c0_1 = arith.constant 0 : index
    %c0_2 = arith.constant 0 : index
    %c0_3 = arith.constant 0 : index
    %1 = vector.load %arg2[%c0_1, %c0_2, %c0_3] : memref<1x72x256xbf16, #tpu.memory_space<vmem>>, vector<1x72x256xbf16>
    %2 = vector.shape_cast %1 : vector<1x72x256xbf16> to vector<72x256xbf16>
    %cst = arith.constant dense<0.000000e+00> : vector<16x256xf32>
    %3 = tpu.matmul %0, %2, %cst {dimension_numbers = #tpu.dot_dimension_numbers<[1], [0], [0], [1], [0, 0, 1, 1], [], []>} : vector<16x72xbf16>, vector<72x256xbf16>, vector<16x256xf32> -> vector<16x256xf32>
    %c0_4 = arith.constant 0 : index
    %c0_5 = arith.constant 0 : index
    %4 = vector.load %arg4[%c0_4, %c0_5] : memref<16x1xf32, #tpu.memory_space<vmem>>, vector<16x1xf32>
    %5 = vector.broadcast %4 : vector<16x1xf32> to vector<16x256xf32>
    %6 = arith.addf %3, %5 : vector<16x256xf32>
    %7 = arith.negf %6 : vector<16x256xf32>
    %8 = math.exp %7 : vector<16x256xf32>
    %cst_6 = arith.constant 1.000000e+00 : f32
    %9 = vector.broadcast %cst_6 : f32 to vector<16x256xf32>
    %10 = arith.addf %9, %8 : vector<16x256xf32>
    %11 = arith.divf %9, %10 : vector<16x256xf32>
    %12 = arith.mulf %6, %11 : vector<16x256xf32>
    %13 = arith.truncf %12 : vector<16x256xf32> to vector<16x256xbf16>
    %c0_7 = arith.constant 0 : index
    %c0_8 = arith.constant 0 : index
    %c0_9 = arith.constant 0 : index
    %14 = vector.load %arg5[%c0_7, %c0_8, %c0_9] : memref<1x16x256xbf16, #tpu.memory_space<vmem>>, vector<1x16x256xbf16>
    %15 = vector.shape_cast %14 : vector<1x16x256xbf16> to vector<16x256xbf16>
    %16 = vector.shape_cast %13 : vector<16x256xbf16> to vector<1x16x256xbf16>
    tpu.vector_store %arg5[%c0_7, %c0_8, %c0_9], %16 {strides = array<i32>} : memref<1x16x256xbf16, #tpu.memory_space<vmem>>, vector<1x16x256xbf16>,
    return
  }
  func.func @transform_0(%arg0: i32, %arg1: i32) -> (i32, i32, i32) {
    %c0_i32 = arith.constant 0 : i32
    %c0_i32_0 = arith.constant 0 : i32
    return %arg0, %c0_i32, %arg1 : i32, i32, i32
  }
  func.func @transform_1(%arg0: i32, %arg1: i32) -> (i32, i32) {
    %c0_i32 = arith.constant 0 : i32
    %c0_i32_0 = arith.constant 0 : i32
    %c0_i32_1 = arith.constant 0 : i32
    return %c0_i32, %c0_i32_0 : i32, i32
  }
  func.func @transform_2(%arg0: i32, %arg1: i32) -> (i32, i32) {
    %c0_i32 = arith.constant 0 : i32
    %c0_i32_0 = arith.constant 0 : i32
    %c0_i32_1 = arith.constant 0 : i32
    return %c0_i32, %c0_i32_0 : i32, i32
  }
  func.func @transform_3(%arg0: i32, %arg1: i32) -> (i32, i32, i32) {
    %c0_i32 = arith.constant 0 : i32
    %c0_i32_0 = arith.constant 0 : i32
    return %arg0, %c0_i32, %arg1 : i32, i32, i32
  }
}

module attributes {stable_mosaic.version = 11 : i64} {
  func.func @_conv_kernel(%arg0: i32, %arg1: i32, %arg2: memref<1x144x64xbf16, #tpu.memory_space<vmem>>, %arg3: memref<32x144xbf16, #tpu.memory_space<vmem>>, %arg4: memref<32x1xf32, #tpu.memory_space<vmem>>, %arg5: memref<1x32x64xbf16, #tpu.memory_space<vmem>>) attributes {dimension_semantics = [#tpu.dimension_semantics<parallel>, #tpu.dimension_semantics<parallel>], iteration_bounds = array<i64: 2, 1>, scalar_prefetch = 0 : i64, scratch_operands = 0 : i64, tpu.core_type = #tpu.core_type<tc>, window_params = [{transform_indices = @transform_0, window_bounds = array<i64: 1, 144, 64>}, {pipeline_mode = #tpu.pipeline_mode<synchronous>, transform_indices = @transform_1, window_bounds = array<i64: 32, 144>}, {pipeline_mode = #tpu.pipeline_mode<synchronous>, transform_indices = @transform_2, window_bounds = array<i64: 32, 1>}, {transform_indices = @transform_3, window_bounds = array<i64: 1, 32, 64>}]} {
    %c0 = arith.constant 0 : index
    %c0_0 = arith.constant 0 : index
    %0 = vector.load %arg3[%c0, %c0_0] : memref<32x144xbf16, #tpu.memory_space<vmem>>, vector<32x144xbf16>
    %c0_1 = arith.constant 0 : index
    %c0_2 = arith.constant 0 : index
    %c0_3 = arith.constant 0 : index
    %1 = vector.load %arg2[%c0_1, %c0_2, %c0_3] : memref<1x144x64xbf16, #tpu.memory_space<vmem>>, vector<1x144x64xbf16>
    %2 = vector.shape_cast %1 : vector<1x144x64xbf16> to vector<144x64xbf16>
    %cst = arith.constant dense<0.000000e+00> : vector<32x64xf32>
    %3 = tpu.matmul %0, %2, %cst {dimension_numbers = #tpu.dot_dimension_numbers<[1], [0], [0], [1], [0, 0, 1, 1], [], []>} : vector<32x144xbf16>, vector<144x64xbf16>, vector<32x64xf32> -> vector<32x64xf32>
    %c0_4 = arith.constant 0 : index
    %c0_5 = arith.constant 0 : index
    %4 = vector.load %arg4[%c0_4, %c0_5] : memref<32x1xf32, #tpu.memory_space<vmem>>, vector<32x1xf32>
    %5 = vector.broadcast %4 : vector<32x1xf32> to vector<32x64xf32>
    %6 = arith.addf %3, %5 : vector<32x64xf32>
    %7 = arith.negf %6 : vector<32x64xf32>
    %8 = math.exp %7 : vector<32x64xf32>
    %cst_6 = arith.constant 1.000000e+00 : f32
    %9 = vector.broadcast %cst_6 : f32 to vector<32x64xf32>
    %10 = arith.addf %9, %8 : vector<32x64xf32>
    %11 = arith.divf %9, %10 : vector<32x64xf32>
    %12 = arith.mulf %6, %11 : vector<32x64xf32>
    %13 = arith.truncf %12 : vector<32x64xf32> to vector<32x64xbf16>
    %c0_7 = arith.constant 0 : index
    %c0_8 = arith.constant 0 : index
    %c0_9 = arith.constant 0 : index
    %14 = vector.load %arg5[%c0_7, %c0_8, %c0_9] : memref<1x32x64xbf16, #tpu.memory_space<vmem>>, vector<1x32x64xbf16>
    %15 = vector.shape_cast %14 : vector<1x32x64xbf16> to vector<32x64xbf16>
    %16 = vector.shape_cast %13 : vector<32x64xbf16> to vector<1x32x64xbf16>
    tpu.vector_store %arg5[%c0_7, %c0_8, %c0_9], %16 {strides = array<i32>} : memref<1x32x64xbf16, #tpu.memory_space<vmem>>, vector<1x32x64xbf16>,
    return
  }
  func.func @transform_0(%arg0: i32, %arg1: i32) -> (i32, i32, i32) {
    %c0_i32 = arith.constant 0 : i32
    %c0_i32_0 = arith.constant 0 : i32
    return %arg0, %c0_i32, %arg1 : i32, i32, i32
  }
  func.func @transform_1(%arg0: i32, %arg1: i32) -> (i32, i32) {
    %c0_i32 = arith.constant 0 : i32
    %c0_i32_0 = arith.constant 0 : i32
    %c0_i32_1 = arith.constant 0 : i32
    return %c0_i32, %c0_i32_0 : i32, i32
  }
  func.func @transform_2(%arg0: i32, %arg1: i32) -> (i32, i32) {
    %c0_i32 = arith.constant 0 : i32
    %c0_i32_0 = arith.constant 0 : i32
    %c0_i32_1 = arith.constant 0 : i32
    return %c0_i32, %c0_i32_0 : i32, i32
  }
  func.func @transform_3(%arg0: i32, %arg1: i32) -> (i32, i32, i32) {
    %c0_i32 = arith.constant 0 : i32
    %c0_i32_0 = arith.constant 0 : i32
    return %arg0, %c0_i32, %arg1 : i32, i32, i32
  }
}

module attributes {stable_mosaic.version = 11 : i64} {
  func.func @_conv_kernel(%arg0: i32, %arg1: i32, %arg2: memref<1x288x32xbf16, #tpu.memory_space<vmem>>, %arg3: memref<64x288xbf16, #tpu.memory_space<vmem>>, %arg4: memref<64x1xf32, #tpu.memory_space<vmem>>, %arg5: memref<1x64x32xbf16, #tpu.memory_space<vmem>>) attributes {dimension_semantics = [#tpu.dimension_semantics<parallel>, #tpu.dimension_semantics<parallel>], iteration_bounds = array<i64: 2, 1>, scalar_prefetch = 0 : i64, scratch_operands = 0 : i64, tpu.core_type = #tpu.core_type<tc>, window_params = [{transform_indices = @transform_0, window_bounds = array<i64: 1, 288, 32>}, {pipeline_mode = #tpu.pipeline_mode<synchronous>, transform_indices = @transform_1, window_bounds = array<i64: 64, 288>}, {pipeline_mode = #tpu.pipeline_mode<synchronous>, transform_indices = @transform_2, window_bounds = array<i64: 64, 1>}, {transform_indices = @transform_3, window_bounds = array<i64: 1, 64, 32>}]} {
    %c0 = arith.constant 0 : index
    %c0_0 = arith.constant 0 : index
    %0 = vector.load %arg3[%c0, %c0_0] : memref<64x288xbf16, #tpu.memory_space<vmem>>, vector<64x288xbf16>
    %c0_1 = arith.constant 0 : index
    %c0_2 = arith.constant 0 : index
    %c0_3 = arith.constant 0 : index
    %1 = vector.load %arg2[%c0_1, %c0_2, %c0_3] : memref<1x288x32xbf16, #tpu.memory_space<vmem>>, vector<1x288x32xbf16>
    %2 = vector.shape_cast %1 : vector<1x288x32xbf16> to vector<288x32xbf16>
    %cst = arith.constant dense<0.000000e+00> : vector<64x32xf32>
    %3 = tpu.matmul %0, %2, %cst {dimension_numbers = #tpu.dot_dimension_numbers<[1], [0], [0], [1], [0, 0, 1, 1], [], []>} : vector<64x288xbf16>, vector<288x32xbf16>, vector<64x32xf32> -> vector<64x32xf32>
    %c0_4 = arith.constant 0 : index
    %c0_5 = arith.constant 0 : index
    %4 = vector.load %arg4[%c0_4, %c0_5] : memref<64x1xf32, #tpu.memory_space<vmem>>, vector<64x1xf32>
    %5 = vector.broadcast %4 : vector<64x1xf32> to vector<64x32xf32>
    %6 = arith.addf %3, %5 : vector<64x32xf32>
    %7 = arith.negf %6 : vector<64x32xf32>
    %8 = math.exp %7 : vector<64x32xf32>
    %cst_6 = arith.constant 1.000000e+00 : f32
    %9 = vector.broadcast %cst_6 : f32 to vector<64x32xf32>
    %10 = arith.addf %9, %8 : vector<64x32xf32>
    %11 = arith.divf %9, %10 : vector<64x32xf32>
    %12 = arith.mulf %6, %11 : vector<64x32xf32>
    %13 = arith.truncf %12 : vector<64x32xf32> to vector<64x32xbf16>
    %c0_7 = arith.constant 0 : index
    %c0_8 = arith.constant 0 : index
    %c0_9 = arith.constant 0 : index
    %14 = vector.load %arg5[%c0_7, %c0_8, %c0_9] : memref<1x64x32xbf16, #tpu.memory_space<vmem>>, vector<1x64x32xbf16>
    %15 = vector.shape_cast %14 : vector<1x64x32xbf16> to vector<64x32xbf16>
    %16 = vector.shape_cast %13 : vector<64x32xbf16> to vector<1x64x32xbf16>
    tpu.vector_store %arg5[%c0_7, %c0_8, %c0_9], %16 {strides = array<i32>} : memref<1x64x32xbf16, #tpu.memory_space<vmem>>, vector<1x64x32xbf16>,
    return
  }
  func.func @transform_0(%arg0: i32, %arg1: i32) -> (i32, i32, i32) {
    %c0_i32 = arith.constant 0 : i32
    %c0_i32_0 = arith.constant 0 : i32
    return %arg0, %c0_i32, %arg1 : i32, i32, i32
  }
  func.func @transform_1(%arg0: i32, %arg1: i32) -> (i32, i32) {
    %c0_i32 = arith.constant 0 : i32
    %c0_i32_0 = arith.constant 0 : i32
    %c0_i32_1 = arith.constant 0 : i32
    return %c0_i32, %c0_i32_0 : i32, i32
  }
  func.func @transform_2(%arg0: i32, %arg1: i32) -> (i32, i32) {
    %c0_i32 = arith.constant 0 : i32
    %c0_i32_0 = arith.constant 0 : i32
    %c0_i32_1 = arith.constant 0 : i32
    return %c0_i32, %c0_i32_0 : i32, i32
  }
  func.func @transform_3(%arg0: i32, %arg1: i32) -> (i32, i32, i32) {
    %c0_i32 = arith.constant 0 : i32
    %c0_i32_0 = arith.constant 0 : i32
    return %arg0, %c0_i32, %arg1 : i32, i32, i32
  }
}

module attributes {stable_mosaic.version = 11 : i64} {
  func.func @_conv_kernel(%arg0: i32, %arg1: i32, %arg2: memref<1x576x16xbf16, #tpu.memory_space<vmem>>, %arg3: memref<128x576xbf16, #tpu.memory_space<vmem>>, %arg4: memref<128x1xf32, #tpu.memory_space<vmem>>, %arg5: memref<1x128x16xbf16, #tpu.memory_space<vmem>>) attributes {dimension_semantics = [#tpu.dimension_semantics<parallel>, #tpu.dimension_semantics<parallel>], iteration_bounds = array<i64: 2, 1>, scalar_prefetch = 0 : i64, scratch_operands = 0 : i64, tpu.core_type = #tpu.core_type<tc>, window_params = [{transform_indices = @transform_0, window_bounds = array<i64: 1, 576, 16>}, {pipeline_mode = #tpu.pipeline_mode<synchronous>, transform_indices = @transform_1, window_bounds = array<i64: 128, 576>}, {pipeline_mode = #tpu.pipeline_mode<synchronous>, transform_indices = @transform_2, window_bounds = array<i64: 128, 1>}, {transform_indices = @transform_3, window_bounds = array<i64: 1, 128, 16>}]} {
    %c0 = arith.constant 0 : index
    %c0_0 = arith.constant 0 : index
    %0 = vector.load %arg3[%c0, %c0_0] : memref<128x576xbf16, #tpu.memory_space<vmem>>, vector<128x576xbf16>
    %c0_1 = arith.constant 0 : index
    %c0_2 = arith.constant 0 : index
    %c0_3 = arith.constant 0 : index
    %1 = vector.load %arg2[%c0_1, %c0_2, %c0_3] : memref<1x576x16xbf16, #tpu.memory_space<vmem>>, vector<1x576x16xbf16>
    %2 = vector.shape_cast %1 : vector<1x576x16xbf16> to vector<576x16xbf16>
    %cst = arith.constant dense<0.000000e+00> : vector<128x16xf32>
    %3 = tpu.matmul %0, %2, %cst {dimension_numbers = #tpu.dot_dimension_numbers<[1], [0], [0], [1], [0, 0, 1, 1], [], []>} : vector<128x576xbf16>, vector<576x16xbf16>, vector<128x16xf32> -> vector<128x16xf32>
    %c0_4 = arith.constant 0 : index
    %c0_5 = arith.constant 0 : index
    %4 = vector.load %arg4[%c0_4, %c0_5] : memref<128x1xf32, #tpu.memory_space<vmem>>, vector<128x1xf32>
    %5 = vector.broadcast %4 : vector<128x1xf32> to vector<128x16xf32>
    %6 = arith.addf %3, %5 : vector<128x16xf32>
    %7 = arith.negf %6 : vector<128x16xf32>
    %8 = math.exp %7 : vector<128x16xf32>
    %cst_6 = arith.constant 1.000000e+00 : f32
    %9 = vector.broadcast %cst_6 : f32 to vector<128x16xf32>
    %10 = arith.addf %9, %8 : vector<128x16xf32>
    %11 = arith.divf %9, %10 : vector<128x16xf32>
    %12 = arith.mulf %6, %11 : vector<128x16xf32>
    %13 = arith.truncf %12 : vector<128x16xf32> to vector<128x16xbf16>
    %c0_7 = arith.constant 0 : index
    %c0_8 = arith.constant 0 : index
    %c0_9 = arith.constant 0 : index
    %14 = vector.load %arg5[%c0_7, %c0_8, %c0_9] : memref<1x128x16xbf16, #tpu.memory_space<vmem>>, vector<1x128x16xbf16>
    %15 = vector.shape_cast %14 : vector<1x128x16xbf16> to vector<128x16xbf16>
    %16 = vector.shape_cast %13 : vector<128x16xbf16> to vector<1x128x16xbf16>
    tpu.vector_store %arg5[%c0_7, %c0_8, %c0_9], %16 {strides = array<i32>} : memref<1x128x16xbf16, #tpu.memory_space<vmem>>, vector<1x128x16xbf16>,
    return
  }
  func.func @transform_0(%arg0: i32, %arg1: i32) -> (i32, i32, i32) {
    %c0_i32 = arith.constant 0 : i32
    %c0_i32_0 = arith.constant 0 : i32
    return %arg0, %c0_i32, %arg1 : i32, i32, i32
  }
  func.func @transform_1(%arg0: i32, %arg1: i32) -> (i32, i32) {
    %c0_i32 = arith.constant 0 : i32
    %c0_i32_0 = arith.constant 0 : i32
    %c0_i32_1 = arith.constant 0 : i32
    return %c0_i32, %c0_i32_0 : i32, i32
  }
  func.func @transform_2(%arg0: i32, %arg1: i32) -> (i32, i32) {
    %c0_i32 = arith.constant 0 : i32
    %c0_i32_0 = arith.constant 0 : i32
    %c0_i32_1 = arith.constant 0 : i32
    return %c0_i32, %c0_i32_0 : i32, i32
  }
  func.func @transform_3(%arg0: i32, %arg1: i32) -> (i32, i32, i32) {
    %c0_i32 = arith.constant 0 : i32
    %c0_i32_0 = arith.constant 0 : i32
    return %arg0, %c0_i32, %arg1 : i32, i32, i32
  }
}

module attributes {stable_mosaic.version = 11 : i64} {
  func.func @_head_kernel(%arg0: i32, %arg1: memref<8x128xbf16, #tpu.memory_space<vmem>>, %arg2: memref<128x128xbf16, #tpu.memory_space<vmem>>, %arg3: memref<1x128xf32, #tpu.memory_space<vmem>>, %arg4: memref<3x128xf32, #tpu.memory_space<vmem>>, %arg5: memref<8x128xf32, #tpu.memory_space<vmem>>) attributes {dimension_semantics = [#tpu.dimension_semantics<parallel>], iteration_bounds = array<i64: 1>, scalar_prefetch = 0 : i64, scratch_operands = 0 : i64, tpu.core_type = #tpu.core_type<tc>, window_params = [{transform_indices = @transform_0, window_bounds = array<i64: 8, 128>}, {pipeline_mode = #tpu.pipeline_mode<synchronous>, transform_indices = @transform_1, window_bounds = array<i64: 128, 128>}, {pipeline_mode = #tpu.pipeline_mode<synchronous>, transform_indices = @transform_2, window_bounds = array<i64: 1, 128>}, {pipeline_mode = #tpu.pipeline_mode<synchronous>, transform_indices = @transform_3, window_bounds = array<i64: 3, 128>}, {transform_indices = @transform_4, window_bounds = array<i64: 8, 128>}]} {
    %c0 = arith.constant 0 : index
    %c0_0 = arith.constant 0 : index
    %0 = vector.load %arg1[%c0, %c0_0] : memref<8x128xbf16, #tpu.memory_space<vmem>>, vector<8x128xbf16>
    %c0_1 = arith.constant 0 : index
    %c0_2 = arith.constant 0 : index
    %1 = vector.load %arg2[%c0_1, %c0_2] : memref<128x128xbf16, #tpu.memory_space<vmem>>, vector<128x128xbf16>
    %cst = arith.constant dense<0.000000e+00> : vector<8x128xf32>
    %2 = tpu.matmul %0, %1, %cst {dimension_numbers = #tpu.dot_dimension_numbers<[1], [0], [0], [1], [0, 0, 1, 1], [], []>} : vector<8x128xbf16>, vector<128x128xbf16>, vector<8x128xf32> -> vector<8x128xf32>
    %c0_3 = arith.constant 0 : index
    %c0_4 = arith.constant 0 : index
    %3 = vector.load %arg3[%c0_3, %c0_4] : memref<1x128xf32, #tpu.memory_space<vmem>>, vector<1x128xf32>
    %4 = vector.broadcast %3 : vector<1x128xf32> to vector<8x128xf32>
    %5 = arith.addf %2, %4 : vector<8x128xf32>
    %c8_i32 = arith.constant 8 : i32
    %6 = arith.muli %arg0, %c8_i32 : i32
    %7 = tpu.iota {dimensions = array<i32: 0>} : vector<8x128xi32>
    %8 = vector.broadcast %6 : i32 to vector<8x128xi32>
    %9 = arith.addi %8, %7 : vector<8x128xi32>
    %c1_i32 = arith.constant 1 : i32
    %10 = vector.broadcast %c1_i32 : i32 to vector<8x128xi32>
    %11 = arith.andi %9, %10 : vector<8x128xi32>
    %c3_i32 = arith.constant 3 : i32
    %12 = vector.broadcast %c3_i32 : i32 to vector<8x128xi32>
    %13 = arith.andi %9, %12 : vector<8x128xi32>
    %14 = arith.sitofp %11 : vector<8x128xi32> to vector<8x128xf32>
    %cst_5 = arith.constant 5.000000e-01 : f32
    %15 = vector.broadcast %cst_5 : f32 to vector<8x128xf32>
    %16 = arith.subf %14, %15 : vector<8x128xf32>
    %17 = arith.subi %13, %11 : vector<8x128xi32>
    %18 = arith.sitofp %17 : vector<8x128xi32> to vector<8x128xf32>
    %cst_6 = arith.constant 5.000000e-01 : f32
    %19 = vector.broadcast %cst_6 : f32 to vector<8x128xf32>
    %20 = arith.mulf %18, %19 : vector<8x128xf32>
    %cst_7 = arith.constant 5.000000e-01 : f32
    %21 = vector.broadcast %cst_7 : f32 to vector<8x128xf32>
    %22 = arith.subf %20, %21 : vector<8x128xf32>
    %c0_8 = arith.constant 0 : index
    %c0_9 = arith.constant 0 : index
    %23 = vector.load %arg4[%c0_8, %c0_9] : memref<3x128xf32, #tpu.memory_space<vmem>>, vector<1x128xf32>
    %c1 = arith.constant 1 : index
    %c0_10 = arith.constant 0 : index
    %24 = vector.load %arg4[%c1, %c0_10] : memref<3x128xf32, #tpu.memory_space<vmem>>, vector<1x128xf32>
    %c2 = arith.constant 2 : index
    %c0_11 = arith.constant 0 : index
    %25 = vector.load %arg4[%c2, %c0_11] : memref<3x128xf32, #tpu.memory_space<vmem>>, vector<1x128xf32>
    %cst_12 = arith.constant 1.000000e+00 : f32
    %26 = vector.broadcast %cst_12 : f32 to vector<1x128xf32>
    %27 = arith.subf %26, %24 : vector<1x128xf32>
    %28 = vector.broadcast %27 : vector<1x128xf32> to vector<8x128xf32>
    %29 = arith.mulf %16, %28 : vector<8x128xf32>
    %30 = vector.broadcast %24 : vector<1x128xf32> to vector<8x128xf32>
    %31 = arith.mulf %22, %30 : vector<8x128xf32>
    %32 = arith.addf %29, %31 : vector<8x128xf32>
    %33 = arith.negf %5 : vector<8x128xf32>
    %34 = math.exp %33 : vector<8x128xf32>
    %cst_13 = arith.constant 1.000000e+00 : f32
    %35 = vector.broadcast %cst_13 : f32 to vector<8x128xf32>
    %36 = arith.addf %35, %34 : vector<8x128xf32>
    %37 = arith.divf %35, %36 : vector<8x128xf32>
    %cst_14 = arith.constant 2.000000e+00 : f32
    %38 = vector.broadcast %cst_14 : f32 to vector<8x128xf32>
    %39 = arith.mulf %37, %38 : vector<8x128xf32>
    %40 = arith.addf %39, %32 : vector<8x128xf32>
    %cst_15 = arith.constant 3.200000e+01 : f32
    %41 = vector.broadcast %cst_15 : f32 to vector<8x128xf32>
    %42 = arith.mulf %40, %41 : vector<8x128xf32>
    %cst_16 = arith.constant 2.000000e+00 : f32
    %43 = vector.broadcast %cst_16 : f32 to vector<8x128xf32>
    %44 = arith.mulf %37, %43 : vector<8x128xf32>
    %45 = arith.mulf %44, %44 : vector<8x128xf32>
    %46 = vector.broadcast %25 : vector<1x128xf32> to vector<8x128xf32>
    %47 = arith.mulf %45, %46 : vector<8x128xf32>
    %cst_17 = arith.constant 5.000000e-01 : f32
    %48 = vector.broadcast %cst_17 : f32 to vector<1x128xf32>
    %49 = arith.cmpf olt, %23, %48 : vector<1x128xf32>
    %cst_18 = arith.constant 1.500000e+00 : f32
    %50 = vector.broadcast %cst_18 : f32 to vector<1x128xf32>
    %51 = arith.cmpf olt, %23, %50 : vector<1x128xf32>
    %52 = vector.shape_cast %51 : vector<1x128xi1> to vector<1x128xi1>
    %53 = vector.broadcast %52 : vector<1x128xi1> to vector<8x128xi1>
    %54 = arith.select %53, %47, %37 : vector<8x128xi1>, vector<8x128xf32>
    %55 = vector.shape_cast %49 : vector<1x128xi1> to vector<1x128xi1>
    %56 = vector.broadcast %55 : vector<1x128xi1> to vector<8x128xi1>
    %57 = arith.select %56, %42, %54 : vector<8x128xi1>, vector<8x128xf32>
    %58 = tpu.iota {dimensions = array<i32: 1>} : vector<8x128xi32>
    %c64_i32 = arith.constant 64 : i32
    %59 = vector.broadcast %c64_i32 : i32 to vector<8x128xi32>
    %60 = arith.cmpi slt, %58, %59 : vector<8x128xi32>
    %61 = arith.select %60, %5, %57 : vector<8x128xi1>, vector<8x128xf32>
    %c0_19 = arith.constant 0 : index
    %c0_20 = arith.constant 0 : index
    %62 = vector.load %arg5[%c0_19, %c0_20] : memref<8x128xf32, #tpu.memory_space<vmem>>, vector<8x128xf32>
    tpu.vector_store %arg5[%c0_19, %c0_20], %61 {strides = array<i32>} : memref<8x128xf32, #tpu.memory_space<vmem>>, vector<8x128xf32>,
    return
  }
  func.func @transform_0(%arg0: i32) -> (i32, i32) {
    %c0_i32 = arith.constant 0 : i32
    %c0_i32_0 = arith.constant 0 : i32
    return %arg0, %c0_i32 : i32, i32
  }
  func.func @transform_1(%arg0: i32) -> (i32, i32) {
    %c0_i32 = arith.constant 0 : i32
    %c0_i32_0 = arith.constant 0 : i32
    %c0_i32_1 = arith.constant 0 : i32
    return %c0_i32, %c0_i32_0 : i32, i32
  }
  func.func @transform_2(%arg0: i32) -> (i32, i32) {
    %c0_i32 = arith.constant 0 : i32
    %c0_i32_0 = arith.constant 0 : i32
    %c0_i32_1 = arith.constant 0 : i32
    return %c0_i32, %c0_i32_0 : i32, i32
  }
  func.func @transform_3(%arg0: i32) -> (i32, i32) {
    %c0_i32 = arith.constant 0 : i32
    %c0_i32_0 = arith.constant 0 : i32
    %c0_i32_1 = arith.constant 0 : i32
    return %c0_i32, %c0_i32_0 : i32, i32
  }
  func.func @transform_4(%arg0: i32) -> (i32, i32) {
    %c0_i32 = arith.constant 0 : i32
    %c0_i32_0 = arith.constant 0 : i32
    return %arg0, %c0_i32 : i32, i32
  }
}

module attributes {stable_mosaic.version = 11 : i64} {
  func.func @_head_kernel(%arg0: i32, %arg1: memref<32x64xbf16, #tpu.memory_space<vmem>>, %arg2: memref<64x128xbf16, #tpu.memory_space<vmem>>, %arg3: memref<1x128xf32, #tpu.memory_space<vmem>>, %arg4: memref<3x128xf32, #tpu.memory_space<vmem>>, %arg5: memref<32x128xf32, #tpu.memory_space<vmem>>) attributes {dimension_semantics = [#tpu.dimension_semantics<parallel>], iteration_bounds = array<i64: 1>, scalar_prefetch = 0 : i64, scratch_operands = 0 : i64, tpu.core_type = #tpu.core_type<tc>, window_params = [{transform_indices = @transform_0, window_bounds = array<i64: 32, 64>}, {pipeline_mode = #tpu.pipeline_mode<synchronous>, transform_indices = @transform_1, window_bounds = array<i64: 64, 128>}, {pipeline_mode = #tpu.pipeline_mode<synchronous>, transform_indices = @transform_2, window_bounds = array<i64: 1, 128>}, {pipeline_mode = #tpu.pipeline_mode<synchronous>, transform_indices = @transform_3, window_bounds = array<i64: 3, 128>}, {transform_indices = @transform_4, window_bounds = array<i64: 32, 128>}]} {
    %c0 = arith.constant 0 : index
    %c0_0 = arith.constant 0 : index
    %0 = vector.load %arg1[%c0, %c0_0] : memref<32x64xbf16, #tpu.memory_space<vmem>>, vector<32x64xbf16>
    %c0_1 = arith.constant 0 : index
    %c0_2 = arith.constant 0 : index
    %1 = vector.load %arg2[%c0_1, %c0_2] : memref<64x128xbf16, #tpu.memory_space<vmem>>, vector<64x128xbf16>
    %cst = arith.constant dense<0.000000e+00> : vector<32x128xf32>
    %2 = tpu.matmul %0, %1, %cst {dimension_numbers = #tpu.dot_dimension_numbers<[1], [0], [0], [1], [0, 0, 1, 1], [], []>} : vector<32x64xbf16>, vector<64x128xbf16>, vector<32x128xf32> -> vector<32x128xf32>
    %c0_3 = arith.constant 0 : index
    %c0_4 = arith.constant 0 : index
    %3 = vector.load %arg3[%c0_3, %c0_4] : memref<1x128xf32, #tpu.memory_space<vmem>>, vector<1x128xf32>
    %4 = vector.broadcast %3 : vector<1x128xf32> to vector<32x128xf32>
    %5 = arith.addf %2, %4 : vector<32x128xf32>
    %c32_i32 = arith.constant 32 : i32
    %6 = arith.muli %arg0, %c32_i32 : i32
    %7 = tpu.iota {dimensions = array<i32: 0>} : vector<32x128xi32>
    %8 = vector.broadcast %6 : i32 to vector<32x128xi32>
    %9 = arith.addi %8, %7 : vector<32x128xi32>
    %c3_i32 = arith.constant 3 : i32
    %10 = vector.broadcast %c3_i32 : i32 to vector<32x128xi32>
    %11 = arith.andi %9, %10 : vector<32x128xi32>
    %c15_i32 = arith.constant 15 : i32
    %12 = vector.broadcast %c15_i32 : i32 to vector<32x128xi32>
    %13 = arith.andi %9, %12 : vector<32x128xi32>
    %14 = arith.sitofp %11 : vector<32x128xi32> to vector<32x128xf32>
    %cst_5 = arith.constant 5.000000e-01 : f32
    %15 = vector.broadcast %cst_5 : f32 to vector<32x128xf32>
    %16 = arith.subf %14, %15 : vector<32x128xf32>
    %17 = arith.subi %13, %11 : vector<32x128xi32>
    %18 = arith.sitofp %17 : vector<32x128xi32> to vector<32x128xf32>
    %cst_6 = arith.constant 2.500000e-01 : f32
    %19 = vector.broadcast %cst_6 : f32 to vector<32x128xf32>
    %20 = arith.mulf %18, %19 : vector<32x128xf32>
    %cst_7 = arith.constant 5.000000e-01 : f32
    %21 = vector.broadcast %cst_7 : f32 to vector<32x128xf32>
    %22 = arith.subf %20, %21 : vector<32x128xf32>
    %c0_8 = arith.constant 0 : index
    %c0_9 = arith.constant 0 : index
    %23 = vector.load %arg4[%c0_8, %c0_9] : memref<3x128xf32, #tpu.memory_space<vmem>>, vector<1x128xf32>
    %c1 = arith.constant 1 : index
    %c0_10 = arith.constant 0 : index
    %24 = vector.load %arg4[%c1, %c0_10] : memref<3x128xf32, #tpu.memory_space<vmem>>, vector<1x128xf32>
    %c2 = arith.constant 2 : index
    %c0_11 = arith.constant 0 : index
    %25 = vector.load %arg4[%c2, %c0_11] : memref<3x128xf32, #tpu.memory_space<vmem>>, vector<1x128xf32>
    %cst_12 = arith.constant 1.000000e+00 : f32
    %26 = vector.broadcast %cst_12 : f32 to vector<1x128xf32>
    %27 = arith.subf %26, %24 : vector<1x128xf32>
    %28 = vector.broadcast %27 : vector<1x128xf32> to vector<32x128xf32>
    %29 = arith.mulf %16, %28 : vector<32x128xf32>
    %30 = vector.broadcast %24 : vector<1x128xf32> to vector<32x128xf32>
    %31 = arith.mulf %22, %30 : vector<32x128xf32>
    %32 = arith.addf %29, %31 : vector<32x128xf32>
    %33 = arith.negf %5 : vector<32x128xf32>
    %34 = math.exp %33 : vector<32x128xf32>
    %cst_13 = arith.constant 1.000000e+00 : f32
    %35 = vector.broadcast %cst_13 : f32 to vector<32x128xf32>
    %36 = arith.addf %35, %34 : vector<32x128xf32>
    %37 = arith.divf %35, %36 : vector<32x128xf32>
    %cst_14 = arith.constant 2.000000e+00 : f32
    %38 = vector.broadcast %cst_14 : f32 to vector<32x128xf32>
    %39 = arith.mulf %37, %38 : vector<32x128xf32>
    %40 = arith.addf %39, %32 : vector<32x128xf32>
    %cst_15 = arith.constant 1.600000e+01 : f32
    %41 = vector.broadcast %cst_15 : f32 to vector<32x128xf32>
    %42 = arith.mulf %40, %41 : vector<32x128xf32>
    %cst_16 = arith.constant 2.000000e+00 : f32
    %43 = vector.broadcast %cst_16 : f32 to vector<32x128xf32>
    %44 = arith.mulf %37, %43 : vector<32x128xf32>
    %45 = arith.mulf %44, %44 : vector<32x128xf32>
    %46 = vector.broadcast %25 : vector<1x128xf32> to vector<32x128xf32>
    %47 = arith.mulf %45, %46 : vector<32x128xf32>
    %cst_17 = arith.constant 5.000000e-01 : f32
    %48 = vector.broadcast %cst_17 : f32 to vector<1x128xf32>
    %49 = arith.cmpf olt, %23, %48 : vector<1x128xf32>
    %cst_18 = arith.constant 1.500000e+00 : f32
    %50 = vector.broadcast %cst_18 : f32 to vector<1x128xf32>
    %51 = arith.cmpf olt, %23, %50 : vector<1x128xf32>
    %52 = vector.shape_cast %51 : vector<1x128xi1> to vector<1x128xi1>
    %53 = vector.broadcast %52 : vector<1x128xi1> to vector<32x128xi1>
    %54 = arith.select %53, %47, %37 : vector<32x128xi1>, vector<32x128xf32>
    %55 = vector.shape_cast %49 : vector<1x128xi1> to vector<1x128xi1>
    %56 = vector.broadcast %55 : vector<1x128xi1> to vector<32x128xi1>
    %57 = arith.select %56, %42, %54 : vector<32x128xi1>, vector<32x128xf32>
    %58 = tpu.iota {dimensions = array<i32: 1>} : vector<32x128xi32>
    %c64_i32 = arith.constant 64 : i32
    %59 = vector.broadcast %c64_i32 : i32 to vector<32x128xi32>
    %60 = arith.cmpi slt, %58, %59 : vector<32x128xi32>
    %61 = arith.select %60, %5, %57 : vector<32x128xi1>, vector<32x128xf32>
    %c0_19 = arith.constant 0 : index
    %c0_20 = arith.constant 0 : index
    %62 = vector.load %arg5[%c0_19, %c0_20] : memref<32x128xf32, #tpu.memory_space<vmem>>, vector<32x128xf32>
    tpu.vector_store %arg5[%c0_19, %c0_20], %61 {strides = array<i32>} : memref<32x128xf32, #tpu.memory_space<vmem>>, vector<32x128xf32>,
    return
  }
  func.func @transform_0(%arg0: i32) -> (i32, i32) {
    %c0_i32 = arith.constant 0 : i32
    %c0_i32_0 = arith.constant 0 : i32
    return %arg0, %c0_i32 : i32, i32
  }
  func.func @transform_1(%arg0: i32) -> (i32, i32) {
    %c0_i32 = arith.constant 0 : i32
    %c0_i32_0 = arith.constant 0 : i32
    %c0_i32_1 = arith.constant 0 : i32
    return %c0_i32, %c0_i32_0 : i32, i32
  }
  func.func @transform_2(%arg0: i32) -> (i32, i32) {
    %c0_i32 = arith.constant 0 : i32
    %c0_i32_0 = arith.constant 0 : i32
    %c0_i32_1 = arith.constant 0 : i32
    return %c0_i32, %c0_i32_0 : i32, i32
  }
  func.func @transform_3(%arg0: i32) -> (i32, i32) {
    %c0_i32 = arith.constant 0 : i32
    %c0_i32_0 = arith.constant 0 : i32
    %c0_i32_1 = arith.constant 0 : i32
    return %c0_i32, %c0_i32_0 : i32, i32
  }
  func.func @transform_4(%arg0: i32) -> (i32, i32) {
    %c0_i32 = arith.constant 0 : i32
    %c0_i32_0 = arith.constant 0 : i32
    return %arg0, %c0_i32 : i32, i32
  }
}

module attributes {stable_mosaic.version = 11 : i64} {
  func.func @_head_kernel(%arg0: i32, %arg1: memref<128x32xbf16, #tpu.memory_space<vmem>>, %arg2: memref<32x128xbf16, #tpu.memory_space<vmem>>, %arg3: memref<1x128xf32, #tpu.memory_space<vmem>>, %arg4: memref<3x128xf32, #tpu.memory_space<vmem>>, %arg5: memref<128x128xf32, #tpu.memory_space<vmem>>) attributes {dimension_semantics = [#tpu.dimension_semantics<parallel>], iteration_bounds = array<i64: 1>, scalar_prefetch = 0 : i64, scratch_operands = 0 : i64, tpu.core_type = #tpu.core_type<tc>, window_params = [{transform_indices = @transform_0, window_bounds = array<i64: 128, 32>}, {pipeline_mode = #tpu.pipeline_mode<synchronous>, transform_indices = @transform_1, window_bounds = array<i64: 32, 128>}, {pipeline_mode = #tpu.pipeline_mode<synchronous>, transform_indices = @transform_2, window_bounds = array<i64: 1, 128>}, {pipeline_mode = #tpu.pipeline_mode<synchronous>, transform_indices = @transform_3, window_bounds = array<i64: 3, 128>}, {transform_indices = @transform_4, window_bounds = array<i64: 128, 128>}]} {
    %c0 = arith.constant 0 : index
    %c0_0 = arith.constant 0 : index
    %0 = vector.load %arg1[%c0, %c0_0] : memref<128x32xbf16, #tpu.memory_space<vmem>>, vector<128x32xbf16>
    %c0_1 = arith.constant 0 : index
    %c0_2 = arith.constant 0 : index
    %1 = vector.load %arg2[%c0_1, %c0_2] : memref<32x128xbf16, #tpu.memory_space<vmem>>, vector<32x128xbf16>
    %cst = arith.constant dense<0.000000e+00> : vector<128x128xf32>
    %2 = tpu.matmul %0, %1, %cst {dimension_numbers = #tpu.dot_dimension_numbers<[1], [0], [0], [1], [0, 0, 1, 1], [], []>} : vector<128x32xbf16>, vector<32x128xbf16>, vector<128x128xf32> -> vector<128x128xf32>
    %c0_3 = arith.constant 0 : index
    %c0_4 = arith.constant 0 : index
    %3 = vector.load %arg3[%c0_3, %c0_4] : memref<1x128xf32, #tpu.memory_space<vmem>>, vector<1x128xf32>
    %4 = vector.broadcast %3 : vector<1x128xf32> to vector<128x128xf32>
    %5 = arith.addf %2, %4 : vector<128x128xf32>
    %c128_i32 = arith.constant 128 : i32
    %6 = arith.muli %arg0, %c128_i32 : i32
    %7 = tpu.iota {dimensions = array<i32: 0>} : vector<128x128xi32>
    %8 = vector.broadcast %6 : i32 to vector<128x128xi32>
    %9 = arith.addi %8, %7 : vector<128x128xi32>
    %c7_i32 = arith.constant 7 : i32
    %10 = vector.broadcast %c7_i32 : i32 to vector<128x128xi32>
    %11 = arith.andi %9, %10 : vector<128x128xi32>
    %c63_i32 = arith.constant 63 : i32
    %12 = vector.broadcast %c63_i32 : i32 to vector<128x128xi32>
    %13 = arith.andi %9, %12 : vector<128x128xi32>
    %14 = arith.sitofp %11 : vector<128x128xi32> to vector<128x128xf32>
    %cst_5 = arith.constant 5.000000e-01 : f32
    %15 = vector.broadcast %cst_5 : f32 to vector<128x128xf32>
    %16 = arith.subf %14, %15 : vector<128x128xf32>
    %17 = arith.subi %13, %11 : vector<128x128xi32>
    %18 = arith.sitofp %17 : vector<128x128xi32> to vector<128x128xf32>
    %cst_6 = arith.constant 1.250000e-01 : f32
    %19 = vector.broadcast %cst_6 : f32 to vector<128x128xf32>
    %20 = arith.mulf %18, %19 : vector<128x128xf32>
    %cst_7 = arith.constant 5.000000e-01 : f32
    %21 = vector.broadcast %cst_7 : f32 to vector<128x128xf32>
    %22 = arith.subf %20, %21 : vector<128x128xf32>
    %c0_8 = arith.constant 0 : index
    %c0_9 = arith.constant 0 : index
    %23 = vector.load %arg4[%c0_8, %c0_9] : memref<3x128xf32, #tpu.memory_space<vmem>>, vector<1x128xf32>
    %c1 = arith.constant 1 : index
    %c0_10 = arith.constant 0 : index
    %24 = vector.load %arg4[%c1, %c0_10] : memref<3x128xf32, #tpu.memory_space<vmem>>, vector<1x128xf32>
    %c2 = arith.constant 2 : index
    %c0_11 = arith.constant 0 : index
    %25 = vector.load %arg4[%c2, %c0_11] : memref<3x128xf32, #tpu.memory_space<vmem>>, vector<1x128xf32>
    %cst_12 = arith.constant 1.000000e+00 : f32
    %26 = vector.broadcast %cst_12 : f32 to vector<1x128xf32>
    %27 = arith.subf %26, %24 : vector<1x128xf32>
    %28 = vector.broadcast %27 : vector<1x128xf32> to vector<128x128xf32>
    %29 = arith.mulf %16, %28 : vector<128x128xf32>
    %30 = vector.broadcast %24 : vector<1x128xf32> to vector<128x128xf32>
    %31 = arith.mulf %22, %30 : vector<128x128xf32>
    %32 = arith.addf %29, %31 : vector<128x128xf32>
    %33 = arith.negf %5 : vector<128x128xf32>
    %34 = math.exp %33 : vector<128x128xf32>
    %cst_13 = arith.constant 1.000000e+00 : f32
    %35 = vector.broadcast %cst_13 : f32 to vector<128x128xf32>
    %36 = arith.addf %35, %34 : vector<128x128xf32>
    %37 = arith.divf %35, %36 : vector<128x128xf32>
    %cst_14 = arith.constant 2.000000e+00 : f32
    %38 = vector.broadcast %cst_14 : f32 to vector<128x128xf32>
    %39 = arith.mulf %37, %38 : vector<128x128xf32>
    %40 = arith.addf %39, %32 : vector<128x128xf32>
    %cst_15 = arith.constant 8.000000e+00 : f32
    %41 = vector.broadcast %cst_15 : f32 to vector<128x128xf32>
    %42 = arith.mulf %40, %41 : vector<128x128xf32>
    %cst_16 = arith.constant 2.000000e+00 : f32
    %43 = vector.broadcast %cst_16 : f32 to vector<128x128xf32>
    %44 = arith.mulf %37, %43 : vector<128x128xf32>
    %45 = arith.mulf %44, %44 : vector<128x128xf32>
    %46 = vector.broadcast %25 : vector<1x128xf32> to vector<128x128xf32>
    %47 = arith.mulf %45, %46 : vector<128x128xf32>
    %cst_17 = arith.constant 5.000000e-01 : f32
    %48 = vector.broadcast %cst_17 : f32 to vector<1x128xf32>
    %49 = arith.cmpf olt, %23, %48 : vector<1x128xf32>
    %cst_18 = arith.constant 1.500000e+00 : f32
    %50 = vector.broadcast %cst_18 : f32 to vector<1x128xf32>
    %51 = arith.cmpf olt, %23, %50 : vector<1x128xf32>
    %52 = vector.shape_cast %51 : vector<1x128xi1> to vector<1x128xi1>
    %53 = vector.broadcast %52 : vector<1x128xi1> to vector<128x128xi1>
    %54 = arith.select %53, %47, %37 : vector<128x128xi1>, vector<128x128xf32>
    %55 = vector.shape_cast %49 : vector<1x128xi1> to vector<1x128xi1>
    %56 = vector.broadcast %55 : vector<1x128xi1> to vector<128x128xi1>
    %57 = arith.select %56, %42, %54 : vector<128x128xi1>, vector<128x128xf32>
    %58 = tpu.iota {dimensions = array<i32: 1>} : vector<128x128xi32>
    %c64_i32 = arith.constant 64 : i32
    %59 = vector.broadcast %c64_i32 : i32 to vector<128x128xi32>
    %60 = arith.cmpi slt, %58, %59 : vector<128x128xi32>
    %61 = arith.select %60, %5, %57 : vector<128x128xi1>, vector<128x128xf32>
    %c0_19 = arith.constant 0 : index
    %c0_20 = arith.constant 0 : index
    %62 = vector.load %arg5[%c0_19, %c0_20] : memref<128x128xf32, #tpu.memory_space<vmem>>, vector<128x128xf32>
    tpu.vector_store %arg5[%c0_19, %c0_20], %61 {strides = array<i32>} : memref<128x128xf32, #tpu.memory_space<vmem>>, vector<128x128xf32>,
    return
  }
  func.func @transform_0(%arg0: i32) -> (i32, i32) {
    %c0_i32 = arith.constant 0 : i32
    %c0_i32_0 = arith.constant 0 : i32
    return %arg0, %c0_i32 : i32, i32
  }
  func.func @transform_1(%arg0: i32) -> (i32, i32) {
    %c0_i32 = arith.constant 0 : i32
    %c0_i32_0 = arith.constant 0 : i32
    %c0_i32_1 = arith.constant 0 : i32
    return %c0_i32, %c0_i32_0 : i32, i32
  }
  func.func @transform_2(%arg0: i32) -> (i32, i32) {
    %c0_i32 = arith.constant 0 : i32
    %c0_i32_0 = arith.constant 0 : i32
    %c0_i32_1 = arith.constant 0 : i32
    return %c0_i32, %c0_i32_0 : i32, i32
  }
  func.func @transform_3(%arg0: i32) -> (i32, i32) {
    %c0_i32 = arith.constant 0 : i32
    %c0_i32_0 = arith.constant 0 : i32
    %c0_i32_1 = arith.constant 0 : i32
    return %c0_i32, %c0_i32_0 : i32, i32
  }
  func.func @transform_4(%arg0: i32) -> (i32, i32) {
    %c0_i32 = arith.constant 0 : i32
    %c0_i32_0 = arith.constant 0 : i32
    return %arg0, %c0_i32 : i32, i32
  }
}

</mosaic_0001>

<bundles_post_ra>
// kernel: _lambda_.8
= control target key start
LH: loop header
LB: loop body
LE: loop exit
PB: predicated region body
PF: predicated region fallthrough
CT: control target
= control target key end

     0   :  { %s724_s12 = smov 0   ;;  %s726_s13 = smov 0   ;;  %s820_s0 = inlined_call_operand.vmem [shape: bf16[2,27,1024], index: 0, kind: input, shape index: {}]   ;;  %s821_s1 = inlined_call_operand.vmem [shape: bf16[8,27], index: 1, kind: input, shape index: {}]   ;;  %s822_s2 = inlined_call_operand.vmem [shape: f32[8,1], index: 2, kind: input, shape index: {}]   ;;  %s823_s3 = inlined_call_operand.vmem [shape: bf16[2,8,1024], index: 3, kind: output, shape index: {}]  }
   0x1   :  { %s728_s14 = smov 0   ;;  %s730_s15 = smov 0  }
   0x2   :  { %s732_s16 = smov 0   ;;  %s734_s17 = smov 0  }
   0x3   :  { %s736_s18 = smov 0  }
   0x4 LB: > { %s22_s19 = sadd.s32 1, %s692_s16  ;;  %s25_s20 = sadd.s32 1, %s696_s17  ;;  %s700_s18 = sphi %s736_s18, %s13_s18   ;;  %s696_s17 = sphi %s734_s17, %s829_s17   ;;  %s692_s16 = sphi %s732_s16, %s828_s16   ;;  %s688_s15 = sphi %s730_s15, %s827_s15   ;;  %s684_s14 = sphi %s728_s14, %s826_s14   ;;  %s680_s13 = sphi %s726_s13, %s825_s13   ;;  %s676_s12 = sphi %s724_s12, %s824_s12  }
   0x5   : > { %p23_p0 = scmp.ge.s32.totalorder %s22_s19, 2  ;;  %p41_p1 = scmp.ne.s32.totalorder %s680_s13, %s676_s12 }
   0x6   : > { %p42_p2 = scmp.eq.s32.totalorder %s700_s18, 0  ;;  %s34_s24 = sadd.s32 1, %s680_s13 }
   0x7   : > { %s831_s19 = smov (%p23_p0, %s22_s19), 0  ;;  %s833_s20 = smov (!%p23_p0, %s25_s20), %s696_s17 }
   0x8   : > { %p43_p3 = por %p42_p2, %p41_p1  ;;  %p27_p4 = scmp.ge.s32.totalorder %s833_s20, 2 }
   0x9   : > { %s30_s21 = ssub.s32 %s692_s16, %s831_s19  ;;  %p529_p6 = scmp.ge.s32.totalorder %s700_s18, 4 }
   0xa   : > { %s835_s20 = smov (%p27_p4, %s833_s20), 0 }
   0xb   : > { %s29_s22 = ssub.s32 %s696_s17, %s835_s20  ;;  %143 = sbr.rel (%p529_p6) target bundleno = 27 (0x1b), region = 24 }
   0xc   : > { %s31_s23 = sor.u32 %s30_s21, %s29_s22 }
   0xd   : > { %p32_p5 = scmp.eq.s32.totalorder %s31_s23, 0 }
   0xf   : > { %s775_s25 = scalar_select %p32_p5, %s680_s13, %s34_s24  }
  0x10   : > { %146 = sbr.rel (!%p43_p3) target bundleno = 27 (0x1b), region = 28  ;;  %s148_s26 = sand.u32 (%p43_p3), 1, %s680_s13  }
  0x11   : > { %s531_s27 = sshll.u32 (%p43_p3), %s692_s16, 2  ;;  %s530_s28 = sshll.u32 (%p43_p3), %s148_s26, 6 }
  0x12   : > { %s532_s29 = sshll.u32 (%p43_p3), %s696_s17, 5  ;;  %s150_s8 = scalar_lea.vmem (%p43_p3), [#allocation2], %s530_s28 }
  0x13   : > { %s153_s30 = sadd.s32 (%p43_p3), %s532_s29, %s531_s27 }
  0x14   : > { %s533_s4 = sshll.u32 (%p43_p3), %s153_s30, 2 }
  0x15   : > { %s155_s7 = scalar_lea.vmem %s820_s0, %s533_s4 }
  0x16   : > { %v168_v0 = vld [vmem:[%s155_s7] sm:$0xff]  ;;  %v170_v1 = vld [vmem:[%s155_s7 + $0x8] sm:$0xff] }
  0x17   : > { %v172_v2 = vld [vmem:[%s155_s7 + $0x20] sm:$0xff]  ;;  %169 = vst [vmem:[%s150_s8] sm:$0xff] %v168_v0  ;;  %171 = vst [vmem:[%s150_s8 + $0x8] sm:$0xff] %v170_v1  ;;  %v174_v3 = vld [vmem:[%s155_s7 + $0x28] sm:$0xff] }
  0x18   : > { %173 = vst [vmem:[%s150_s8 + $0x10] sm:$0xff] %v172_v2  ;;  %v176_v4 = vld [vmem:[%s155_s7 + $0x40] sm:$0xff]  ;;  %v178_v5 = vld [vmem:[%s155_s7 + $0x48] sm:$0xff]  ;;  %175 = vst [vmem:[%s150_s8 + $0x18] sm:$0xff] %v174_v3 }
  0x19   : > { %177 = vst [vmem:[%s150_s8 + $0x20] sm:$0xff] %v176_v4  ;;  %179 = vst [vmem:[%s150_s8 + $0x28] sm:$0xff] %v178_v5  ;;  %v180_v6 = vld [vmem:[%s155_s7 + $0x60] sm:$0xff]  ;;  %v182_v7 = vld [vmem:[%s155_s7 + $0x68] sm:$0xff] }
  0x1a   : > { %181 = vst [vmem:[%s150_s8 + $0x30] sm:$0xff] %v180_v6  ;;  %183 = vst [vmem:[%s150_s8 + $0x38] sm:$0xff] %v182_v7 }
  0x1b PF: > { %p534_p7 = scmp.ge.s32.totalorder %s700_s18, 1  ;;  %p188_p8 = scmp.lt.s32.totalorder %s700_s18, 5 }
  0x1d   : > { %p189_p9 = pnand %p534_p7, %p188_p8 }
  0x1e   : > { %s195_s9 = sand.u32 (!%p189_p9), 1, %s676_s12   ;;  %s536_s24 = sshll.u32 (!%p189_p9), %s684_s14, 2 }
  0x1f   : > { %192 = sbr.rel (%p189_p9) target bundleno = 284 (0x11c), region = 51  ;;  %s535_s21 = sshll.u32 (!%p189_p9), %s195_s9, 6 }
  0x20   : > { %s197_s22 = scalar_lea.vmem (!%p189_p9), [#allocation2], %s535_s21  ;;  %p224_p10 = scmp.lt.s32.totalorder (!%p189_p9), %s688_s15, 1 }
  0x21   : > { %p226_p11 = scmp.lt.s32.totalorder (!%p189_p9), %s536_s24, 7 }
  0x24   : > { %vm289_vm0 = vcmask 1044480   ;;  %vm290_vm1 = vcmask 1045504   ;;  %v243_v8 = vld [vmem:[%s822_s2] sm:$0xff]  ;;  %v702_v9 = vmov 65535   ;;  %v703_v11 = vmov 0   ;;  %s837_s15 = smov (!%p224_p10, %s688_s15), 1 }
  0x25   : > { %v291_v10 = vsel %vm289_vm0, 4294967295, %v702_v9  ;;  %337 = vmatprep.mubr.bf16.mxu0 %v703_v11  ;;  %378 = vmatprep.mubr.bf16.mxu1 %v703_v11  ;;  %v618_v13 = vld [vmem:[%s197_s22 + $0x24] ss:$16 sps:$4 sm:$0x3f]   ;;  %v626_v22 = vld [vmem:[%s197_s22 + $0xc] ss:$16 sps:$4 sm:$0xff]  }
  0x26   : > { %v292_v12 = vsel %vm290_vm1, %v291_v10, 0  ;;  %617 = vset.pattern.permute.xlu0 %v703_v11  ;;  %v620_v14 = vld [vmem:[%s197_s22 + $0x2c] ss:$16 sps:$4 sm:$0x3f]   ;;  %v624_v19 = vld [vmem:[%s197_s22 + $0x4] ss:$16 sps:$4 sm:$0xff]  }
  0x27   : > { %246 = vperm.xlu0 %617, %v243_v8   ;;  %v297_v15 = vand.u32 %v618_v13, %v292_v12  ;;  %v622_v16 = vld [vmem:[%s197_s22 + $0x20] ss:$16 sps:$4 sm:$0x3f]   ;;  %v623_v17 = vld [vmem:[%s197_s22 + $0x28] ss:$16 sps:$4 sm:$0x3f]   ;;  %v303_v18 = vand.u32 %v620_v14, %v292_v12 }
  0x28   : > { %v294_v20 = vand.u32 %v622_v16, %v292_v12  ;;  %v300_v21 = vand.u32 %v623_v17, %v292_v12  ;;  %v628_v23 = vld [vmem:[%s197_s22] ss:$16 sps:$4 sm:$0xff]   ;;  %v629_v24 = vld [vmem:[%s197_s22 + $0x8] ss:$16 sps:$4 sm:$0xff]   ;;  %vm285_vm2 = vcmask 220160   ;;  %s839_s24 = smov (!%p226_p11, %s536_s24), 7 }
  0x29   : > { %317 = vmatprep.subr.bf16.mxu0 %v297_v15  ;;  %358 = vmatprep.subr.bf16.mxu1 %v303_v18  ;;  %v234_v25 = vld [vmem:[%s821_s1] sm:$0xf]  ;;  %s537_s26 = sshll.u32 %s837_s15, 3 }
  0x2a   : > { %318 = vmatpush1.bf16.msra.mxu0 %v294_v20  ;;  %359 = vmatpush1.bf16.msra.mxu1 %v300_v21  ;;  %s229_s27 = sadd.s32 %s537_s26, %s839_s24 }
  0x2b   : > { %319 = vmatprep.subr.bf16.mxu0 %v624_v19  ;;  %360 = vmatprep.subr.bf16.mxu1 %v626_v22  ;;  %s538_s28 = sshll.u32 %s229_s27, 2 }
  0x2c   : > { %s231_s30 = scalar_lea.vmem %s823_s3, %s538_s28 }
  0x2e   : > { %320 = vmatpush1.bf16.msra.mxu0 %v628_v23  ;;  %361 = vmatpush1.bf16.msra.mxu1 %v629_v24 }
  0x31   : > { %547 = vmatmul.mubr.msk.bf16.vlgmr.msra.gmra.mxu0 %vm285_vm2, %v234_v25  ;;  %548 = vmatmul.mubr.msk.bf16.vlgmr.msra.gmra.mxu1 %vm285_vm2, %v234_v25 }
  0xa2   : > { %v247_v26 = vpop.permute.xlu0 %246 }
  0xf1   : > { %v339_v27 = vpop.f32.mrf.mxu0  ;;  %v380_v28 = vpop.f32.mrf.mxu1 }
  0xf2   : > { %v340_v29 = vadd.f32 %v339_v27, %v247_v26  ;;  %v381_v30 = vadd.f32 %v380_v28, %v247_v26 }
  0xf3   : > { %v341_v31 = vpop.f32.mrf.mxu0  ;;  %v382_v32 = vpop.f32.mrf.mxu1 }
  0xf4   : > { %v549_v33 = vmul.f32 -1.442695, %v340_v29  ;;  %v551_v34 = vmul.f32 -1.442695, %v381_v30  ;;  %v342_v35 = vadd.f32 %v341_v31, %v247_v26  ;;  %v383_v36 = vadd.f32 %v382_v32, %v247_v26 }
  0xf5   : > { %v343_v37 = vpop.f32.mrf.mxu0  ;;  %v384_v38 = vpop.f32.mrf.mxu1 }
  0xf6   : > { %630 = vpow2.f32 %v549_v33  ;;  %v550_v39 = vmul.f32 -1.442695, %v342_v35  ;;  %v552_v40 = vmul.f32 -1.442695, %v383_v36 }
  0xf7   : > { %632 = vpow2.f32 %v551_v34  ;;  %v344_v41 = vpop.f32.mrf.mxu0  ;;  %v385_v42 = vpop.f32.mrf.mxu1 }
  0xf8   : > { %634 = vpow2.f32 %v550_v39 }
  0xf9   : > { %636 = vpow2.f32 %v552_v40 }
 0x103   : > { %v631_v43 = vpop.eup %630 }
 0x104   : > { %v633_v44 = vpop.eup %632  ;;  %v399_v45 = vadd.f32 1.0, %v631_v43 }
 0x105   : > { %v635_v46 = vpop.eup %634  ;;  %v401_v47 = vadd.f32 1.0, %v633_v44 }
 0x106   : > { %v637_v48 = vpop.eup %636  ;;  %638 = vrcp.f32 %v399_v45  ;;  %v400_v49 = vadd.f32 1.0, %v635_v46 }
 0x107   : > { %640 = vrcp.f32 %v401_v47  ;;  %v402_v50 = vadd.f32 1.0, %v637_v48 }
 0x108   : > { %642 = vrcp.f32 %v400_v49 }
 0x109   : > { %644 = vrcp.f32 %v402_v50 }
 0x113   : > { %v639_v51 = vpop.eup %638 }
 0x114   : > { %v641_v52 = vpop.eup %640  ;;  %v411_v55 = vmul.f32 %v639_v51, %v340_v29 }
 0x115   : > { %v643_v53 = vpop.eup %642  ;;  %v413_v57 = vmul.f32 %v641_v52, %v381_v30 }
 0x116   : > { %v645_v54 = vpop.eup %644  ;;  %v412_v56 = vmul.f32 %v643_v53, %v342_v35 }
 0x117   : > { %v414_v58 = vmul.f32 %v645_v54, %v383_v36 }
 0x118   : > { %v557_v59 = vpack.c.bf16 %v412_v56, %v411_v55 }
 0x119   : > { %v558_v60 = vpack.c.bf16 %v414_v58, %v413_v57 }
 0x11a   : > { %431 = vst [vmem:[%s231_s30] sm:$0xff] %v557_v59 }
 0x11b   : > { %432 = vst [vmem:[%s231_s30 + $0x8] sm:$0xff] %v558_v60 }
 0x11c PF: > { %s13_s18 = sadd.s32 1, %s700_s18   ;;  %s824_s12 = smov %s680_s13 }
 0x11d   : > { %p10_p12 = scmp.ge.s32.totalorder %s13_s18, 6   ;;  %s825_s13 = smov %s775_s25 }
 0x11e   : > { %s826_s14 = smov %s692_s16  ;;  %s827_s15 = smov %s696_s17 }
 0x11f   : > { %s828_s16 = smov %s831_s19  ;;  %s829_s17 = smov %s835_s20 }
 0x120   :  { %12 = sbr.rel (!%p10_p12) target bundleno = 4 (0x4), region = 90 }

// kernel: _lambda_.9
= control target key start
LH: loop header
LB: loop body
LE: loop exit
PB: predicated region body
PF: predicated region fallthrough
CT: control target
= control target key end

     0   :  { %s602_s12 = smov 0   ;;  %s604_s13 = smov 0   ;;  %s648_s0 = inlined_call_operand.vmem [shape: bf16[2,72,256], index: 0, kind: input, shape index: {}]   ;;  %s649_s1 = inlined_call_operand.vmem [shape: bf16[16,72], index: 1, kind: input, shape index: {}]   ;;  %s650_s2 = inlined_call_operand.vmem [shape: f32[16,1], index: 2, kind: input, shape index: {}]   ;;  %s651_s3 = inlined_call_operand.vmem [shape: bf16[2,16,256], index: 3, kind: output, shape index: {}]  }
   0x1   :  { %s606_s14 = smov 0  }
   0x2 LB: > { %s25_s15 = sadd.s32 1, %s575_s13  ;;  %p471_p0 = scmp.ge.s32.totalorder %s579_s14, 1  ;;  %s579_s14 = sphi %s606_s14, %s13_s14   ;;  %s575_s13 = sphi %s604_s13, %s653_s13   ;;  %s571_s12 = sphi %s602_s12, %s652_s12  }
   0x3   : > { %p27_p1 = scmp.ge.s32.totalorder %s25_s15, 2  ;;  %p158_p2 = scmp.lt.s32.totalorder %s579_s14, 3 }
   0x5   : > { %s655_s15 = smov (%p27_p1, %s25_s15), 0  ;;  %p159_p3 = pnand %p471_p0, %p158_p2 }
   0x6   : > { %p191_p4 = scmp.lt.s32.totalorder (!%p159_p3), %s571_s12, 1 }
   0x7   : > { %162 = sbr.rel (%p159_p3) target bundleno = 277 (0x115), region = 32 }
   0xc   : > { %v581_v0 = vmov 0   ;;  %v222_v1 = vld [vmem:[%s650_s2] sm:$0xff]  ;;  %s657_s12 = smov (!%p191_p4, %s571_s12), 1  ;;  %v223_v2 = vld [vmem:[%s650_s2 + $0x8] sm:$0xff]  ;;  %vm288_vm0 = vcmask 1043456   ;;  %vm284_vm1 = vcmask 588800  }
   0xd   : > { %327 = vmatprep.mubr.bf16.mxu0 %v581_v0  ;;  %525 = vset.pattern.permute.xlu0 %v581_v0  ;;  %s499_s20 = smul.u32 72, %s657_s12  ;;  %v540_v15 = vld [vmem:[%s649_s1] sm:$0xff]   ;;  %s496_s26 = sshll.u32 %s657_s12, 4 }
   0xe   : > { %226 = vperm.xlu0 %525, %v222_v1   ;;  %s208_s29 = scalar_lea.vmem %s651_s3, %s496_s26 }
   0xf   : > { %s198_s23 = scalar_lea.vmem %s648_s0, %s499_s20 }
  0x10   : > { %v221_v3 = vld [vmem:[%s198_s23 + $0x40] sm:$0xff]  ;;  %v528_v6 = vld [vmem:[%s198_s23 + $0x34] ss:$8 sps:$4 sm:$0xff]   ;;  %v530_v8 = vld [vmem:[%s198_s23 + $0x30] ss:$8 sps:$4 sm:$0xff]  }
  0x11   : > { %v485_v4 = vcombine.high %v221_v3, %v221_v3  ;;  %v484_v5 = vcombine.low %v221_v3, %v221_v3  ;;  %v531_v9 = vld [vmem:[%s198_s23 + $0x24] ss:$8 sps:$4 sm:$0xff]   ;;  %v533_v10 = vld [vmem:[%s198_s23 + $0x20] ss:$8 sps:$4 sm:$0xff]   ;;  %v534_v11 = vld [vmem:[%s198_s23 + $0x14] ss:$8 sps:$4 sm:$0xff]  }
  0x12   : > { %231 = vperm.xlu0 %525, %v223_v2   ;;  %v536_v12 = vld [vmem:[%s198_s23 + $0x10] ss:$8 sps:$4 sm:$0xff]   ;;  %v537_v13 = vld [vmem:[%s198_s23 + $0x4] ss:$8 sps:$4 sm:$0xff]   ;;  %v539_v14 = vld [vmem:[%s198_s23] ss:$8 sps:$4 sm:$0xff]  }
  0x13   : > { %486 = vmatprep.subr.msk.bf16.mxu0 %vm288_vm0, %v485_v4  ;;  %v290_v7 = vsel %vm288_vm0, %v484_v5, 0 }
  0x14   : > { %302 = vmatpush1.bf16.msra.mxu0 %v290_v7 }
  0x15   : > { %303 = vmatprep.subr.bf16.mxu0 %v528_v6 }
  0x18   : > { %304 = vmatpush1.bf16.msra.mxu0 %v530_v8 }
  0x19   : > { %305 = vmatprep.subr.bf16.mxu0 %v531_v9 }
  0x1c   : > { %306 = vmatpush1.bf16.msra.mxu0 %v533_v10 }
  0x1d   : > { %307 = vmatprep.subr.bf16.mxu0 %v534_v11 }
  0x20   : > { %308 = vmatpush1.bf16.msra.mxu0 %v536_v12 }
  0x21   : > { %309 = vmatprep.subr.bf16.mxu0 %v537_v13 }
  0x24   : > { %310 = vmatpush1.bf16.msra.mxu0 %v539_v14 }
  0x27   : > { %487 = vmatmul.mubr.msk.bf16.vlgmr.msra.gmra.mxu0 %vm284_vm1, %v540_v15 }
  0x89   : > { %v227_v16 = vpop.permute.xlu0 %226 }
  0x8d   : > { %v232_v22 = vpop.permute.xlu0 %231 }
  0xe7   : > { %v329_v17 = vpop.f32.mrf.mxu0 }
  0xe8   : > { %v330_v18 = vadd.f32 %v329_v17, %v227_v16 }
  0xe9   : > { %v331_v19 = vpop.f32.mrf.mxu0 }
  0xea   : > { %v488_v20 = vmul.f32 -1.442695, %v330_v18  ;;  %v332_v21 = vadd.f32 %v331_v19, %v227_v16 }
  0xeb   : > { %v333_v23 = vpop.f32.mrf.mxu0 }
  0xec   : > { %541 = vpow2.f32 %v488_v20  ;;  %v489_v24 = vmul.f32 -1.442695, %v332_v21  ;;  %v334_v25 = vadd.f32 %v333_v23, %v232_v22 }
  0xed   : > { %v335_v26 = vpop.f32.mrf.mxu0 }
  0xee   : > { %543 = vpow2.f32 %v489_v24  ;;  %v490_v27 = vmul.f32 -1.442695, %v334_v25  ;;  %v336_v28 = vadd.f32 %v335_v26, %v232_v22 }
  0xf0   : > { %545 = vpow2.f32 %v490_v27  ;;  %v491_v29 = vmul.f32 -1.442695, %v336_v28 }
  0xf2   : > { %547 = vpow2.f32 %v491_v29 }
  0xf9   : > { %v542_v30 = vpop.eup %541 }
  0xfa   : > { %v350_v31 = vadd.f32 1.0, %v542_v30 }
  0xfb   : > { %v544_v32 = vpop.eup %543 }
  0xfc   : > { %549 = vrcp.f32 %v350_v31  ;;  %v351_v33 = vadd.f32 1.0, %v544_v32 }
  0xfd   : > { %v546_v34 = vpop.eup %545 }
  0xfe   : > { %551 = vrcp.f32 %v351_v33  ;;  %v352_v35 = vadd.f32 1.0, %v546_v34 }
  0xff   : > { %v548_v36 = vpop.eup %547 }
 0x100   : > { %553 = vrcp.f32 %v352_v35  ;;  %v353_v37 = vadd.f32 1.0, %v548_v36 }
 0x102   : > { %555 = vrcp.f32 %v353_v37 }
 0x109   : > { %v550_v38 = vpop.eup %549 }
 0x10a   : > { %v362_v40 = vmul.f32 %v550_v38, %v330_v18 }
 0x10b   : > { %v552_v39 = vpop.eup %551 }
 0x10c   : > { %v363_v41 = vmul.f32 %v552_v39, %v332_v21 }
 0x10d   : > { %v554_v42 = vpop.eup %553 }
 0x10e   : > { %v497_v43 = vpack.c.bf16 %v363_v41, %v362_v40  ;;  %v364_v45 = vmul.f32 %v554_v42, %v334_v25 }
 0x10f   : > { %v556_v44 = vpop.eup %555 }
 0x110   : > { %378 = vst [vmem:[%s208_s29] sm:$0xff] %v497_v43  ;;  %v365_v46 = vmul.f32 %v556_v44, %v336_v28 }
 0x112   : > { %v498_v47 = vpack.c.bf16 %v365_v46, %v364_v45 }
 0x114   : > { %379 = vst [vmem:[%s208_s29 + $0x8] sm:$0xff] %v498_v47 }
 0x115 PF: > { %s13_s14 = sadd.s32 1, %s579_s14   ;;  %s652_s12 = smov %s575_s13 }
 0x116   : > { %p10_p5 = scmp.ge.s32.totalorder %s13_s14, 4   ;;  %s653_s13 = smov %s655_s15 }
 0x118   :  { %12 = sbr.rel (!%p10_p5) target bundleno = 2 (0x2), region = 62 }

// kernel: _lambda_.10
= control target key start
LH: loop header
LB: loop body
LE: loop exit
PB: predicated region body
PF: predicated region fallthrough
CT: control target
= control target key end

     0   :  { %s669_s12 = smov 0   ;;  %s671_s13 = smov 0   ;;  %s741_s0 = inlined_call_operand.vmem [shape: bf16[2,144,64], index: 0, kind: input, shape index: {}]   ;;  %s742_s1 = inlined_call_operand.vmem [shape: bf16[32,144], index: 1, kind: input, shape index: {}]   ;;  %s743_s2 = inlined_call_operand.vmem [shape: f32[32,1], index: 2, kind: input, shape index: {}]   ;;  %s744_s3 = inlined_call_operand.vmem [shape: bf16[2,32,64], index: 3, kind: output, shape index: {}]  }
   0x1   :  { %s673_s14 = smov 0  }
   0x2 LB: > { %s25_s15 = sadd.s32 1, %s642_s13  ;;  %p513_p0 = scmp.ge.s32.totalorder %s646_s14, 1  ;;  %s646_s14 = sphi %s673_s14, %s13_s14   ;;  %s642_s13 = sphi %s671_s13, %s746_s13   ;;  %s638_s12 = sphi %s669_s12, %s745_s12  }
   0x3   : > { %p27_p1 = scmp.ge.s32.totalorder %s25_s15, 2  ;;  %p156_p2 = scmp.lt.s32.totalorder %s646_s14, 3 }
   0x5   : > { %s748_s15 = smov (%p27_p1, %s25_s15), 0  ;;  %p157_p3 = pnand %p513_p0, %p156_p2 }
   0x6   : > { %p186_p4 = scmp.lt.s32.totalorder (!%p157_p3), %s638_s12, 1 }
   0x7   : > { %160 = sbr.rel (%p157_p3) target bundleno = 289 (0x121), region = 32 }
   0xc   : > { %v648_v0 = vmov 0   ;;  %v604_v1 = vld [vmem:[%s742_s1 + $0x4] ss:$8 sps:$4 sm:$0xff]   ;;  %vm321_vm0 = vcmask 130048   ;;  %s750_s12 = smov (!%p186_p4, %s638_s12), 1  ;;  %v227_v3 = vld [vmem:[%s743_s2 + $0x10] sm:$0xff] }
   0xd   : > { %328 = vmatprep.subr.bf16.mxu0 %v648_v0  ;;  %547 = vmatprep.subr.bf16.mxu1 %v648_v0  ;;  %v607_v2 = vld [vmem:[%s742_s1 + $0x14] ss:$8 sps:$4 sm:$0xff]   ;;  %v225_v4 = vld [vmem:[%s743_s2] sm:$0xff]  ;;  %s565_s24 = smul.u32 72, %s750_s12  ;;  %v226_v6 = vld [vmem:[%s743_s2 + $0x8] sm:$0xff]  ;;  %s542_s9 = sshll.u32 %s750_s12, 4 }
   0xe   : > { %592 = vset.pattern.permute.xlu1 %v648_v0  ;;  %591 = vset.pattern.permute.xlu0 %v648_v0  ;;  %v228_v5 = vld [vmem:[%s743_s2 + $0x18] sm:$0xff]  ;;  %v602_v16 = vld [vmem:[%s742_s1] ss:$8 sps:$4 sm:$0xff]   ;;  %s201_s16 = scalar_lea.vmem %s744_s3, %s542_s9  ;;  %vm421_vm1 = vcmask 519168  }
   0xf   : > { %530 = vmatprep.mubr.msk.bf16.mxu0 %vm321_vm0, %v604_v1  ;;  %241 = vperm.xlu1 %592, %v227_v3   ;;  %s711_s4 = scalar_lea.vmem %s741_s0, %s565_s24  ;;  %v605_v17 = vld [vmem:[%s742_s1 + $0x10] ss:$8 sps:$4 sm:$0xff]  }
  0x10   : > { %531 = vmatprep.mubr.msk.bf16.mxu1 %vm321_vm0, %v607_v2  ;;  %231 = vperm.xlu0 %591, %v225_v4   ;;  %v593_v7 = vld [vmem:[%s711_s4 + $0x38] sm:$0xff]   ;;  %v594_v8 = vld [vmem:[%s711_s4 + $0x30] sm:$0xff]   ;;  %v595_v9 = vld [vmem:[%s711_s4 + $0x28] sm:$0xff]  }
  0x11   : > { %329 = vmatpush1.bf16.msra.mxu0 %v593_v7  ;;  %556 = vmatpush1.bf16.msra.mxu1 %v593_v7  ;;  %v596_v10 = vld [vmem:[%s711_s4 + $0x20] sm:$0xff]   ;;  %v597_v11 = vld [vmem:[%s711_s4 + $0x18] sm:$0xff]   ;;  %v598_v12 = vld [vmem:[%s711_s4 + $0x10] sm:$0xff]  }
  0x12   : > { %330 = vmatprep.subr.bf16.mxu0 %v648_v0  ;;  %548 = vmatprep.subr.bf16.mxu1 %v648_v0  ;;  %v599_v13 = vld [vmem:[%s711_s4 + $0x8] sm:$0xff]   ;;  %v600_v14 = vld [vmem:[%s711_s4] sm:$0xff]  }
  0x13   : > { %246 = vperm.xlu1 %592, %v228_v5   ;;  %v601_v15 = vld [vmem:[%s711_s4 + $0x40] sm:$0xff]  }
  0x14   : > { %236 = vperm.xlu0 %591, %v226_v6  }
  0x15   : > { %331 = vmatpush1.bf16.msra.mxu0 %v594_v8  ;;  %557 = vmatpush1.bf16.msra.mxu1 %v594_v8 }
  0x16   : > { %332 = vmatprep.subr.bf16.mxu0 %v648_v0  ;;  %549 = vmatprep.subr.bf16.mxu1 %v648_v0 }
  0x19   : > { %333 = vmatpush1.bf16.msra.mxu0 %v595_v9  ;;  %558 = vmatpush1.bf16.msra.mxu1 %v595_v9 }
  0x1a   : > { %334 = vmatprep.subr.bf16.mxu0 %v648_v0  ;;  %550 = vmatprep.subr.bf16.mxu1 %v648_v0 }
  0x1d   : > { %335 = vmatpush1.bf16.msra.mxu0 %v596_v10  ;;  %559 = vmatpush1.bf16.msra.mxu1 %v596_v10 }
  0x1e   : > { %336 = vmatprep.subr.bf16.mxu0 %v648_v0  ;;  %551 = vmatprep.subr.bf16.mxu1 %v648_v0 }
  0x21   : > { %337 = vmatpush1.bf16.msra.mxu0 %v597_v11  ;;  %560 = vmatpush1.bf16.msra.mxu1 %v597_v11 }
  0x22   : > { %338 = vmatprep.subr.bf16.mxu0 %v648_v0  ;;  %552 = vmatprep.subr.bf16.mxu1 %v648_v0 }
  0x25   : > { %339 = vmatpush1.bf16.msra.mxu0 %v598_v12  ;;  %561 = vmatpush1.bf16.msra.mxu1 %v598_v12 }
  0x26   : > { %340 = vmatprep.subr.bf16.mxu0 %v648_v0  ;;  %553 = vmatprep.subr.bf16.mxu1 %v648_v0 }
  0x29   : > { %341 = vmatpush1.bf16.msra.mxu0 %v599_v13  ;;  %562 = vmatpush1.bf16.msra.mxu1 %v599_v13 }
  0x2a   : > { %342 = vmatprep.subr.bf16.mxu0 %v648_v0  ;;  %554 = vmatprep.subr.bf16.mxu1 %v648_v0 }
  0x2d   : > { %343 = vmatpush1.bf16.msra.mxu0 %v600_v14  ;;  %563 = vmatpush1.bf16.msra.mxu1 %v600_v14 }
  0x2e   : > { %358 = vmatprep.subr.bf16.mxu0 %v648_v0  ;;  %555 = vmatprep.subr.bf16.mxu1 %v648_v0 }
  0x31   : > { %359 = vmatpush2.bf16.msra.mxu0 %v601_v15  ;;  %564 = vmatpush2.bf16.msra.mxu1 %v601_v15 }
  0x34   : > { %361 = vmatmul.mubr.bf16.vlgmr.msra.gmra.mxu0 %v602_v16  ;;  %369 = vmatmul.mubr.bf16.vlgmr.msra.gmra.mxu1 %v605_v17 }
  0x8a   : > { %v242_v18 = vpop.permute.xlu1 %241 }
  0x8b   : > { %v232_v19 = vpop.permute.xlu0 %231 }
  0x8e   : > { %v247_v26 = vpop.permute.xlu1 %246 }
  0x8f   : > { %v237_v27 = vpop.permute.xlu0 %236 }
  0xf4   : > { %v362_v20 = vpop.f32.mrf.mxu0  ;;  %v370_v21 = vpop.f32.mrf.mxu1 }
  0xf5   : > { %v363_v22 = vadd.f32 %v362_v20, %v232_v19  ;;  %v371_v23 = vadd.f32 %v370_v21, %v242_v18 }
  0xf6   : > { %v364_v24 = vpop.f32.mrf.mxu0  ;;  %v372_v25 = vpop.f32.mrf.mxu1 }
  0xf7   : > { %v532_v28 = vmul.f32 -1.442695, %v363_v22  ;;  %v534_v29 = vmul.f32 -1.442695, %v371_v23 }
  0xf8   : > { %v365_v30 = vpop.f32.mrf.mxu0  ;;  %v373_v31 = vpop.f32.mrf.mxu1 }
  0xf9   : > { %608 = vpow2.f32 %v532_v28  ;;  %v366_v32 = vadd.f32 %v365_v30, %v237_v27  ;;  %v374_v33 = vadd.f32 %v373_v31, %v247_v26 }
  0xfa   : > { %610 = vpow2.f32 %v534_v29  ;;  %v367_v34 = vpop.f32.mrf.mxu0  ;;  %v375_v35 = vpop.f32.mrf.mxu1 }
  0xfb   : > { %v533_v36 = vmul.f32 -1.442695, %v366_v32  ;;  %v535_v37 = vmul.f32 -1.442695, %v374_v33 }
  0xfd   : > { %612 = vpow2.f32 %v533_v36 }
  0xfe   : > { %614 = vpow2.f32 %v535_v37 }
 0x106   : > { %v609_v38 = vpop.eup %608 }
 0x107   : > { %v611_v39 = vpop.eup %610  ;;  %v389_v40 = vadd.f32 1.0, %v609_v38 }
 0x108   : > { %v391_v41 = vadd.f32 1.0, %v611_v39 }
 0x109   : > { %616 = vrcp.f32 %v389_v40 }
 0x10a   : > { %v613_v42 = vpop.eup %612  ;;  %618 = vrcp.f32 %v391_v41 }
 0x10b   : > { %v615_v43 = vpop.eup %614  ;;  %v390_v44 = vadd.f32 1.0, %v613_v42 }
 0x10c   : > { %v392_v45 = vadd.f32 1.0, %v615_v43 }
 0x10d   : > { %620 = vrcp.f32 %v390_v44 }
 0x10e   : > { %622 = vrcp.f32 %v392_v45 }
 0x116   : > { %v617_v46 = vpop.eup %616 }
 0x117   : > { %v619_v47 = vpop.eup %618  ;;  %v401_v48 = vmul.f32 %v617_v46, %v363_v22 }
 0x118   : > { %v403_v49 = vmul.f32 %v619_v47, %v371_v23 }
 0x119   : > { %v543_v50 = vpack.c.bf16 %v401_v48, %v401_v48 }
 0x11a   : > { %v621_v51 = vpop.eup %620  ;;  %v545_v52 = vpack.c.bf16 %v403_v49, %v403_v49 }
 0x11b   : > { %v623_v53 = vpop.eup %622  ;;  %422 = vst.msk [vmem:[%s201_s16] sm:$0xf] %vm421_vm1, %v543_v50  ;;  %v402_v54 = vmul.f32 %v621_v51, %v366_v32 }
 0x11c   : > { %424 = vst.msk [vmem:[%s201_s16 + $0x8] sm:$0xf] %vm421_vm1, %v545_v52  ;;  %v404_v55 = vmul.f32 %v623_v53, %v374_v33 }
 0x11d   : > { %v544_v56 = vpack.c.bf16 %v402_v54, %v402_v54 }
 0x11e   : > { %v546_v57 = vpack.c.bf16 %v404_v55, %v404_v55 }
 0x11f   : > { %423 = vst.msk [vmem:[%s201_s16 + $0x4] sm:$0xf] %vm421_vm1, %v544_v56 }
 0x120   : > { %425 = vst.msk [vmem:[%s201_s16 + $0xc] sm:$0xf] %vm421_vm1, %v546_v57 }
 0x121 PF: > { %s13_s14 = sadd.s32 1, %s646_s14   ;;  %s745_s12 = smov %s642_s13 }
 0x122   : > { %p10_p5 = scmp.ge.s32.totalorder %s13_s14, 4   ;;  %s746_s13 = smov %s748_s15 }
 0x124   :  { %12 = sbr.rel (!%p10_p5) target bundleno = 2 (0x2), region = 62 }

// kernel: _lambda_.11
= control target key start
LH: loop header
LB: loop body
LE: loop exit
PB: predicated region body
PF: predicated region fallthrough
CT: control target
= control target key end

     0   :  { %s1076_s12 = smov 0   ;;  %s1078_s13 = smov 0   ;;  %s1235_s0 = inlined_call_operand.vmem [shape: bf16[2,288,32], index: 0, kind: input, shape index: {}]   ;;  %s1236_s1 = inlined_call_operand.vmem [shape: bf16[64,288], index: 1, kind: input, shape index: {}]   ;;  %s1237_s2 = inlined_call_operand.vmem [shape: f32[64,1], index: 2, kind: input, shape index: {}]   ;;  %s1238_s3 = inlined_call_operand.vmem [shape: bf16[2,64,32], index: 3, kind: output, shape index: {}]  }
   0x1   :  { %s1080_s14 = smov 0  }
   0x2 LB: > { %s25_s15 = sadd.s32 1, %s1049_s13  ;;  %p798_p0 = scmp.ge.s32.totalorder %s1053_s14, 1  ;;  %s1053_s14 = sphi %s1080_s14, %s13_s14   ;;  %s1049_s13 = sphi %s1078_s13, %s1240_s13   ;;  %s1045_s12 = sphi %s1076_s12, %s1239_s12  }
   0x3   : > { %p27_p1 = scmp.ge.s32.totalorder %s25_s15, 2  ;;  %p156_p2 = scmp.lt.s32.totalorder %s1053_s14, 3 }
   0x5   : > { %s1242_s15 = smov (%p27_p1, %s25_s15), 0  ;;  %p157_p3 = pnand %p798_p0, %p156_p2 }
   0x6   : > { %p186_p4 = scmp.lt.s32.totalorder (!%p157_p3), %s1045_s12, 1 }
   0x7   : > { %160 = sbr.rel (%p157_p3) target bundleno = 308 (0x134), region = 32 }
   0xc   : > { %v983_v0 = vld [vmem:[%s1236_s1 + $0x4] ss:$12 sps:$4 sm:$0xff]   ;;  %s1244_s12 = smov (!%p186_p4, %s1045_s12), 1  ;;  %v986_v1 = vld [vmem:[%s1236_s1 + $0x4c] ss:$12 sps:$4 sm:$0xff]   ;;  %v1055_v2 = vmov 0  }
   0xd   : > { %963 = vset.pattern.permute.xlu0 %v1055_v2  ;;  %964 = vset.pattern.permute.xlu1 %v1055_v2  ;;  %s937_s20 = smul.u32 144, %s1244_s12  ;;  %v255_v16 = vld [vmem:[%s1237_s2] sm:$0xff]  ;;  %v257_v17 = vld [vmem:[%s1237_s2 + $0x10] sm:$0xff]  ;;  %v256_v18 = vld [vmem:[%s1237_s2 + $0x8] sm:$0xff]  ;;  %vm471_vm0 = vcmask 261120   ;;  %s854_s10 = sshll.u32 %s1244_s12, 5 }
   0xe   : > { %516 = vmatprep.mubr.bf16.mxu0 %v983_v0  ;;  %540 = vmatprep.mubr.bf16.mxu1 %v986_v1  ;;  %v258_v19 = vld [vmem:[%s1237_s2 + $0x18] sm:$0xff]  ;;  %v259_v22 = vld [vmem:[%s1237_s2 + $0x20] sm:$0xff]  ;;  %v260_v23 = vld [vmem:[%s1237_s2 + $0x28] sm:$0xff]  ;;  %s1204_s17 = scalar_lea.vmem %s1238_s3, %s854_s10  ;;  %vm702_vm1 = vcmask 257024  }
   0xf   : > { %s1106_s23 = scalar_lea.vmem %s1235_s0, %s937_s20  ;;  %265 = vperm.xlu0 %963, %v255_v16   ;;  %275 = vperm.xlu1 %964, %v257_v17   ;;  %v981_v26 = vld [vmem:[%s1236_s1] ss:$12 sps:$4 sm:$0xff]   ;;  %v984_v27 = vld [vmem:[%s1236_s1 + $0x48] ss:$12 sps:$4 sm:$0xff]   ;;  %v262_v29 = vld [vmem:[%s1237_s2 + $0x38] sm:$0xff] }
  0x10   : > { %v965_v3 = vld [vmem:[%s1106_s23 + $0x78] sm:$0xff]   ;;  %v967_v5 = vld [vmem:[%s1106_s23 + $0x70] sm:$0xff]   ;;  %v969_v7 = vld [vmem:[%s1106_s23 + $0x68] sm:$0xff]  }
  0x11   : > { %v966_v4 = vld [vmem:[%s1106_s23 + $0x38] sm:$0xff]   ;;  %863 = vmatprep.subr.bf16.mxu0 %v965_v3  ;;  %921 = vmatprep.subr.bf16.mxu1 %v965_v3  ;;  %v968_v6 = vld [vmem:[%s1106_s23 + $0x30] sm:$0xff]   ;;  %v970_v8 = vld [vmem:[%s1106_s23 + $0x28] sm:$0xff]  }
  0x12   : > { %864 = vmatpush3.bf16.msra.mxu0 %v966_v4  ;;  %929 = vmatpush3.bf16.msra.mxu1 %v966_v4  ;;  %v971_v9 = vld [vmem:[%s1106_s23 + $0x60] sm:$0xff]   ;;  %v973_v11 = vld [vmem:[%s1106_s23 + $0x58] sm:$0xff]   ;;  %v975_v13 = vld [vmem:[%s1106_s23 + $0x50] sm:$0xff]  }
  0x13   : > { %865 = vmatprep.subr.bf16.mxu0 %v967_v5  ;;  %922 = vmatprep.subr.bf16.mxu1 %v967_v5  ;;  %v972_v10 = vld [vmem:[%s1106_s23 + $0x20] sm:$0xff]   ;;  %v974_v12 = vld [vmem:[%s1106_s23 + $0x18] sm:$0xff]   ;;  %v976_v14 = vld [vmem:[%s1106_s23 + $0x10] sm:$0xff]  }
  0x14   : > { %v977_v15 = vld [vmem:[%s1106_s23 + $0x48] sm:$0xff]   ;;  %v979_v21 = vld [vmem:[%s1106_s23 + $0x40] sm:$0xff]   ;;  %270 = vperm.xlu0 %963, %v256_v18   ;;  %280 = vperm.xlu1 %964, %v258_v19   ;;  %v261_v28 = vld [vmem:[%s1237_s2 + $0x30] sm:$0xff] }
  0x15   : > { %v978_v20 = vld [vmem:[%s1106_s23 + $0x8] sm:$0xff]   ;;  %v980_v24 = vld [vmem:[%s1106_s23] sm:$0xff]   ;;  %v997_v37 = vld [vmem:[%s1236_s1 + $0x30] ss:$12 sps:$4 sm:$0xff]  }
  0x16   : > { %866 = vmatpush3.bf16.msra.mxu0 %v968_v6  ;;  %930 = vmatpush3.bf16.msra.mxu1 %v968_v6  ;;  %v987_v25 = vld [vmem:[%s1106_s23 + $0x88] sm:$0xff]   ;;  %v988_v31 = vld [vmem:[%s1106_s23 + $0x80] sm:$0xff]   ;;  %v998_v38 = vld [vmem:[%s1236_s1 + $0x50] ss:$12 sps:$4 sm:$0xff]  }
  0x17   : > { %867 = vmatprep.subr.bf16.mxu0 %v969_v7  ;;  %923 = vmatprep.subr.bf16.mxu1 %v969_v7  ;;  %v989_v30 = vld [vmem:[%s1236_s1 + $0x1c] ss:$12 sps:$4 sm:$0xff]   ;;  %v992_v33 = vld [vmem:[%s1236_s1 + $0x18] ss:$12 sps:$4 sm:$0xff]   ;;  %v993_v34 = vld [vmem:[%s1236_s1 + $0x20] ss:$12 sps:$4 sm:$0xff]  }
  0x18   : > { %285 = vperm.xlu0 %963, %v259_v22   ;;  %290 = vperm.xlu1 %964, %v260_v23   ;;  %v991_v32 = vld [vmem:[%s1236_s1 + $0x8] ss:$12 sps:$4 sm:$0xff]   ;;  %v996_v36 = vld [vmem:[%s1236_s1 + $0x38] ss:$12 sps:$4 sm:$0xff]  }
  0x19   : > { %v994_v35 = vld [vmem:[%s1236_s1 + $0x34] ss:$12 sps:$4 sm:$0xff]  }
  0x1a   : > { %868 = vmatpush3.bf16.msra.mxu0 %v970_v8  ;;  %931 = vmatpush3.bf16.msra.mxu1 %v970_v8 }
  0x1b   : > { %869 = vmatprep.subr.bf16.mxu0 %v971_v9  ;;  %924 = vmatprep.subr.bf16.mxu1 %v971_v9 }
  0x1c   : > { %295 = vperm.xlu0 %963, %v261_v28   ;;  %300 = vperm.xlu1 %964, %v262_v29  }
  0x1e   : > { %870 = vmatpush3.bf16.msra.mxu0 %v972_v10  ;;  %932 = vmatpush3.bf16.msra.mxu1 %v972_v10 }
  0x1f   : > { %871 = vmatprep.subr.bf16.mxu0 %v973_v11  ;;  %925 = vmatprep.subr.bf16.mxu1 %v973_v11 }
  0x22   : > { %872 = vmatpush3.bf16.msra.mxu0 %v974_v12  ;;  %933 = vmatpush3.bf16.msra.mxu1 %v974_v12 }
  0x23   : > { %873 = vmatprep.subr.bf16.mxu0 %v975_v13  ;;  %926 = vmatprep.subr.bf16.mxu1 %v975_v13 }
  0x26   : > { %874 = vmatpush3.bf16.msra.mxu0 %v976_v14  ;;  %934 = vmatpush3.bf16.msra.mxu1 %v976_v14 }
  0x27   : > { %875 = vmatprep.subr.bf16.mxu0 %v977_v15  ;;  %927 = vmatprep.subr.bf16.mxu1 %v977_v15 }
  0x2a   : > { %876 = vmatpush3.bf16.msra.mxu0 %v978_v20  ;;  %935 = vmatpush3.bf16.msra.mxu1 %v978_v20 }
  0x2b   : > { %877 = vmatprep.subr.bf16.mxu0 %v979_v21  ;;  %928 = vmatprep.subr.bf16.mxu1 %v979_v21 }
  0x2e   : > { %878 = vmatpush3.bf16.msra.mxu0 %v980_v24  ;;  %936 = vmatpush3.bf16.msra.mxu1 %v980_v24 }
  0x2f   : > { %909 = vmatprep.subr.bf16.mxu1 %v987_v25 }
  0x31   : > { %517 = vmatmul.mubr.bf16.vlgmr.msra.gmra.mxu0 %v981_v26  ;;  %541 = vmatmul.mubr.bf16.vlgmr.msra.gmra.mxu1 %v984_v27 }
  0x32   : > { %910 = vmatpush3.bf16.msra.mxu1 %v987_v25  ;;  %524 = vmatprep.mubr.bf16.mxu0 %v989_v30 }
  0x33   : > { %911 = vmatprep.subr.bf16.mxu1 %v988_v31  ;;  %913 = vmatprep.mubr.msk.bf16.mxu1 %vm471_vm0, %v991_v32 }
  0x36   : > { %912 = vmatpush3.bf16.msra.mxu1 %v988_v31 }
  0x39   : > { %525 = vmatmul.mubr.bf16.gmra.mxu0 %v992_v33  ;;  %914 = vmatmul.mubr.msk.bf16.vlgmr.msra.gmra.mxu1 %vm471_vm0, %v993_v34 }
  0x3a   : > { %532 = vmatprep.mubr.bf16.mxu0 %v994_v35  ;;  %917 = vmatprep.mubr.msk.bf16.mxu1 %vm471_vm0, %v996_v36 }
  0x41   : > { %533 = vmatmul.mubr.bf16.gmra.mxu0 %v997_v37  ;;  %918 = vmatmul.mubr.msk.bf16.gmra.mxu1 %vm471_vm0, %v998_v38 }
  0x8a   : > { %v266_v39 = vpop.permute.xlu0 %265  ;;  %v276_v40 = vpop.permute.xlu1 %275 }
  0x8f   : > { %v271_v41 = vpop.permute.xlu0 %270  ;;  %v281_v46 = vpop.permute.xlu1 %280 }
  0x93   : > { %v286_v49 = vpop.permute.xlu0 %285  ;;  %v291_v55 = vpop.permute.xlu1 %290 }
  0x97   : > { %v296_v61 = vpop.permute.xlu0 %295  ;;  %v301_v9 = vpop.permute.xlu1 %300 }
  0xf1   : > { %v879_v42 = vpop.f32.mrf.mxu0  ;;  %v897_v43 = vpop.f32.mrf.mxu1 }
  0xf3   : > { %v880_v44 = vpop.f32.mrf.mxu0  ;;  %v898_v45 = vpop.f32.mrf.mxu1 }
  0xf4   : > { %v881_v50 = vadd.f32 %v880_v44, %v879_v42  ;;  %v899_v58 = vadd.f32 %v898_v45, %v897_v43 }
  0xf5   : > { %v882_v47 = vpop.f32.mrf.mxu0  ;;  %v900_v48 = vpop.f32.mrf.mxu1 }
  0xf6   : > { %v519_v57 = vadd.f32 %v881_v50, %v266_v39  ;;  %v543_v5 = vadd.f32 %v899_v58, %v296_v61 }
  0xf7   : > { %v883_v51 = vpop.f32.mrf.mxu0  ;;  %v901_v52 = vpop.f32.mrf.mxu1 }
  0xf8   : > { %v884_v56 = vadd.f32 %v883_v51, %v882_v47  ;;  %v902_v6 = vadd.f32 %v901_v52, %v900_v48 }
  0xf9   : > { %v885_v53 = vpop.f32.mrf.mxu0  ;;  %v915_v54 = vpop.f32.mrf.mxu1 }
  0xfa   : > { %v522_v4 = vadd.f32 %v884_v56, %v271_v41  ;;  %v546_v19 = vadd.f32 %v902_v6, %v301_v9 }
  0xfb   : > { %v886_v59 = vpop.f32.mrf.mxu0  ;;  %v583_v60 = vpop.f32.mrf.mxu1 }
  0xfc   : > { %v887_v62 = vadd.f32 %v886_v59, %v885_v53  ;;  %v1184_v63 = vadd.f32 %v583_v60, %v519_v57 }
  0xfd   : > { %v888_v0 = vpop.f32.mrf.mxu0  ;;  %v916_v1 = vpop.f32.mrf.mxu1 }
  0xfe   : > { %v527_v2 = vadd.f32 %v887_v62, %v276_v40  ;;  %v836_v3 = vmul.f32 -1.442695, %v1184_v63 }
  0xff   : > { %v889_v7 = vpop.f32.mrf.mxu0  ;;  %v586_v8 = vpop.f32.mrf.mxu1 }
 0x100   : > { %v1187_v10 = vadd.f32 %v915_v54, %v527_v2  ;;  %999 = vpow2.f32 %v836_v3  ;;  %v890_v11 = vadd.f32 %v889_v7, %v888_v0  ;;  %v1189_v12 = vadd.f32 %v586_v8, %v522_v4 }
 0x101   : > { %v891_v13 = vpop.f32.mrf.mxu0  ;;  %v919_v14 = vpop.f32.mrf.mxu1 }
 0x102   : > { %v838_v15 = vmul.f32 -1.442695, %v1187_v10  ;;  %v530_v16 = vadd.f32 %v890_v11, %v281_v46  ;;  %v837_v17 = vmul.f32 -1.442695, %v1189_v12  ;;  %v1193_v18 = vadd.f32 %v919_v14, %v543_v5 }
 0x103   : > { %v892_v20 = vpop.f32.mrf.mxu0  ;;  %v599_v21 = vpop.f32.mrf.mxu1 }
 0x104   : > { %1001 = vpow2.f32 %v838_v15  ;;  %v1195_v22 = vadd.f32 %v916_v1, %v530_v16  ;;  %v842_v23 = vmul.f32 -1.442695, %v1193_v18  ;;  %v893_v24 = vadd.f32 %v892_v20, %v891_v13 }
 0x105   : > { %1003 = vpow2.f32 %v837_v17  ;;  %v894_v25 = vpop.f32.mrf.mxu0  ;;  %v920_v26 = vpop.f32.mrf.mxu1 }
 0x106   : > { %v839_v27 = vmul.f32 -1.442695, %v1195_v22  ;;  %1005 = vpow2.f32 %v842_v23  ;;  %v535_v28 = vadd.f32 %v893_v24, %v286_v49  ;;  %v611_v29 = vadd.f32 %v920_v26, %v546_v19 }
 0x107   : > { %v895_v30 = vpop.f32.mrf.mxu0  ;;  %v602_v36 = vpop.f32.mrf.mxu1 }
 0x108   : > { %1007 = vpow2.f32 %v839_v27  ;;  %v600_v31 = vadd.f32 %v599_v21, %v535_v28  ;;  %v843_v32 = vmul.f32 -1.442695, %v611_v29  ;;  %v896_v33 = vadd.f32 %v895_v30, %v894_v25 }
 0x10a   : > { %v840_v34 = vmul.f32 -1.442695, %v600_v31  ;;  %1009 = vpow2.f32 %v843_v32  ;;  %v538_v35 = vadd.f32 %v896_v33, %v291_v55 }
 0x10c   : > { %1011 = vpow2.f32 %v840_v34  ;;  %v603_v37 = vadd.f32 %v602_v36, %v538_v35 }
 0x10d   : > { %v1000_v38 = vpop.eup %999 }
 0x10e   : > { %v638_v39 = vadd.f32 1.0, %v1000_v38  ;;  %v841_v40 = vmul.f32 -1.442695, %v603_v37 }
 0x110   : > { %1013 = vrcp.f32 %v638_v39 }
 0x111   : > { %v1002_v41 = vpop.eup %1001  ;;  %1015 = vpow2.f32 %v841_v40 }
 0x112   : > { %v1004_v42 = vpop.eup %1003  ;;  %v640_v43 = vadd.f32 1.0, %v1002_v41 }
 0x113   : > { %v1006_v44 = vpop.eup %1005  ;;  %v639_v45 = vadd.f32 1.0, %v1004_v42 }
 0x114   : > { %1017 = vrcp.f32 %v640_v43  ;;  %v644_v46 = vadd.f32 1.0, %v1006_v44 }
 0x115   : > { %v1008_v47 = vpop.eup %1007  ;;  %1019 = vrcp.f32 %v639_v45 }
 0x116   : > { %v641_v48 = vadd.f32 1.0, %v1008_v47  ;;  %1021 = vrcp.f32 %v644_v46 }
 0x117   : > { %v1010_v49 = vpop.eup %1009 }
 0x118   : > { %1023 = vrcp.f32 %v641_v48  ;;  %v645_v50 = vadd.f32 1.0, %v1010_v49 }
 0x119   : > { %v1012_v51 = vpop.eup %1011 }
 0x11a   : > { %v642_v52 = vadd.f32 1.0, %v1012_v51  ;;  %1025 = vrcp.f32 %v645_v50 }
 0x11c   : > { %1027 = vrcp.f32 %v642_v52 }
 0x11d   : > { %v1014_v53 = vpop.eup %1013 }
 0x11e   : > { %v1016_v54 = vpop.eup %1015  ;;  %v662_v55 = vmul.f32 %v1014_v53, %v1184_v63 }
 0x11f   : > { %v643_v56 = vadd.f32 1.0, %v1016_v54 }
 0x120   : > { %v855_v57 = vpack.c.bf16 %v662_v55, %v662_v55 }
 0x121   : > { %v1018_v58 = vpop.eup %1017  ;;  %1029 = vrcp.f32 %v643_v56 }
 0x122   : > { %v1020_v59 = vpop.eup %1019  ;;  %v664_v60 = vmul.f32 %v1018_v58, %v1187_v10  ;;  %703 = vst.msk [vmem:[%s1204_s17] sm:$0xf] %vm702_vm1, %v855_v57 }
 0x123   : > { %v1022_v61 = vpop.eup %1021  ;;  %v663_v62 = vmul.f32 %v1020_v59, %v1189_v12 }
 0x124   : > { %v857_v63 = vpack.c.bf16 %v664_v60, %v664_v60  ;;  %v668_v0 = vmul.f32 %v1022_v61, %v1193_v18 }
 0x125   : > { %v1024_v1 = vpop.eup %1023  ;;  %v856_v2 = vpack.c.bf16 %v663_v62, %v663_v62 }
 0x126   : > { %705 = vst.msk [vmem:[%s1204_s17 + $0x8] sm:$0xf] %vm702_vm1, %v857_v63  ;;  %v665_v3 = vmul.f32 %v1024_v1, %v1195_v22  ;;  %v861_v4 = vpack.c.bf16 %v668_v0, %v668_v0 }
 0x127   : > { %v1026_v5 = vpop.eup %1025  ;;  %704 = vst.msk [vmem:[%s1204_s17 + $0x4] sm:$0xf] %vm702_vm1, %v856_v2 }
 0x128   : > { %v858_v6 = vpack.c.bf16 %v665_v3, %v665_v3  ;;  %709 = vst.msk [vmem:[%s1204_s17 + $0x18] sm:$0xf] %vm702_vm1, %v861_v4  ;;  %v669_v7 = vmul.f32 %v1026_v5, %v611_v29 }
 0x129   : > { %v1028_v8 = vpop.eup %1027 }
 0x12a   : > { %706 = vst.msk [vmem:[%s1204_s17 + $0xc] sm:$0xf] %vm702_vm1, %v858_v6  ;;  %v666_v9 = vmul.f32 %v1028_v8, %v600_v31  ;;  %v862_v10 = vpack.c.bf16 %v669_v7, %v669_v7 }
 0x12c   : > { %v859_v11 = vpack.c.bf16 %v666_v9, %v666_v9  ;;  %710 = vst.msk [vmem:[%s1204_s17 + $0x1c] sm:$0xf] %vm702_vm1, %v862_v10 }
 0x12e   : > { %v1030_v12 = vpop.eup %1029  ;;  %707 = vst.msk [vmem:[%s1204_s17 + $0x10] sm:$0xf] %vm702_vm1, %v859_v11 }
 0x12f   : > { %v667_v13 = vmul.f32 %v1030_v12, %v603_v37 }
 0x131   : > { %v860_v14 = vpack.c.bf16 %v667_v13, %v667_v13 }
 0x133   : > { %708 = vst.msk [vmem:[%s1204_s17 + $0x14] sm:$0xf] %vm702_vm1, %v860_v14 }
 0x134 PF: > { %s13_s14 = sadd.s32 1, %s1053_s14   ;;  %s1239_s12 = smov %s1049_s13 }
 0x135   : > { %p10_p5 = scmp.ge.s32.totalorder %s13_s14, 4   ;;  %s1240_s13 = smov %s1242_s15 }
 0x137   :  { %12 = sbr.rel (!%p10_p5) target bundleno = 2 (0x2), region = 62 }

// kernel: _lambda_.15
= control target key start
LH: loop header
LB: loop body
LE: loop exit
PB: predicated region body
PF: predicated region fallthrough
CT: control target
= control target key end

     0   :  { %v255_v0 = vmov 0.0   ;;  %vm256_vm0 = vmmov 0   ;;  %v131_v13 = vlaneseq  ;;  %v257_v37 = vmov 0   ;;  %s325_s1 = inlined_call_operand.vmem [shape: bf16[128,128], index: 1, kind: input, shape index: {}]   ;;  %s326_s0 = inlined_call_operand.vmem [shape: bf16[8,128], index: 0, kind: input, shape index: {}]   ;;  %s327_s2 = inlined_call_operand.vmem [shape: f32[1,128], index: 2, kind: input, shape index: {}]   ;;  %s328_s3 = inlined_call_operand.vmem [shape: f32[3,128], index: 3, kind: input, shape index: {}]   ;;  %s329_s4 = inlined_call_operand.vmem [shape: f32[8,128], index: 4, kind: output, shape index: {}]  }
   0x1   :  { %220 = vmatprep.subr.bf16.mxu0 %v255_v0  ;;  %v243_v1 = vld [vmem:[%s325_s1 + $0x38] sm:$0xff]   ;;  %236 = vmatprep.mubr.msk.bf16.mxu0 %vm256_vm0, %v255_v0  ;;  %v244_v2 = vld [vmem:[%s325_s1 + $0x30] sm:$0xff]   ;;  %v245_v3 = vld [vmem:[%s325_s1 + $0x28] sm:$0xff]  }
   0x2   :  { %221 = vmatpush3.bf16.msra.mxu0 %v243_v1  ;;  %v246_v4 = vld [vmem:[%s325_s1 + $0x20] sm:$0xff]   ;;  %v247_v5 = vld [vmem:[%s325_s1 + $0x18] sm:$0xff]   ;;  %v248_v6 = vld [vmem:[%s325_s1 + $0x10] sm:$0xff]   ;;  %v132_v17 = vshrl.u32 %v131_v13, 7  ;;  %v190_v46 = vand.u32 127, %v131_v13 }
   0x3   :  { %222 = vmatprep.subr.bf16.mxu0 %v255_v0  ;;  %v249_v7 = vld [vmem:[%s325_s1 + $0x8] sm:$0xff]   ;;  %v250_v8 = vld [vmem:[%s325_s1] sm:$0xff]  }
   0x4   :  { %v18_v9 = vld [vmem:[%s326_s0] sm:$0xf]  ;;  %v135_v19 = vand.u32 1, %v132_v17  ;;  %v136_v20 = vand.u32 3, %v132_v17  ;;  %v149_v29 = vsub.s32 0, %v132_v17  ;;  %vm191_vm5 = vcmp.lt.s32.totalorder %v190_v46, 64 }
   0x5   :  { %v198_v10 = vld [vmem:[%s327_s2] ss:$0 sm:$0xff]  ;;  %v144_v23 = vld [vmem:[%s328_s3 + $0x1] sm:$0x1]  ;;  %v210_v45 = vld [vmem:[%s328_s3 + $0x2] ss:$0 sm:$0xff] }
   0x6   :  { %223 = vmatpush3.bf16.msra.mxu0 %v244_v2  ;;  %v139_v21 = vsub.s32 %v136_v20, %v135_v19  ;;  %v146_v26 = vsub.f32 1.0, %v144_v23  ;;  %v137_v27 = vcvt.s32.f32 %v135_v19  ;;  %v143_v32 = vld [vmem:[%s328_s3] sm:$0x1]  ;;  %v155_v34 = vrot.slane %v144_v23, %v149_v29 }
   0x7   :  { %224 = vmatprep.subr.bf16.mxu0 %v255_v0  ;;  %vm174_vm1 = vcmp.lt.f32.partialorder %v143_v32, 1.5  ;;  %vm173_vm2 = vcmp.lt.f32.partialorder %v143_v32, 0.5 }
   0x8   :  { %v140_v22 = vcvt.s32.f32 %v139_v21  ;;  %v207_v30 = vadd.f32 -0.5, %v137_v27  ;;  %v150_v33 = vrot.slane %v146_v26, %v149_v29  ;;  %v175_v38 = vsel %vm174_vm1, 1, %v257_v37 }
   0x9   :  { %v182_v39 = vsel %vm173_vm2, 1, %v257_v37  ;;  %v179_v42 = vrot.slane %v175_v38, %v149_v29 }
   0xa   :  { %225 = vmatpush3.bf16.msra.mxu0 %v245_v3  ;;  %v141_v28 = vmul.f32 0.5, %v140_v22  ;;  %v151_v35 = vmul.f32 %v207_v30, %v150_v33  ;;  %v186_v44 = vrot.slane %v182_v39, %v149_v29 }
   0xb   :  { %226 = vmatprep.subr.bf16.mxu0 %v255_v0  ;;  %vm180_vm3 = vcmp.eq.s32.totalorder %v179_v42, 1 }
   0xc   :  { %v208_v31 = vadd.f32 -0.5, %v141_v28  ;;  %vm187_vm4 = vcmp.eq.s32.totalorder %v186_v44, 1 }
   0xe   :  { %227 = vmatpush3.bf16.msra.mxu0 %v246_v4  ;;  %v156_v36 = vmul.f32 %v208_v31, %v155_v34 }
   0xf   :  { %228 = vmatprep.subr.bf16.mxu0 %v255_v0 }
  0x10   :  { %v157_v40 = vadd.f32 %v156_v36, %v151_v35 }
  0x12   :  { %229 = vmatpush3.bf16.msra.mxu0 %v247_v5 }
  0x13   :  { %230 = vmatprep.subr.bf16.mxu0 %v255_v0 }
  0x16   :  { %231 = vmatpush3.bf16.msra.mxu0 %v248_v6 }
  0x17   :  { %232 = vmatprep.subr.bf16.mxu0 %v255_v0 }
  0x1a   :  { %233 = vmatpush3.bf16.msra.mxu0 %v249_v7 }
  0x1b   :  { %234 = vmatprep.subr.bf16.mxu0 %v255_v0 }
  0x1e   :  { %235 = vmatpush3.bf16.msra.mxu0 %v250_v8 }
  0x21   :  { %237 = vmatmul.mubr.bf16.vlgmr.msra.gmra.mxu0 %v18_v9 }
  0xe1   :  { %v124_v11 = vpop.f32.mrf.mxu0 }
  0xe2   :  { %v125_v12 = vadd.f32 %v198_v10, %v124_v11 }
  0xe3   :  { %v238_v14 = vpop.f32.mrf.mxu0 }
  0xe4   :  { %v209_v15 = vmul.f32 -1.442695, %v125_v12 }
  0xe5   :  { %v127_v16 = vpop.f32.mrf.mxu0 }
  0xe6   :  { %251 = vpow2.f32 %v209_v15 }
  0xe7   :  { %v239_v18 = vpop.f32.mrf.mxu0 }
  0xf3   :  { %v252_v24 = vpop.eup %251 }
  0xf4   :  { %v161_v25 = vadd.f32 1.0, %v252_v24 }
  0xf6   :  { %253 = vrcp.f32 %v161_v25 }
 0x103   :  { %v254_v41 = vpop.eup %253 }
 0x104   :  { %v164_v43 = vmul.f32 2.0, %v254_v41 }
 0x106   :  { %v165_v47 = vadd.f32 %v164_v43, %v157_v40  ;;  %v167_v48 = vmul.f32 %v164_v43, %v164_v43 }
 0x108   :  { %v166_v49 = vmul.f32 32.0, %v165_v47  ;;  %v172_v50 = vmul.f32 %v210_v45, %v167_v48 }
 0x10a   :  { %v181_v51 = vsel %vm180_vm3, %v172_v50, %v254_v41 }
 0x10b   :  { %v188_v52 = vsel %vm187_vm4, %v166_v49, %v181_v51 }
 0x10c   :  { %v192_v53 = vsel %vm191_vm5, %v125_v12, %v188_v52 }
 0x10d   :  { %193 = vst [vmem:[%s329_s4] sm:$0xff] %v192_v53 }

// kernel: _lambda_.14
= control target key start
LH: loop header
LB: loop body
LE: loop exit
PB: predicated region body
PF: predicated region fallthrough
CT: control target
= control target key end

     0   :  { %vm71_vm0 = vcmask 523264   ;;  %v128_v6 = vlaneseq  ;;  %s456_s1 = inlined_call_operand.vmem [shape: bf16[64,128], index: 1, kind: input, shape index: {}]   ;;  %s457_s0 = inlined_call_operand.vmem [shape: bf16[32,64], index: 0, kind: input, shape index: {}]   ;;  %s458_s2 = inlined_call_operand.vmem [shape: f32[1,128], index: 2, kind: input, shape index: {}]   ;;  %s459_s3 = inlined_call_operand.vmem [shape: f32[3,128], index: 3, kind: input, shape index: {}]   ;;  %s460_s4 = inlined_call_operand.vmem [shape: f32[32,128], index: 4, kind: output, shape index: {}]  }
   0x1   :  { %v320_v0 = vld [vmem:[%s456_s1 + $0x18] sm:$0xff]   ;;  %v321_v1 = vld [vmem:[%s456_s1 + $0x10] sm:$0xff]   ;;  %v322_v2 = vld [vmem:[%s456_s1 + $0x8] sm:$0xff]  }
   0x2   :  { %307 = vmatprep.subr.bf16.mxu0 %v320_v0  ;;  %v324_v3 = vld [vmem:[%s457_s0] sm:$0xff]   ;;  %v325_v5 = vld [vmem:[%s457_s0 + $0x8] sm:$0xff]   ;;  %v129_v10 = vshrl.u32 %v128_v6, 7 }
   0x3   :  { %308 = vmatpush3.bf16.msra.mxu0 %v320_v0  ;;  %315 = vmatprep.mubr.msk.bf16.mxu0 %vm71_vm0, %v324_v3  ;;  %v323_v4 = vld [vmem:[%s456_s1] sm:$0xff]  }
   0x4   :  { %309 = vmatprep.subr.bf16.mxu0 %v321_v1  ;;  %v279_v7 = vld [vmem:[%s458_s2] ss:$0 sm:$0xff]  ;;  %v131_v15 = vadd.s32 16, %v129_v10  ;;  %v132_v24 = vadd.s32 24, %v129_v10  ;;  %v130_v25 = vadd.s32 8, %v129_v10  ;;  %v138_v26 = vand.u32 3, %v129_v10 }
   0x5   :  { %v142_v27 = vand.u32 15, %v129_v10  ;;  %v171_v35 = vld [vmem:[%s459_s3 + $0x1] sm:$0x1]  ;;  %v176_v44 = vsub.s32 0, %v129_v10  ;;  %v170_v55 = vld [vmem:[%s459_s3] sm:$0x1] }
   0x6   :  { %v140_v21 = vand.u32 3, %v131_v15  ;;  %v144_v22 = vand.u32 15, %v131_v15  ;;  %v141_v29 = vand.u32 3, %v132_v24  ;;  %v145_v30 = vand.u32 15, %v132_v24 }
   0x7   :  { %310 = vmatpush3.bf16.msra.mxu0 %v321_v1  ;;  %v139_v31 = vand.u32 3, %v130_v25  ;;  %v143_v32 = vand.u32 15, %v130_v25  ;;  %v154_v33 = vsub.s32 %v142_v27, %v138_v26  ;;  %v173_v43 = vsub.f32 1.0, %v171_v35 }
   0x8   :  { %311 = vmatprep.subr.bf16.mxu0 %v322_v2  ;;  %v156_v28 = vsub.s32 %v144_v22, %v140_v21  ;;  %v157_v37 = vsub.s32 %v145_v30, %v141_v29  ;;  %v148_v42 = vcvt.s32.f32 %v140_v21  ;;  %v146_v48 = vcvt.s32.f32 %v138_v26 }
   0x9   :  { %v155_v38 = vsub.s32 %v143_v32, %v139_v31  ;;  %v158_v40 = vcvt.s32.f32 %v154_v33  ;;  %v177_v56 = vrot.slane %v173_v43, %v176_v44  ;;  %v185_v57 = vrot.slane %v171_v35, %v176_v44 }
   0xa   :  { %v160_v34 = vcvt.s32.f32 %v156_v28  ;;  %v161_v49 = vcvt.s32.f32 %v157_v37  ;;  %v290_v54 = vadd.f32 -0.5, %v148_v42  ;;  %v149_v59 = vcvt.s32.f32 %v141_v29  ;;  %v300_v29 = vld [vmem:[%s459_s3 + $0x2] ss:$0 sm:$0xff] }
   0xb   :  { %312 = vmatpush3.bf16.msra.mxu0 %v322_v2  ;;  %v159_v50 = vcvt.s32.f32 %v155_v38  ;;  %v162_v51 = vmul.f32 0.25, %v158_v40  ;;  %v288_v61 = vadd.f32 -0.5, %v146_v48  ;;  %v147_v63 = vcvt.s32.f32 %v139_v31 }
   0xc   :  { %313 = vmatprep.subr.bf16.mxu0 %v323_v4  ;;  %v164_v45 = vmul.f32 0.25, %v160_v34  ;;  %v165_v62 = vmul.f32 0.25, %v161_v49  ;;  %vm243_vm1 = vcmp.lt.f32.partialorder %v170_v55, 1.5  ;;  %vm242_vm2 = vcmp.lt.f32.partialorder %v170_v55, 0.5 }
   0xd   :  { %v163_v0 = vmul.f32 0.25, %v159_v50  ;;  %v292_v1 = vadd.f32 -0.5, %v162_v51  ;;  %v180_v2 = vmul.f32 %v290_v54, %v177_v56  ;;  %v289_v10 = vadd.f32 -0.5, %v147_v63 }
   0xe   :  { %v294_v58 = vadd.f32 -0.5, %v164_v45  ;;  %v265_v30 = vand.u32 127, %v128_v6 }
   0xf   :  { %314 = vmatpush3.bf16.msra.mxu0 %v323_v4  ;;  %v291_v4 = vadd.f32 -0.5, %v149_v59  ;;  %v186_v15 = vmul.f32 %v292_v1, %v185_v57  ;;  %v179_v24 = vmul.f32 %v289_v10, %v177_v56 }
  0x10   :  { %v188_v3 = vmul.f32 %v294_v58, %v185_v57  ;;  %vm266_vm5 = vcmp.lt.s32.totalorder %v265_v30, 64 }
  0x12   :  { %316 = vmatmul.mubr.msk.bf16.vlgmr.msra.gmra.mxu0 %vm71_vm0, %v325_v5  ;;  %v342_v5 = vmov 0  }
  0xd2   :  { %v317_v8 = vpop.f32.mrf.mxu0 }
  0xd3   :  { %v389_v9 = vadd.f32 %v317_v8, %v279_v7  ;;  %v295_v8 = vadd.f32 -0.5, %v165_v62 }
  0xd4   :  { %v112_v11 = vpop.f32.mrf.mxu0 }
  0xd5   :  { %v298_v12 = vmul.f32 -1.442695, %v389_v9  ;;  %v393_v13 = vadd.f32 %v279_v7, %v112_v11  ;;  %v293_v11 = vadd.f32 -0.5, %v163_v0 }
  0xd6   :  { %v318_v14 = vpop.f32.mrf.mxu0 }
  0xd7   :  { %326 = vpow2.f32 %v298_v12  ;;  %v296_v16 = vmul.f32 -1.442695, %v393_v13  ;;  %v396_v17 = vadd.f32 %v318_v14, %v279_v7  ;;  %v254_v12 = vsel %vm242_vm2, 1, %v342_v5 }
  0xd8   :  { %v115_v18 = vpop.f32.mrf.mxu0  ;;  %v178_v14 = vmul.f32 %v288_v61, %v177_v56  ;;  %v258_v22 = vrot.slane %v254_v12, %v176_v44  ;;  %v187_v25 = vmul.f32 %v293_v11, %v185_v57 }
  0xd9   :  { %328 = vpow2.f32 %v296_v16  ;;  %v299_v19 = vmul.f32 -1.442695, %v396_v17  ;;  %v399_v20 = vadd.f32 %v279_v7, %v115_v18  ;;  %v244_v7 = vsel %vm243_vm1, 1, %v342_v5 }
  0xda   :  { %v192_v16 = vadd.f32 %v188_v3, %v180_v2  ;;  %v248_v18 = vrot.slane %v244_v7, %v176_v44  ;;  %v190_v27 = vadd.f32 %v186_v15, %v178_v14  ;;  %vm416_vm4 = vcmp.eq.s32.totalorder %v258_v22, 1 }
  0xdb   :  { %330 = vpow2.f32 %v299_v19  ;;  %v297_v23 = vmul.f32 -1.442695, %v399_v20  ;;  %v181_v19 = vmul.f32 %v291_v4, %v177_v56  ;;  %v191_v38 = vadd.f32 %v187_v25, %v179_v24 }
  0xdc   :  { %vm412_vm3 = vcmp.eq.s32.totalorder %v248_v18, 1 }
  0xdd   :  { %332 = vpow2.f32 %v297_v23  ;;  %v189_v23 = vmul.f32 %v295_v8, %v185_v57 }
  0xdf   :  { %v193_v37 = vadd.f32 %v189_v23, %v181_v19 }
  0xe4   :  { %v327_v36 = vpop.eup %326 }
  0xe5   :  { %v208_v39 = vadd.f32 1.0, %v327_v36 }
  0xe6   :  { %v329_v41 = vpop.eup %328 }
  0xe7   :  { %334 = vrcp.f32 %v208_v39  ;;  %v206_v46 = vadd.f32 1.0, %v329_v41 }
  0xe8   :  { %v331_v47 = vpop.eup %330 }
  0xe9   :  { %336 = vrcp.f32 %v206_v46  ;;  %v209_v52 = vadd.f32 1.0, %v331_v47 }
  0xea   :  { %v333_v53 = vpop.eup %332 }
  0xeb   :  { %338 = vrcp.f32 %v209_v52  ;;  %v207_v60 = vadd.f32 1.0, %v333_v53 }
  0xed   :  { %340 = vrcp.f32 %v207_v60 }
  0xf4   :  { %v335_v21 = vpop.eup %334 }
  0xf5   :  { %v220_v26 = vmul.f32 2.0, %v335_v21 }
  0xf6   :  { %v337_v28 = vpop.eup %336 }
  0xf7   :  { %v224_v31 = vadd.f32 %v220_v26, %v192_v16  ;;  %v232_v32 = vmul.f32 %v220_v26, %v220_v26  ;;  %v218_v33 = vmul.f32 2.0, %v337_v28 }
  0xf8   :  { %v339_v34 = vpop.eup %338 }
  0xf9   :  { %v228_v39 = vmul.f32 16.0, %v224_v31  ;;  %v240_v40 = vmul.f32 %v300_v29, %v232_v32  ;;  %v222_v41 = vadd.f32 %v218_v33, %v190_v27  ;;  %v230_v42 = vmul.f32 %v218_v33, %v218_v33 }
  0xfa   :  { %v341_v43 = vpop.eup %340  ;;  %v221_v6 = vmul.f32 2.0, %v339_v34 }
  0xfb   :  { %v252_v44 = vsel %vm412_vm3, %v240_v40, %v335_v21  ;;  %v226_v45 = vmul.f32 16.0, %v222_v41  ;;  %v238_v46 = vmul.f32 %v300_v29, %v230_v42  ;;  %v219_v47 = vmul.f32 2.0, %v341_v43 }
  0xfc   :  { %v262_v48 = vsel %vm416_vm4, %v228_v39, %v252_v44  ;;  %v225_v49 = vadd.f32 %v221_v6, %v193_v37  ;;  %v233_v50 = vmul.f32 %v221_v6, %v221_v6 }
  0xfd   :  { %v269_v51 = vsel %vm266_vm5, %v389_v9, %v262_v48  ;;  %v250_v52 = vsel %vm412_vm3, %v238_v46, %v337_v28  ;;  %v223_v53 = vadd.f32 %v219_v47, %v191_v38  ;;  %v231_v54 = vmul.f32 %v219_v47, %v219_v47 }
  0xfe   :  { %273 = vst [vmem:[%s460_s4 + $0x10] sm:$0xff] %v269_v51  ;;  %v260_v55 = vsel %vm416_vm4, %v226_v45, %v250_v52  ;;  %v229_v56 = vmul.f32 16.0, %v225_v49  ;;  %v241_v57 = vmul.f32 %v300_v29, %v233_v50 }
  0xff   :  { %v267_v58 = vsel %vm266_vm5, %v393_v13, %v260_v55  ;;  %v227_v59 = vmul.f32 16.0, %v223_v53  ;;  %v239_v60 = vmul.f32 %v300_v29, %v231_v54 }
 0x100   :  { %271 = vst [vmem:[%s460_s4] sm:$0xff] %v267_v58  ;;  %v253_v9 = vsel %vm412_vm3, %v241_v57, %v339_v34 }
 0x101   :  { %v263_v61 = vsel %vm416_vm4, %v229_v56, %v253_v9  ;;  %v251_v62 = vsel %vm412_vm3, %v239_v60, %v341_v43 }
 0x102   :  { %v270_v63 = vsel %vm266_vm5, %v396_v17, %v263_v61  ;;  %v261_v13 = vsel %vm416_vm4, %v227_v59, %v251_v62 }
 0x103   :  { %274 = vst [vmem:[%s460_s4 + $0x18] sm:$0xff] %v270_v63  ;;  %v268_v0 = vsel %vm266_vm5, %v399_v20, %v261_v13 }
 0x104   :  { %272 = vst [vmem:[%s460_s4 + $0x8] sm:$0xff] %v268_v0 }

// kernel: _lambda_.12
= control target key start
LH: loop header
LB: loop body
LE: loop exit
PB: predicated region body
PF: predicated region fallthrough
CT: control target
= control target key end

     0   :  { %s1971_s12 = smov 0   ;;  %s1973_s13 = smov 0   ;;  %s2425_s0 = inlined_call_operand.vmem [shape: bf16[2,576,16], index: 0, kind: input, shape index: {}]   ;;  %s2426_s1 = inlined_call_operand.vmem [shape: bf16[128,576], index: 1, kind: input, shape index: {}]   ;;  %s2427_s2 = inlined_call_operand.vmem [shape: f32[128,1], index: 2, kind: input, shape index: {}]   ;;  %s2428_s3 = inlined_call_operand.vmem [shape: bf16[2,128,16], index: 3, kind: output, shape index: {}]  }
   0x1   :  { %s1975_s14 = smov 0  }
   0x2 LB: > { %s25_s15 = sadd.s32 1, %s1944_s13  ;;  %p1431_p0 = scmp.ge.s32.totalorder %s1948_s14, 1  ;;  %s1948_s14 = sphi %s1975_s14, %s13_s14   ;;  %s1944_s13 = sphi %s1973_s13, %s2454_s13   ;;  %s1940_s12 = sphi %s1971_s12, %s2453_s12  }
   0x3   : > { %p27_p1 = scmp.ge.s32.totalorder %s25_s15, 2  ;;  %p156_p2 = scmp.lt.s32.totalorder %s1948_s14, 3 }
   0x5   : > { %s2456_s15 = smov (%p27_p1, %s25_s15), 0  ;;  %p157_p3 = pnand %p1431_p0, %p156_p2 }
   0x7   : > { %160 = sbr.rel (%p157_p3) target bundleno = 363 (0x16b), region = 32 }
   0xc   : > { %p186_p4 = scmp.lt.s32.totalorder %s1940_s12, 1  ;;  %v1804_v0 = vld [vmem:[%s2426_s1 + $0x4] ss:$20 sps:$4 sm:$0xff]   ;;  %v1807_v1 = vld [vmem:[%s2426_s1 + $0xc] ss:$20 sps:$4 sm:$0xff]   ;;  %v1950_v2 = vmov 0  }
   0xd   : > { %1768 = vset.pattern.permute.xlu0 %v1950_v2  ;;  %1769 = vset.pattern.permute.xlu1 %v1950_v2  ;;  %v1802_v33 = vld [vmem:[%s2426_s1] ss:$20 sps:$4 sm:$0xff]   ;;  %v1805_v35 = vld [vmem:[%s2426_s1 + $0x8] ss:$20 sps:$4 sm:$0xff]   ;;  %v1814_v42 = vld [vmem:[%s2426_s1 + $0x30] ss:$20 sps:$4 sm:$0xff]  }
   0xe   : > { %s2458_s12 = smov (!%p186_p4, %s1940_s12), 1  ;;  %892 = vmatprep.mubr.bf16.mxu0 %v1804_v0  ;;  %989 = vmatprep.mubr.bf16.mxu1 %v1807_v1  ;;  %v1809_v38 = vld [vmem:[%s2426_s1 + $0x2c] ss:$20 sps:$4 sm:$0xff]   ;;  %v1811_v39 = vld [vmem:[%s2426_s1 + $0x34] ss:$20 sps:$4 sm:$0xff]   ;;  %v326_v58 = vld [vmem:[%s2427_s2 + $0x18] sm:$0xff] }
   0xf   : > { %s1742_s20 = smul.u32 288, %s2458_s12  ;;  %v1813_v41 = vld [vmem:[%s2426_s1 + $0x28] ss:$20 sps:$4 sm:$0xff]   ;;  %v1819_v46 = vld [vmem:[%s2426_s1 + $0x50] ss:$20 sps:$4 sm:$0xff]   ;;  %vm835_vm0 = vcmask 523264  }
  0x10   : > { %v1815_v43 = vld [vmem:[%s2426_s1 + $0x54] ss:$20 sps:$4 sm:$0xff]   ;;  %v1817_v44 = vld [vmem:[%s2426_s1 + $0x5c] ss:$20 sps:$4 sm:$0xff]   ;;  %v1820_v47 = vld [vmem:[%s2426_s1 + $0x58] ss:$20 sps:$4 sm:$0xff]  }
  0x11   : > { %s2001_s23 = scalar_lea.vmem %s2425_s0, %s1742_s20  ;;  %v1822_v49 = vld [vmem:[%s2426_s1 + $0x7c] ss:$20 sps:$4 sm:$0xff]   ;;  %v1824_v50 = vld [vmem:[%s2426_s1 + $0x84] ss:$20 sps:$4 sm:$0xff]   ;;  %v1827_v52 = vld [vmem:[%s2426_s1 + $0x80] ss:$20 sps:$4 sm:$0xff]  }
  0x12   : > { %v1770_v3 = vld [vmem:[%s2001_s23 + $0x78] sm:$0xff]   ;;  %v1774_v7 = vld [vmem:[%s2001_s23 + $0x70] sm:$0xff]   ;;  %v1778_v11 = vld [vmem:[%s2001_s23 + $0x68] sm:$0xff]   ;;  %s1553_s17 = sshll.u32 %s2458_s12, 6  ;;  %vm1327_vm1 = vcmask 125952  }
  0x13   : > { %v1771_v4 = vld [vmem:[%s2001_s23 + $0xf8] sm:$0xff]   ;;  %1570 = vmatprep.subr.bf16.mxu0 %v1770_v3  ;;  %v1775_v8 = vld [vmem:[%s2001_s23 + $0xf0] sm:$0xff]   ;;  %v1779_v12 = vld [vmem:[%s2001_s23 + $0xe8] sm:$0xff]   ;;  %s2367_s20 = scalar_lea.vmem %s2428_s3, %s1553_s17 }
  0x14   : > { %v1772_v5 = vld [vmem:[%s2001_s23 + $0x38] sm:$0xff]   ;;  %1634 = vmatprep.subr.bf16.mxu1 %v1771_v4  ;;  %v1776_v9 = vld [vmem:[%s2001_s23 + $0x30] sm:$0xff]   ;;  %v1780_v13 = vld [vmem:[%s2001_s23 + $0x28] sm:$0xff]  }
  0x15   : > { %v1773_v6 = vld [vmem:[%s2001_s23 + $0xb8] sm:$0xff]   ;;  %1571 = vmatpush3.bf16.msra.mxu0 %v1772_v5  ;;  %v1777_v10 = vld [vmem:[%s2001_s23 + $0xb0] sm:$0xff]   ;;  %v1781_v14 = vld [vmem:[%s2001_s23 + $0xa8] sm:$0xff]  }
  0x16   : > { %1635 = vmatpush3.bf16.msra.mxu1 %v1773_v6  ;;  %1572 = vmatprep.subr.bf16.mxu0 %v1774_v7  ;;  %v1782_v15 = vld [vmem:[%s2001_s23 + $0x60] sm:$0xff]   ;;  %v1786_v19 = vld [vmem:[%s2001_s23 + $0x58] sm:$0xff]   ;;  %v1790_v23 = vld [vmem:[%s2001_s23 + $0x50] sm:$0xff]  }
  0x17   : > { %1636 = vmatprep.subr.bf16.mxu1 %v1775_v8  ;;  %v1783_v16 = vld [vmem:[%s2001_s23 + $0xe0] sm:$0xff]   ;;  %v1787_v20 = vld [vmem:[%s2001_s23 + $0xd8] sm:$0xff]   ;;  %v1791_v24 = vld [vmem:[%s2001_s23 + $0xd0] sm:$0xff]  }
  0x18   : > { %v1784_v17 = vld [vmem:[%s2001_s23 + $0x20] sm:$0xff]   ;;  %v1788_v21 = vld [vmem:[%s2001_s23 + $0x18] sm:$0xff]   ;;  %v1792_v25 = vld [vmem:[%s2001_s23 + $0x10] sm:$0xff]  }
  0x19   : > { %1573 = vmatpush3.bf16.msra.mxu0 %v1776_v9  ;;  %v1785_v18 = vld [vmem:[%s2001_s23 + $0xa0] sm:$0xff]   ;;  %v1789_v22 = vld [vmem:[%s2001_s23 + $0x98] sm:$0xff]   ;;  %v1793_v26 = vld [vmem:[%s2001_s23 + $0x90] sm:$0xff]  }
  0x1a   : > { %1637 = vmatpush3.bf16.msra.mxu1 %v1777_v10  ;;  %1574 = vmatprep.subr.bf16.mxu0 %v1778_v11  ;;  %v1794_v27 = vld [vmem:[%s2001_s23 + $0x48] sm:$0xff]   ;;  %v1798_v31 = vld [vmem:[%s2001_s23 + $0x40] sm:$0xff]   ;;  %v1808_v37 = vld [vmem:[%s2001_s23 + $0x118] sm:$0xff]  }
  0x1b   : > { %1638 = vmatprep.subr.bf16.mxu1 %v1779_v12  ;;  %v1795_v28 = vld [vmem:[%s2001_s23 + $0xc8] sm:$0xff]   ;;  %v1799_v32 = vld [vmem:[%s2001_s23 + $0xc0] sm:$0xff]   ;;  %v1821_v40 = vld [vmem:[%s2001_s23 + $0x110] sm:$0xff]  }
  0x1c   : > { %v1796_v29 = vld [vmem:[%s2001_s23 + $0x8] sm:$0xff]   ;;  %v1800_v34 = vld [vmem:[%s2001_s23] sm:$0xff]   ;;  %v325_v56 = vld [vmem:[%s2427_s2 + $0x10] sm:$0xff] }
  0x1d   : > { %1575 = vmatpush3.bf16.msra.mxu0 %v1780_v13  ;;  %v1797_v30 = vld [vmem:[%s2001_s23 + $0x88] sm:$0xff]   ;;  %v1801_v36 = vld [vmem:[%s2001_s23 + $0x80] sm:$0xff]   ;;  %351 = vperm.xlu1 %1769, %v325_v56   ;;  %v329_v1 = vld [vmem:[%s2427_s2 + $0x30] sm:$0xff] }
  0x1e   : > { %1639 = vmatpush3.bf16.msra.mxu1 %v1781_v14  ;;  %1576 = vmatprep.subr.bf16.mxu0 %v1782_v15  ;;  %v1834_v45 = vld [vmem:[%s2001_s23 + $0x108] sm:$0xff]   ;;  %v1847_v48 = vld [vmem:[%s2001_s23 + $0x100] sm:$0xff]   ;;  %v330_v2 = vld [vmem:[%s2427_s2 + $0x38] sm:$0xff] }
  0x1f   : > { %1640 = vmatprep.subr.bf16.mxu1 %v1783_v16  ;;  %v1826_v51 = vld [vmem:[%s2426_s1 + $0x78] ss:$20 sps:$4 sm:$0xff]   ;;  %v323_v55 = vld [vmem:[%s2427_s2] sm:$0xff]  ;;  %v1833_v60 = vld [vmem:[%s2426_s1 + $0xa8] ss:$20 sps:$4 sm:$0xff]  }
  0x20   : > { %v1828_v53 = vld [vmem:[%s2426_s1 + $0xa4] ss:$20 sps:$4 sm:$0xff]   ;;  %v1830_v54 = vld [vmem:[%s2426_s1 + $0xac] ss:$20 sps:$4 sm:$0xff]   ;;  %341 = vperm.xlu0 %1768, %v323_v55   ;;  %v1837_v63 = vld [vmem:[%s2426_s1 + $0xd4] ss:$20 sps:$4 sm:$0xff]  }
  0x21   : > { %1577 = vmatpush3.bf16.msra.mxu0 %v1784_v17  ;;  %v324_v57 = vld [vmem:[%s2427_s2 + $0x8] sm:$0xff]  ;;  %v1832_v59 = vld [vmem:[%s2426_s1 + $0xa0] ss:$20 sps:$4 sm:$0xff]   ;;  %356 = vperm.xlu1 %1769, %v326_v58   ;;  %v1840_v4 = vld [vmem:[%s2426_s1 + $0xd0] ss:$20 sps:$4 sm:$0xff]  }
  0x22   : > { %1641 = vmatpush3.bf16.msra.mxu1 %v1785_v18  ;;  %1578 = vmatprep.subr.bf16.mxu0 %v1786_v19  ;;  %v1835_v61 = vld [vmem:[%s2426_s1 + $0xcc] ss:$20 sps:$4 sm:$0xff]   ;;  %v1839_v3 = vld [vmem:[%s2426_s1 + $0xc8] ss:$20 sps:$4 sm:$0xff]   ;;  %v333_v9 = vld [vmem:[%s2427_s2 + $0x50] sm:$0xff] }
  0x23   : > { %1642 = vmatprep.subr.bf16.mxu1 %v1787_v20  ;;  %v327_v62 = vld [vmem:[%s2427_s2 + $0x20] sm:$0xff]  ;;  %v328_v0 = vld [vmem:[%s2427_s2 + $0x28] sm:$0xff]  ;;  %v1843_v7 = vld [vmem:[%s2426_s1 + $0xfc] ss:$20 sps:$4 sm:$0xff]  }
  0x24   : > { %346 = vperm.xlu0 %1768, %v324_v57   ;;  %v1841_v5 = vld [vmem:[%s2426_s1 + $0xf4] ss:$20 sps:$4 sm:$0xff]   ;;  %v331_v6 = vld [vmem:[%s2427_s2 + $0x40] sm:$0xff]  ;;  %v334_v10 = vld [vmem:[%s2427_s2 + $0x58] sm:$0xff] }
  0x25   : > { %1579 = vmatpush3.bf16.msra.mxu0 %v1788_v21  ;;  %366 = vperm.xlu1 %1769, %v328_v0   ;;  %v332_v8 = vld [vmem:[%s2427_s2 + $0x48] sm:$0xff]  ;;  %v1845_v11 = vld [vmem:[%s2426_s1 + $0xf0] ss:$20 sps:$4 sm:$0xff]   ;;  %v338_v18 = vld [vmem:[%s2427_s2 + $0x78] sm:$0xff] }
  0x26   : > { %1643 = vmatpush3.bf16.msra.mxu1 %v1789_v22  ;;  %1580 = vmatprep.subr.bf16.mxu0 %v1790_v23  ;;  %v1846_v12 = vld [vmem:[%s2426_s1 + $0xf8] ss:$20 sps:$4 sm:$0xff]   ;;  %v1848_v13 = vld [vmem:[%s2426_s1 + $0x11c] ss:$20 sps:$4 sm:$0xff]   ;;  %v335_v14 = vld [vmem:[%s2427_s2 + $0x60] sm:$0xff] }
  0x27   : > { %1644 = vmatprep.subr.bf16.mxu1 %v1791_v24  ;;  %v1850_v15 = vld [vmem:[%s2426_s1 + $0x124] ss:$20 sps:$4 sm:$0xff]   ;;  %v336_v16 = vld [vmem:[%s2427_s2 + $0x68] sm:$0xff]  ;;  %v337_v17 = vld [vmem:[%s2427_s2 + $0x70] sm:$0xff] }
  0x28   : > { %361 = vperm.xlu0 %1768, %v327_v62   ;;  %v1852_v19 = vld [vmem:[%s2426_s1 + $0x118] ss:$20 sps:$4 sm:$0xff]   ;;  %v1853_v20 = vld [vmem:[%s2426_s1 + $0x120] ss:$20 sps:$4 sm:$0xff]   ;;  %v1854_v21 = vld [vmem:[%s2426_s1 + $0x10] ss:$20 sps:$4 sm:$0xff]  }
  0x29   : > { %1581 = vmatpush3.bf16.msra.mxu0 %v1792_v25  ;;  %376 = vperm.xlu1 %1769, %v330_v2   ;;  %v1855_v22 = vld [vmem:[%s2426_s1 + $0xb0] ss:$20 sps:$4 sm:$0xff]   ;;  %v1856_v23 = vld [vmem:[%s2426_s1 + $0x38] ss:$20 sps:$4 sm:$0xff]   ;;  %v1858_v25 = vld [vmem:[%s2426_s1 + $0x60] ss:$20 sps:$4 sm:$0xff]  }
  0x2a   : > { %1645 = vmatpush3.bf16.msra.mxu1 %v1793_v26  ;;  %1582 = vmatprep.subr.bf16.mxu0 %v1794_v27  ;;  %v1857_v24 = vld [vmem:[%s2426_s1 + $0xd8] ss:$20 sps:$4 sm:$0xff]   ;;  %v1859_v26 = vld [vmem:[%s2426_s1 + $0x100] ss:$20 sps:$4 sm:$0xff]   ;;  %v1860_v27 = vld [vmem:[%s2426_s1 + $0x88] ss:$20 sps:$4 sm:$0xff]  }
  0x2b   : > { %1646 = vmatprep.subr.bf16.mxu1 %v1795_v28  ;;  %v1861_v28 = vld [vmem:[%s2426_s1 + $0x128] ss:$20 sps:$4 sm:$0xff]  }
  0x2c   : > { %371 = vperm.xlu0 %1768, %v329_v1  }
  0x2d   : > { %1583 = vmatpush3.bf16.msra.mxu0 %v1796_v29  ;;  %386 = vperm.xlu1 %1769, %v332_v8  }
  0x2e   : > { %1647 = vmatpush3.bf16.msra.mxu1 %v1797_v30  ;;  %1584 = vmatprep.subr.bf16.mxu0 %v1798_v31 }
  0x2f   : > { %1648 = vmatprep.subr.bf16.mxu1 %v1799_v32 }
  0x30   : > { %381 = vperm.xlu0 %1768, %v331_v6  }
  0x31   : > { %1585 = vmatpush3.bf16.msra.mxu0 %v1800_v34  ;;  %396 = vperm.xlu1 %1769, %v334_v10  }
  0x32   : > { %1649 = vmatpush3.bf16.msra.mxu1 %v1801_v36  ;;  %1710 = vmatprep.subr.bf16.mxu0 %v1808_v37 }
  0x33   : > { %1734 = vmatprep.subr.bf16.mxu1 %v1808_v37 }
  0x34   : > { %893 = vmatmul.mubr.bf16.vlgmr.msra.gmra.mxu0 %v1802_v33  ;;  %391 = vperm.xlu0 %1768, %v333_v9  }
  0x35   : > { %990 = vmatmul.mubr.bf16.vlgmr.msra.gmra.mxu1 %v1805_v35  ;;  %1711 = vmatpush3.bf16.msra.mxu0 %v1808_v37 }
  0x36   : > { %1738 = vmatpush3.bf16.msra.mxu1 %v1808_v37  ;;  %900 = vmatprep.mubr.bf16.mxu0 %v1809_v38 }
  0x37   : > { %997 = vmatprep.mubr.bf16.mxu1 %v1811_v39  ;;  %1712 = vmatprep.subr.bf16.mxu0 %v1821_v40 }
  0x38   : > { %1735 = vmatprep.subr.bf16.mxu1 %v1821_v40  ;;  %401 = vperm.xlu0 %1768, %v335_v14  }
  0x39   : > { %1713 = vmatpush3.bf16.msra.mxu0 %v1821_v40  ;;  %406 = vperm.xlu1 %1769, %v336_v16  }
  0x3a   : > { %1739 = vmatpush3.bf16.msra.mxu1 %v1821_v40  ;;  %1714 = vmatprep.subr.bf16.mxu0 %v1834_v45 }
  0x3b   : > { %1736 = vmatprep.subr.bf16.mxu1 %v1834_v45 }
  0x3c   : > { %901 = vmatmul.mubr.bf16.gmra.mxu0 %v1813_v41  ;;  %411 = vperm.xlu0 %1768, %v337_v17  }
  0x3d   : > { %998 = vmatmul.mubr.bf16.gmra.mxu1 %v1814_v42  ;;  %908 = vmatprep.mubr.bf16.mxu0 %v1815_v43 }
  0x3e   : > { %1005 = vmatprep.mubr.bf16.mxu1 %v1817_v44  ;;  %1715 = vmatpush3.bf16.msra.mxu0 %v1834_v45 }
  0x3f   : > { %1740 = vmatpush3.bf16.msra.mxu1 %v1834_v45  ;;  %1716 = vmatprep.subr.bf16.mxu0 %v1847_v48 }
  0x40   : > { %1737 = vmatprep.subr.bf16.mxu1 %v1847_v48  ;;  %416 = vperm.xlu1 %1769, %v338_v18  }
  0x42   : > { %1717 = vmatpush3.bf16.msra.mxu0 %v1847_v48 }
  0x43   : > { %1741 = vmatpush3.bf16.msra.mxu1 %v1847_v48 }
  0x44   : > { %909 = vmatmul.mubr.bf16.gmra.mxu0 %v1819_v46 }
  0x45   : > { %1006 = vmatmul.mubr.bf16.gmra.mxu1 %v1820_v47  ;;  %916 = vmatprep.mubr.bf16.mxu0 %v1822_v49 }
  0x46   : > { %1013 = vmatprep.mubr.bf16.mxu1 %v1824_v50 }
  0x4c   : > { %917 = vmatmul.mubr.bf16.gmra.mxu0 %v1826_v51 }
  0x4d   : > { %1014 = vmatmul.mubr.bf16.gmra.mxu1 %v1827_v52  ;;  %924 = vmatprep.mubr.bf16.mxu0 %v1828_v53 }
  0x4e   : > { %1021 = vmatprep.mubr.bf16.mxu1 %v1830_v54 }
  0x54   : > { %925 = vmatmul.mubr.bf16.gmra.mxu0 %v1832_v59 }
  0x55   : > { %1022 = vmatmul.mubr.bf16.gmra.mxu1 %v1833_v60  ;;  %932 = vmatprep.mubr.bf16.mxu0 %v1835_v61 }
  0x56   : > { %1029 = vmatprep.mubr.bf16.mxu1 %v1837_v63 }
  0x5c   : > { %933 = vmatmul.mubr.bf16.gmra.mxu0 %v1839_v3 }
  0x5d   : > { %1030 = vmatmul.mubr.bf16.gmra.mxu1 %v1840_v4  ;;  %940 = vmatprep.mubr.bf16.mxu0 %v1841_v5 }
  0x5e   : > { %1037 = vmatprep.mubr.bf16.mxu1 %v1843_v7 }
  0x64   : > { %941 = vmatmul.mubr.bf16.gmra.mxu0 %v1845_v11 }
  0x65   : > { %1038 = vmatmul.mubr.bf16.gmra.mxu1 %v1846_v12  ;;  %948 = vmatprep.mubr.bf16.mxu0 %v1848_v13 }
  0x66   : > { %1045 = vmatprep.mubr.bf16.mxu1 %v1850_v15 }
  0x6c   : > { %949 = vmatmul.mubr.bf16.gmra.mxu0 %v1852_v19 }
  0x6d   : > { %1046 = vmatmul.mubr.bf16.gmra.mxu1 %v1853_v20  ;;  %1718 = vmatprep.mubr.msk.bf16.mxu0 %vm835_vm0, %v1854_v21 }
  0x6e   : > { %1726 = vmatprep.mubr.msk.bf16.mxu1 %vm835_vm0, %v1855_v22 }
  0x74   : > { %1719 = vmatmul.mubr.msk.bf16.vlgmr.msra.gmra.mxu0 %vm835_vm0, %v1856_v23 }
  0x75   : > { %1727 = vmatmul.mubr.msk.bf16.vlgmr.msra.gmra.mxu1 %vm835_vm0, %v1857_v24  ;;  %1722 = vmatprep.mubr.msk.bf16.mxu0 %vm835_vm0, %v1858_v25 }
  0x76   : > { %1730 = vmatprep.mubr.msk.bf16.mxu1 %vm835_vm0, %v1859_v26 }
  0x7c   : > { %1723 = vmatmul.mubr.msk.bf16.gmra.mxu0 %vm835_vm0, %v1860_v27 }
  0x7d   : > { %1731 = vmatmul.mubr.msk.bf16.gmra.mxu1 %vm835_vm0, %v1861_v28 }
  0x98   : > { %v352_v63 = vpop.permute.xlu1 %351 }
  0x9b   : > { %v342_v59 = vpop.permute.xlu0 %341 }
  0x9c   : > { %v357_v7 = vpop.permute.xlu1 %356 }
  0x9f   : > { %v347_v3 = vpop.permute.xlu0 %346 }
  0xa0   : > { %v2253_v13 = vpop.permute.xlu1 %366 }
  0xa1   : > { %2435 = vst [vmem:[#allocation8_spill] sm:$0xff] %v2253_v13 }
  0xa3   : > { %v362_v9 = vpop.permute.xlu0 %361 }
  0xa4   : > { %v377_v19 = vpop.permute.xlu1 %376 }
  0xa7   : > { %v372_v15 = vpop.permute.xlu0 %371 }
  0xab   : > { %v382_v21 = vpop.permute.xlu0 %381 }
  0xf4   : > { %v1586_v29 = vpop.f32.mrf.mxu0 }
  0xf5   : > { %v2209_v30 = vpop.f32.mrf.mxu1 }
  0xf6   : > { %v1587_v31 = vpop.f32.mrf.mxu0 }
  0xf7   : > { %v2211_v32 = vpop.f32.mrf.mxu1  ;;  %v1588_v25 = vadd.f32 %v1587_v31, %v1586_v29 }
  0xf8   : > { %v1589_v33 = vpop.f32.mrf.mxu0 }
  0xf9   : > { %v2213_v34 = vpop.f32.mrf.mxu1 }
  0xfa   : > { %v1590_v35 = vpop.f32.mrf.mxu0 }
  0xfb   : > { %v2215_v36 = vpop.f32.mrf.mxu1  ;;  %v1591_v26 = vadd.f32 %v1590_v35, %v1589_v33 }
  0xfc   : > { %v1592_v37 = vpop.f32.mrf.mxu0  ;;  %v1655_v33 = vadd.f32 %v2215_v36, %v2213_v34 }
  0xfd   : > { %v2217_v38 = vpop.f32.mrf.mxu1 }
  0xfe   : > { %v1593_v39 = vpop.f32.mrf.mxu0 }
  0xff   : > { %v2219_v40 = vpop.f32.mrf.mxu1  ;;  %v1594_v27 = vadd.f32 %v1593_v39, %v1592_v37 }
 0x100   : > { %v1595_v41 = vpop.f32.mrf.mxu0 }
 0x101   : > { %v2221_v42 = vpop.f32.mrf.mxu1  ;;  %v903_v29 = vadd.f32 %v1594_v27, %v352_v63 }
 0x102   : > { %v1596_v43 = vpop.f32.mrf.mxu0 }
 0x103   : > { %v2223_v44 = vpop.f32.mrf.mxu1 }
 0x104   : > { %v1598_v45 = vpop.f32.mrf.mxu0 }
 0x105   : > { %v2225_v46 = vpop.f32.mrf.mxu1 }
 0x106   : > { %v1599_v47 = vpop.f32.mrf.mxu0 }
 0x107   : > { %v2227_v48 = vpop.f32.mrf.mxu1 }
 0x108   : > { %v2229_v49 = vpop.f32.mrf.mxu0 }
 0x109   : > { %v2231_v50 = vpop.f32.mrf.mxu1 }
 0x10a   : > { %v2233_v51 = vpop.f32.mrf.mxu0 }
 0x10b   : > { %v2235_v52 = vpop.f32.mrf.mxu1 }
 0x10c   : > { %v1604_v53 = vpop.f32.mrf.mxu0 }
 0x10d   : > { %v2237_v54 = vpop.f32.mrf.mxu1 }
 0x10e   : > { %v1605_v55 = vpop.f32.mrf.mxu0 }
 0x10f   : > { %v2239_v56 = vpop.f32.mrf.mxu1 }
 0x110   : > { %v1607_v57 = vpop.f32.mrf.mxu0 }
 0x111   : > { %v2241_v58 = vpop.f32.mrf.mxu1 }
 0x112   : > { %2429 = vst [vmem:[#allocation2_spill] sm:$0xff] %v2241_v58  ;;  %v1608_v60 = vpop.f32.mrf.mxu0  ;;  %v898_v58 = vadd.f32 %v1591_v26, %v347_v3 }
 0x113   : > { %v2243_v61 = vpop.f32.mrf.mxu1 }
 0x114   : > { %2430 = vst [vmem:[#allocation3_spill] sm:$0xff] %v2243_v61  ;;  %v1610_v62 = vpop.f32.mrf.mxu0 }
 0x115   : > { %v2245_v0 = vpop.f32.mrf.mxu1 }
 0x116   : > { %2431 = vst [vmem:[#allocation4_spill] sm:$0xff] %v2245_v0  ;;  %v1611_v1 = vpop.f32.mrf.mxu0  ;;  %v392_v0 = vpop.permute.xlu0 %391 }
 0x117   : > { %v2247_v2 = vpop.f32.mrf.mxu1 }
 0x118   : > { %2432 = vst [vmem:[#allocation5_spill] sm:$0xff] %v2247_v2  ;;  %v1613_v4 = vpop.f32.mrf.mxu0  ;;  %v387_v2 = vpop.permute.xlu1 %386 }
 0x119   : > { %v2249_v5 = vpop.f32.mrf.mxu1 }
 0x11a   : > { %2433 = vst [vmem:[#allocation6_spill] sm:$0xff] %v2249_v5  ;;  %v1614_v6 = vpop.f32.mrf.mxu0  ;;  %v1600_v5 = vadd.f32 %v1599_v47, %v1598_v45  ;;  %v1606_v45 = vadd.f32 %v1605_v55, %v1604_v53  ;;  %v1609_v47 = vadd.f32 %v1608_v60, %v1607_v57  ;;  %v402_v53 = vpop.permute.xlu0 %401 }
 0x11b   : > { %v2251_v8 = vpop.f32.mrf.mxu1 }
 0x11c   : > { %2434 = vst [vmem:[#allocation7_spill] sm:$0xff] %v2251_v8  ;;  %v1616_v10 = vpop.f32.mrf.mxu0  ;;  %v1597_v8 = vadd.f32 %v1596_v43, %v1595_v41  ;;  %v911_v37 = vadd.f32 %v1600_v5, %v362_v9  ;;  %v1658_v43 = vadd.f32 %v2219_v40, %v2217_v38  ;;  %v397_v36 = vpop.permute.xlu1 %396  ;;  %v1603_v38 = vadd.f32 %v2233_v51, %v2229_v49  ;;  %v2442_v9 = vld [vmem:[#allocation3_spill] sm:$0xff] }
 0x11d   : > { %v1680_v11 = vpop.f32.mrf.mxu1  ;;  %v1670_v51 = vadd.f32 %v2239_v56, %v2237_v54 }
 0x11e   : > { %v1617_v12 = vpop.f32.mrf.mxu0  ;;  %v906_v35 = vadd.f32 %v1597_v8, %v357_v7  ;;  %v1000_v5 = vadd.f32 %v1658_v43, %v903_v29  ;;  %v995_v8 = vadd.f32 %v1655_v33, %v898_v58  ;;  %v412_v29 = vpop.permute.xlu0 %411 }
 0x11f   : > { %v1681_v14 = vpop.f32.mrf.mxu1  ;;  %v1618_v39 = vadd.f32 %v1617_v12, %v1616_v10  ;;  %v2443_v12 = vld [vmem:[#allocation4_spill] sm:$0xff] }
 0x120   : > { %v1619_v16 = vpop.f32.mrf.mxu0  ;;  %v1682_v58 = vadd.f32 %v1681_v14, %v1680_v11  ;;  %v407_v54 = vpop.permute.xlu1 %406 }
 0x121   : > { %v2255_v17 = vpop.f32.mrf.mxu1  ;;  %v935_v40 = vadd.f32 %v1618_v39, %v392_v0  ;;  %v2441_v0 = vld [vmem:[#allocation2_spill] sm:$0xff] }
 0x122   : > { %2436 = vst [vmem:[#allocation9_spill] sm:$0xff] %v2255_v17  ;;  %v1620_v18 = vpop.f32.mrf.mxu0  ;;  %v1673_v10 = vadd.f32 %v2442_v9, %v2441_v0 }
 0x123   : > { %v2257_v20 = vpop.f32.mrf.mxu1  ;;  %v1621_v63 = vadd.f32 %v1620_v18, %v1619_v16  ;;  %v2444_v16 = vld [vmem:[#allocation5_spill] sm:$0xff]  ;;  %v2445_v18 = vld [vmem:[#allocation8_spill] sm:$0xff] }
 0x124   : > { %2437 = vst [vmem:[#allocation10_spill] sm:$0xff] %v2257_v20  ;;  %v1622_v22 = vpop.f32.mrf.mxu0  ;;  %v1652_v20 = vadd.f32 %v2211_v32, %v2209_v30  ;;  %v1661_v30 = vadd.f32 %v2223_v44, %v2221_v42  ;;  %v1664_v32 = vadd.f32 %v2227_v48, %v2225_v46  ;;  %v2287_v42 = vadd.f32 %v2235_v52, %v2231_v50 }
 0x125   : > { %v2259_v23 = vpop.f32.mrf.mxu1  ;;  %v919_v44 = vadd.f32 %v1606_v45, %v372_v15  ;;  %v922_v46 = vadd.f32 %v1609_v47, %v377_v19  ;;  %v1676_v50 = vadd.f32 %v2444_v16, %v2443_v12  ;;  %v2446_v19 = vld [vmem:[#allocation6_spill] sm:$0xff] }
 0x126   : > { %2438 = vst [vmem:[#allocation11_spill] sm:$0xff] %v2259_v23  ;;  %v1623_v24 = vpop.f32.mrf.mxu0  ;;  %v895_v23 = vadd.f32 %v1588_v25, %v342_v59  ;;  %v1615_v59 = vadd.f32 %v1614_v6, %v1613_v4  ;;  %v1003_v57 = vadd.f32 %v1661_v30, %v906_v35  ;;  %v2283_v60 = vadd.f32 %v1664_v32, %v911_v37 }
 0x127   : > { %v2261_v28 = vpop.f32.mrf.mxu1  ;;  %v938_v4 = vadd.f32 %v1621_v63, %v397_v36  ;;  %v1624_v6 = vadd.f32 %v1623_v24, %v1622_v22  ;;  %v1016_v26 = vadd.f32 %v1670_v51, %v919_v44  ;;  %v1019_v27 = vadd.f32 %v1673_v10, %v922_v46 }
 0x128   : > { %v2263_v13 = vpop.f32.mrf.mxu0  ;;  %v992_v7 = vadd.f32 %v1652_v20, %v895_v23  ;;  %v1032_v23 = vadd.f32 %v1682_v58, %v935_v40 }
 0x129   : > { %v2265_v17 = vpop.f32.mrf.mxu1  ;;  %v2448_v14 = vld [vmem:[#allocation9_spill] sm:$0xff]  ;;  %v943_v33 = vadd.f32 %v1624_v6, %v402_v53 }
 0x12a   : > { %2439 = vst [vmem:[#allocation12_spill] sm:$0xff] %v2265_v17  ;;  %v2267_v61 = vpop.f32.mrf.mxu0  ;;  %v1612_v17 = vadd.f32 %v1611_v1, %v1610_v62  ;;  %v930_v1 = vadd.f32 %v1615_v59, %v387_v2  ;;  %v2447_v2 = vld [vmem:[#allocation7_spill] sm:$0xff] }
 0x12b   : > { %2440 = vst [vmem:[#allocation13_spill] sm:$0xff] %v2267_v61  ;;  %v2271_v31 = vpop.f32.mrf.mxu1  ;;  %v1679_v11 = vadd.f32 %v2447_v2, %v2446_v19  ;;  %v2449_v20 = vld [vmem:[#allocation10_spill] sm:$0xff] }
 0x12c   : > { %v1628_v41 = vpop.f32.mrf.mxu0  ;;  %v927_v48 = vadd.f32 %v1612_v17, %v382_v21  ;;  %v2298_v17 = vadd.f32 %v1603_v38, %v2445_v18  ;;  %v1685_v21 = vadd.f32 %v2449_v20, %v2448_v14 }
 0x12d   : > { %v1692_v61 = vpop.f32.mrf.mxu1  ;;  %v2450_v43 = vld [vmem:[#allocation11_spill] sm:$0xff] }
 0x12e   : > { %v1629_v34 = vpop.f32.mrf.mxu0  ;;  %v1024_v25 = vadd.f32 %v1676_v50, %v927_v48  ;;  %v1035_v39 = vadd.f32 %v1685_v21, %v938_v4  ;;  %v1688_v45 = vadd.f32 %v2261_v28, %v2450_v43 }
 0x12f   : > { %v1693_v3 = vpop.f32.mrf.mxu1  ;;  %v1630_v52 = vadd.f32 %v1629_v34, %v1628_v41  ;;  %v1027_v41 = vadd.f32 %v1679_v11, %v930_v1 }
 0x130   : > { %v1631_v55 = vpop.f32.mrf.mxu0  ;;  %v1694_v53 = vadd.f32 %v1693_v3, %v1692_v61 }
 0x131   : > { %v2289_v62 = vpop.f32.mrf.mxu1  ;;  %v951_v47 = vadd.f32 %v1630_v52, %v412_v29  ;;  %v2452_v18 = vld [vmem:[#allocation12_spill] sm:$0xff] }
 0x132   : > { %v1632_v49 = vpop.f32.mrf.mxu0  ;;  %v2451_v63 = vld [vmem:[#allocation13_spill] sm:$0xff]  ;;  %v1691_v19 = vadd.f32 %v2271_v31, %v2452_v18 }
 0x133   : > { %v1696_v15 = vpop.f32.mrf.mxu1  ;;  %v1627_v34 = vadd.f32 %v2451_v63, %v2263_v13  ;;  %v1633_v36 = vadd.f32 %v1632_v49, %v1631_v55  ;;  %v1040_v13 = vadd.f32 %v1688_v45, %v943_v33  ;;  %v417_v55 = vpop.permute.xlu1 %416  ;;  %v1048_v3 = vadd.f32 %v1694_v53, %v951_v47 }
 0x134   : > { %v1720_v22 = vpop.f32.mrf.mxu0  ;;  %v1697_v16 = vadd.f32 %v1696_v15, %v2289_v62 }
 0x135   : > { %v2304_v56 = vadd.f32 %v1720_v22, %v1000_v5  ;;  %v1728_v24 = vpop.f32.mrf.mxu1  ;;  %v954_v6 = vadd.f32 %v1633_v36, %v417_v55  ;;  %v946_v0 = vadd.f32 %v1627_v34, %v407_v54  ;;  %v1011_v54 = vadd.f32 %v2287_v42, %v2298_v17 }
 0x136   : > { %v2306_v35 = vadd.f32 %v1728_v24, %v1032_v23  ;;  %v1088_v37 = vpop.f32.mrf.mxu0 }
 0x137   : > { %v1521_v30 = vmul.f32 -1.442695, %v2304_v56  ;;  %v2311_v32 = vadd.f32 %v1088_v37, %v992_v7  ;;  %v1120_v59 = vpop.f32.mrf.mxu1  ;;  %v1051_v21 = vadd.f32 %v1697_v16, %v954_v6 }
 0x138   : > { %v1529_v5 = vmul.f32 -1.442695, %v2306_v35  ;;  %v2316_v38 = vadd.f32 %v1120_v59, %v1024_v25  ;;  %v1721_v40 = vpop.f32.mrf.mxu0 }
 0x139   : > { %1862 = vpow2.f32 %v1521_v30  ;;  %v1519_v44 = vmul.f32 -1.442695, %v2311_v32  ;;  %v2319_v28 = vadd.f32 %v1721_v40, %v1003_v57  ;;  %v1729_v46 = vpop.f32.mrf.mxu1 }
 0x13a   : > { %1864 = vpow2.f32 %v1529_v5  ;;  %v1527_v7 = vmul.f32 -1.442695, %v2316_v38  ;;  %v2322_v48 = vadd.f32 %v1729_v46, %v1035_v39  ;;  %v1091_v1 = vpop.f32.mrf.mxu0 }
 0x13b   : > { %1866 = vpow2.f32 %v1519_v44  ;;  %v1522_v58 = vmul.f32 -1.442695, %v2319_v28  ;;  %v2325_v4 = vadd.f32 %v1091_v1, %v995_v8  ;;  %v1123_v61 = vpop.f32.mrf.mxu1 }
 0x13c   : > { %1868 = vpow2.f32 %v1527_v7  ;;  %v1530_v57 = vmul.f32 -1.442695, %v2322_v48  ;;  %v2328_v49 = vadd.f32 %v1123_v61, %v1027_v41  ;;  %v1724_v51 = vpop.f32.mrf.mxu0 }
 0x13d   : > { %1870 = vpow2.f32 %v1522_v58  ;;  %v1520_v9 = vmul.f32 -1.442695, %v2325_v4  ;;  %v2331_v10 = vadd.f32 %v1724_v51, %v1016_v26  ;;  %v1732_v12 = vpop.f32.mrf.mxu1  ;;  %v1043_v26 = vadd.f32 %v1691_v19, %v946_v0 }
 0x13e   : > { %1872 = vpow2.f32 %v1530_v57  ;;  %v1528_v8 = vmul.f32 -1.442695, %v2328_v49  ;;  %v2335_v50 = vadd.f32 %v1732_v12, %v1048_v3  ;;  %v1104_v52 = vpop.f32.mrf.mxu0 }
 0x13f   : > { %1874 = vpow2.f32 %v1520_v9  ;;  %v1525_v2 = vmul.f32 -1.442695, %v2331_v10  ;;  %v2341_v11 = vadd.f32 %v1104_v52, %v2283_v60  ;;  %v1136_v14 = vpop.f32.mrf.mxu1 }
 0x140   : > { %1876 = vpow2.f32 %v1528_v8  ;;  %v1533_v20 = vmul.f32 -1.442695, %v2335_v50  ;;  %v2344_v62 = vadd.f32 %v1136_v14, %v1040_v13  ;;  %v1725_v15 = vpop.f32.mrf.mxu0 }
 0x141   : > { %1878 = vpow2.f32 %v1525_v2  ;;  %v1523_v22 = vmul.f32 -1.442695, %v2341_v11  ;;  %v2347_v23 = vadd.f32 %v1725_v15, %v1019_v27  ;;  %v1733_v31 = vpop.f32.mrf.mxu1 }
 0x142   : > { %1880 = vpow2.f32 %v1533_v20  ;;  %v1531_v60 = vmul.f32 -1.442695, %v2344_v62  ;;  %v2352_v24 = vadd.f32 %v1733_v31, %v1051_v21  ;;  %v1107_v25 = vpop.f32.mrf.mxu0 }
 0x143   : > { %1882 = vpow2.f32 %v1523_v22  ;;  %v1526_v29 = vmul.f32 -1.442695, %v2347_v23  ;;  %v2355_v33 = vadd.f32 %v1107_v25, %v1011_v54  ;;  %v1139_v37 = vpop.f32.mrf.mxu1 }
 0x144   : > { %1884 = vpow2.f32 %v1531_v60  ;;  %v1534_v27 = vmul.f32 -1.442695, %v2352_v24  ;;  %v2358_v39 = vadd.f32 %v1139_v37, %v1043_v26 }
 0x145   : > { %1886 = vpow2.f32 %v1526_v29  ;;  %v1524_v42 = vmul.f32 -1.442695, %v2355_v33 }
 0x146   : > { %v1863_v17 = vpop.eup %1862  ;;  %1888 = vpow2.f32 %v1534_v27  ;;  %v1532_v41 = vmul.f32 -1.442695, %v2358_v39 }
 0x147   : > { %v1865_v43 = vpop.eup %1864  ;;  %v1201_v45 = vadd.f32 1.0, %v1863_v17  ;;  %1890 = vpow2.f32 %v1524_v42 }
 0x148   : > { %v1867_v47 = vpop.eup %1866  ;;  %v1209_v30 = vadd.f32 1.0, %v1865_v43  ;;  %1892 = vpow2.f32 %v1532_v41 }
 0x149   : > { %v1869_v59 = vpop.eup %1868  ;;  %1894 = vrcp.f32 %v1201_v45  ;;  %v1199_v63 = vadd.f32 1.0, %v1867_v47 }
 0x14a   : > { %v1871_v34 = vpop.eup %1870  ;;  %1896 = vrcp.f32 %v1209_v30  ;;  %v1207_v36 = vadd.f32 1.0, %v1869_v59 }
 0x14b   : > { %v1873_v5 = vpop.eup %1872  ;;  %1898 = vrcp.f32 %v1199_v63  ;;  %v1202_v40 = vadd.f32 1.0, %v1871_v34 }
 0x14c   : > { %v1875_v53 = vpop.eup %1874  ;;  %1900 = vrcp.f32 %v1207_v36  ;;  %v1210_v44 = vadd.f32 1.0, %v1873_v5 }
 0x14d   : > { %v1877_v46 = vpop.eup %1876  ;;  %1902 = vrcp.f32 %v1202_v40  ;;  %v1200_v7 = vadd.f32 1.0, %v1875_v53 }
 0x14e   : > { %v1879_v1 = vpop.eup %1878  ;;  %1904 = vrcp.f32 %v1210_v44  ;;  %v1208_v13 = vadd.f32 1.0, %v1877_v46 }
 0x14f   : > { %v1881_v55 = vpop.eup %1880  ;;  %1906 = vrcp.f32 %v1200_v7  ;;  %v1205_v58 = vadd.f32 1.0, %v1879_v1 }
 0x150   : > { %v1883_v61 = vpop.eup %1882  ;;  %1908 = vrcp.f32 %v1208_v13  ;;  %v1213_v3 = vadd.f32 1.0, %v1881_v55 }
 0x151   : > { %v1885_v6 = vpop.eup %1884  ;;  %1910 = vrcp.f32 %v1205_v58  ;;  %v1203_v57 = vadd.f32 1.0, %v1883_v61 }
 0x152   : > { %v1887_v51 = vpop.eup %1886  ;;  %1912 = vrcp.f32 %v1213_v3  ;;  %v1211_v0 = vadd.f32 1.0, %v1885_v6 }
 0x153   : > { %v1889_v9 = vpop.eup %1888  ;;  %1914 = vrcp.f32 %v1203_v57  ;;  %v1206_v12 = vadd.f32 1.0, %v1887_v51 }
 0x154   : > { %v1891_v16 = vpop.eup %1890  ;;  %1916 = vrcp.f32 %v1211_v0  ;;  %v1214_v8 = vadd.f32 1.0, %v1889_v9 }
 0x155   : > { %v1893_v52 = vpop.eup %1892  ;;  %1918 = vrcp.f32 %v1206_v12  ;;  %v1204_v18 = vadd.f32 1.0, %v1891_v16 }
 0x156   : > { %v1895_v19 = vpop.eup %1894  ;;  %1920 = vrcp.f32 %v1214_v8  ;;  %v1212_v2 = vadd.f32 1.0, %v1893_v52 }
 0x157   : > { %v1897_v14 = vpop.eup %1896  ;;  %v1249_v20 = vmul.f32 %v1895_v19, %v2304_v56  ;;  %1922 = vrcp.f32 %v1204_v18 }
 0x158   : > { %v1899_v15 = vpop.eup %1898  ;;  %v1257_v21 = vmul.f32 %v1897_v14, %v2306_v35  ;;  %1924 = vrcp.f32 %v1212_v2 }
 0x159   : > { %v1901_v22 = vpop.eup %1900  ;;  %v1556_v31 = vpack.c.bf16 %v1249_v20, %v1249_v20  ;;  %v1247_v54 = vmul.f32 %v1899_v15, %v2311_v32 }
 0x15a   : > { %v1903_v60 = vpop.eup %1902  ;;  %v1564_v56 = vpack.c.bf16 %v1257_v21, %v1257_v21  ;;  %v1255_v25 = vmul.f32 %v1901_v22, %v2316_v38 }
 0x15b   : > { %v1905_v26 = vpop.eup %1904  ;;  %1330 = vst.msk [vmem:[%s2367_s20 + $0x8] sm:$0xf] %vm1327_vm1, %v1556_v31  ;;  %v1554_v29 = vpack.c.bf16 %v1247_v54, %v1247_v54  ;;  %v1250_v37 = vmul.f32 %v1903_v60, %v2319_v28 }
 0x15c   : > { %v1907_v27 = vpop.eup %1906  ;;  %1338 = vst.msk [vmem:[%s2367_s20 + $0x28] sm:$0xf] %vm1327_vm1, %v1564_v56  ;;  %v1562_v35 = vpack.c.bf16 %v1255_v25, %v1255_v25  ;;  %v1258_v42 = vmul.f32 %v1905_v26, %v2322_v48 }
 0x15d   : > { %v1909_v32 = vpop.eup %1908  ;;  %1328 = vst.msk [vmem:[%s2367_s20] sm:$0xf] %vm1327_vm1, %v1554_v29  ;;  %v1557_v17 = vpack.c.bf16 %v1250_v37, %v1250_v37  ;;  %v1248_v38 = vmul.f32 %v1907_v27, %v2325_v4 }
 0x15e   : > { %v1911_v41 = vpop.eup %1910  ;;  %1336 = vst.msk [vmem:[%s2367_s20 + $0x20] sm:$0xf] %vm1327_vm1, %v1562_v35  ;;  %v1565_v43 = vpack.c.bf16 %v1258_v42, %v1258_v42  ;;  %v1256_v28 = vmul.f32 %v1909_v32, %v2328_v49 }
 0x15f   : > { %v1913_v45 = vpop.eup %1912  ;;  %1331 = vst.msk [vmem:[%s2367_s20 + $0xc] sm:$0xf] %vm1327_vm1, %v1557_v17  ;;  %v1555_v47 = vpack.c.bf16 %v1248_v38, %v1248_v38  ;;  %v1253_v48 = vmul.f32 %v1911_v41, %v2331_v10 }
 0x160   : > { %v1915_v30 = vpop.eup %1914  ;;  %1339 = vst.msk [vmem:[%s2367_s20 + $0x2c] sm:$0xf] %vm1327_vm1, %v1565_v43  ;;  %v1563_v59 = vpack.c.bf16 %v1256_v28, %v1256_v28  ;;  %v1261_v4 = vmul.f32 %v1913_v45, %v2335_v50 }
 0x161   : > { %v1917_v63 = vpop.eup %1916  ;;  %1329 = vst.msk [vmem:[%s2367_s20 + $0x4] sm:$0xf] %vm1327_vm1, %v1555_v47  ;;  %v1560_v34 = vpack.c.bf16 %v1253_v48, %v1253_v48  ;;  %v1251_v49 = vmul.f32 %v1915_v30, %v2341_v11 }
 0x162   : > { %v1919_v36 = vpop.eup %1918  ;;  %1337 = vst.msk [vmem:[%s2367_s20 + $0x24] sm:$0xf] %vm1327_vm1, %v1563_v59  ;;  %v1568_v5 = vpack.c.bf16 %v1261_v4, %v1261_v4  ;;  %v1259_v10 = vmul.f32 %v1917_v63, %v2344_v62 }
 0x163   : > { %v1921_v40 = vpop.eup %1920  ;;  %1334 = vst.msk [vmem:[%s2367_s20 + $0x18] sm:$0xf] %vm1327_vm1, %v1560_v34  ;;  %v1558_v50 = vpack.c.bf16 %v1251_v49, %v1251_v49  ;;  %v1254_v53 = vmul.f32 %v1919_v36, %v2347_v23 }
 0x164   : > { %v1923_v44 = vpop.eup %1922  ;;  %1342 = vst.msk [vmem:[%s2367_s20 + $0x38] sm:$0xf] %vm1327_vm1, %v1568_v5  ;;  %v1566_v11 = vpack.c.bf16 %v1259_v10, %v1259_v10  ;;  %v1262_v46 = vmul.f32 %v1921_v40, %v2352_v24 }
 0x165   : > { %v1925_v7 = vpop.eup %1924  ;;  %1332 = vst.msk [vmem:[%s2367_s20 + $0x10] sm:$0xf] %vm1327_vm1, %v1558_v50  ;;  %v1561_v62 = vpack.c.bf16 %v1254_v53, %v1254_v53  ;;  %v1252_v1 = vmul.f32 %v1923_v44, %v2355_v33 }
 0x166   : > { %1340 = vst.msk [vmem:[%s2367_s20 + $0x30] sm:$0xf] %vm1327_vm1, %v1566_v11  ;;  %v1569_v13 = vpack.c.bf16 %v1262_v46, %v1262_v46  ;;  %v1260_v55 = vmul.f32 %v1925_v7, %v2358_v39 }
 0x167   : > { %1335 = vst.msk [vmem:[%s2367_s20 + $0x1c] sm:$0xf] %vm1327_vm1, %v1561_v62  ;;  %v1559_v23 = vpack.c.bf16 %v1252_v1, %v1252_v1 }
 0x168   : > { %1343 = vst.msk [vmem:[%s2367_s20 + $0x3c] sm:$0xf] %vm1327_vm1, %v1569_v13  ;;  %v1567_v58 = vpack.c.bf16 %v1260_v55, %v1260_v55 }
 0x169   : > { %1333 = vst.msk [vmem:[%s2367_s20 + $0x14] sm:$0xf] %vm1327_vm1, %v1559_v23 }
 0x16a   : > { %1341 = vst.msk [vmem:[%s2367_s20 + $0x34] sm:$0xf] %vm1327_vm1, %v1567_v58 }
 0x16b PF: > { %s13_s14 = sadd.s32 1, %s1948_s14   ;;  %s2453_s12 = smov %s1944_s13 }
 0x16c   : > { %p10_p5 = scmp.ge.s32.totalorder %s13_s14, 4   ;;  %s2454_s13 = smov %s2456_s15 }
 0x16e   :  { %12 = sbr.rel (!%p10_p5) target bundleno = 2 (0x2), region = 62 }

// kernel: _lambda_.13
= control target key start
LH: loop header
LB: loop body
LE: loop exit
PB: predicated region body
PF: predicated region fallthrough
CT: control target
= control target key end

     0   :  { %vm97_vm0 = vcmask 261120   ;;  %v220_v10 = vlaneseq  ;;  %s1441_s1 = inlined_call_operand.vmem [shape: bf16[32,128], index: 1, kind: input, shape index: {}]   ;;  %s1442_s0 = inlined_call_operand.vmem [shape: bf16[128,32], index: 0, kind: input, shape index: {}]   ;;  %s1443_s3 = inlined_call_operand.vmem [shape: f32[3,128], index: 3, kind: input, shape index: {}]   ;;  %s1444_s2 = inlined_call_operand.vmem [shape: f32[1,128], index: 2, kind: input, shape index: {}]   ;;  %s1445_s4 = inlined_call_operand.vmem [shape: f32[128,128], index: 4, kind: output, shape index: {}]  }
   0x1   :  { %v810_v0 = vld [vmem:[%s1441_s1 + $0x8] sm:$0xff]   ;;  %v811_v1 = vld [vmem:[%s1441_s1] sm:$0xff]   ;;  %v816_v6 = vld [vmem:[%s1442_s0 + $0x10] sm:$0xff]  }
   0x2   :  { %785 = vmatprep.subr.bf16.mxu0 %v810_v0  ;;  %805 = vmatprep.subr.bf16.mxu1 %v810_v0  ;;  %v812_v2 = vld [vmem:[%s1442_s0] sm:$0xff]   ;;  %v814_v4 = vld [vmem:[%s1442_s0 + $0x8] sm:$0xff]   ;;  %v817_v7 = vld [vmem:[%s1442_s0 + $0x30] sm:$0xff]   ;;  %v949_v11 = vshrl.u32 %v220_v10, 7 }
   0x3   :  { %786 = vmatpush3.bf16.msra.mxu0 %v810_v0  ;;  %807 = vmatpush3.bf16.msra.mxu1 %v810_v0  ;;  %v813_v3 = vld [vmem:[%s1442_s0 + $0x20] sm:$0xff]   ;;  %v815_v5 = vld [vmem:[%s1442_s0 + $0x28] sm:$0xff]   ;;  %v818_v8 = vld [vmem:[%s1442_s0 + $0x18] sm:$0xff]  }
   0x4   :  { %787 = vmatprep.subr.bf16.mxu0 %v811_v1  ;;  %806 = vmatprep.subr.bf16.mxu1 %v811_v1  ;;  %v819_v9 = vld [vmem:[%s1442_s0 + $0x38] sm:$0xff]   ;;  %v223_v12 = vadd.s32 16, %v949_v11  ;;  %v231_v13 = vadd.s32 80, %v949_v11  ;;  %v229_v19 = vadd.s32 64, %v949_v11  ;;  %v254_v21 = vand.u32 7, %v949_v11 }
   0x5   :  { %789 = vmatprep.mubr.msk.bf16.mxu0 %vm97_vm0, %v812_v2  ;;  %797 = vmatprep.mubr.msk.bf16.mxu1 %vm97_vm0, %v813_v3  ;;  %v270_v22 = vand.u32 63, %v949_v11  ;;  %v383_v24 = vld [vmem:[%s1443_s3 + $0x1] sm:$0x1]  ;;  %v224_v28 = vadd.s32 24, %v949_v11  ;;  %v232_v30 = vadd.s32 88, %v949_v11  ;;  %v962_v34 = vsub.s32 0, %v949_v11 }
   0x6   :  { %v256_v14 = vand.u32 7, %v223_v12  ;;  %v272_v15 = vand.u32 63, %v223_v12  ;;  %v264_v16 = vand.u32 7, %v231_v13  ;;  %v280_v17 = vand.u32 63, %v231_v13  ;;  %v382_v0 = vld [vmem:[%s1443_s3] sm:$0x1] }
   0x7   :  { %788 = vmatpush3.bf16.msra.mxu0 %v811_v1  ;;  %808 = vmatpush3.bf16.msra.mxu1 %v811_v1  ;;  %v262_v25 = vand.u32 7, %v229_v19  ;;  %v278_v26 = vand.u32 63, %v229_v19  ;;  %v318_v29 = vsub.s32 %v270_v22, %v254_v21  ;;  %v385_v33 = vsub.f32 1.0, %v383_v24 }
   0x8   :  { %v320_v18 = vsub.s32 %v272_v15, %v256_v14  ;;  %v328_v20 = vsub.s32 %v280_v17, %v264_v16  ;;  %v288_v31 = vcvt.s32.f32 %v256_v14  ;;  %v296_v35 = vcvt.s32.f32 %v264_v16 }
   0x9   :  { %v326_v36 = vsub.s32 %v278_v26, %v262_v25  ;;  %v222_v37 = vadd.s32 8, %v949_v11  ;;  %v257_v39 = vand.u32 7, %v224_v28  ;;  %v273_v40 = vand.u32 63, %v224_v28 }
   0xa   :  { %790 = vmatmul.mubr.msk.bf16.vlgmr.msra.gmra.mxu0 %vm97_vm0, %v814_v4  ;;  %798 = vmatmul.mubr.msk.bf16.vlgmr.msra.gmra.mxu1 %vm97_vm0, %v815_v5  ;;  %v336_v23 = vcvt.s32.f32 %v320_v18  ;;  %v344_v27 = vcvt.s32.f32 %v328_v20  ;;  %v334_v41 = vcvt.s32.f32 %v318_v29  ;;  %v265_v42 = vand.u32 7, %v232_v30 }
   0xb   :  { %793 = vmatprep.mubr.msk.bf16.mxu0 %vm97_vm0, %v816_v6  ;;  %801 = vmatprep.mubr.msk.bf16.mxu1 %vm97_vm0, %v817_v7  ;;  %v281_v43 = vand.u32 63, %v232_v30  ;;  %v966_v44 = vadd.s32 72, %v949_v11  ;;  %v728_v45 = vadd.f32 -0.5, %v288_v31  ;;  %v969_v47 = vrot.slane %v385_v33, %v962_v34 }
   0xc   :  { %v352_v32 = vmul.f32 0.125, %v336_v23  ;;  %v360_v38 = vmul.f32 0.125, %v344_v27  ;;  %v972_v48 = vrot.slane %v383_v24, %v962_v34  ;;  %v736_v49 = vadd.f32 -0.5, %v296_v35 }
   0xd   :  { %v342_v50 = vcvt.s32.f32 %v326_v36  ;;  %v255_v51 = vand.u32 7, %v222_v37  ;;  %v271_v52 = vand.u32 63, %v222_v37  ;;  %v286_v54 = vcvt.s32.f32 %v254_v21 }
   0xe   :  { %v744_v46 = vadd.f32 -0.5, %v352_v32  ;;  %v752_v53 = vadd.f32 -0.5, %v360_v38  ;;  %v321_v55 = vsub.s32 %v273_v40, %v257_v39  ;;  %v227_v56 = vadd.s32 48, %v949_v11 }
   0xf   :  { %v350_v57 = vmul.f32 0.125, %v334_v41  ;;  %v329_v58 = vsub.s32 %v281_v43, %v265_v42  ;;  %v263_v59 = vand.u32 7, %v966_v44  ;;  %v279_v60 = vand.u32 63, %v966_v44 }
  0x10   :  { %v392_v61 = vmul.f32 %v728_v45, %v969_v47  ;;  %v412_v62 = vmul.f32 %v744_v46, %v972_v48  ;;  %v235_v63 = vadd.s32 112, %v949_v11  ;;  %v400_v1 = vmul.f32 %v736_v49, %v969_v47 }
  0x11   :  { %v294_v2 = vcvt.s32.f32 %v262_v25  ;;  %v358_v3 = vmul.f32 0.125, %v342_v50  ;;  %v319_v4 = vsub.s32 %v271_v52, %v255_v51  ;;  %v420_v5 = vmul.f32 %v752_v53, %v972_v48 }
  0x12   :  { %794 = vmatmul.mubr.msk.bf16.gmra.mxu0 %vm97_vm0, %v818_v8  ;;  %802 = vmatmul.mubr.msk.bf16.gmra.mxu1 %vm97_vm0, %v819_v9  ;;  %v337_v6 = vcvt.s32.f32 %v321_v55  ;;  %v260_v7 = vand.u32 7, %v227_v56  ;;  %v276_v8 = vand.u32 63, %v227_v56  ;;  %v726_v9 = vadd.f32 -0.5, %v286_v54 }
  0x13   :  { %v742_v12 = vadd.f32 -0.5, %v350_v57  ;;  %v345_v13 = vcvt.s32.f32 %v329_v58  ;;  %v327_v14 = vsub.s32 %v279_v60, %v263_v59  ;;  %vm623_vm1 = vcmp.lt.f32.partialorder %v382_v0, 1.5 }
  0x14   :  { %v268_v15 = vand.u32 7, %v235_v63  ;;  %v284_v16 = vand.u32 63, %v235_v63  ;;  %v985_v17 = vadd.f32 %v412_v62, %v392_v61  ;;  %v734_v18 = vadd.f32 -0.5, %v294_v2 }
  0x15   :  { %v750_v19 = vadd.f32 -0.5, %v358_v3  ;;  %v335_v20 = vcvt.s32.f32 %v319_v4  ;;  %v987_v21 = vadd.f32 %v420_v5, %v400_v1  ;;  %v289_v22 = vcvt.s32.f32 %v257_v39 }
  0x16   :  { %v353_v23 = vmul.f32 0.125, %v337_v6  ;;  %v324_v24 = vsub.s32 %v276_v8, %v260_v7  ;;  %vm622_vm2 = vcmp.lt.f32.partialorder %v382_v0, 0.5  ;;  %v884_v25 = vmov 0  }
  0x17   :  { %v989_v26 = vsel %vm623_vm1, 1, %v884_v25  ;;  %v297_v27 = vcvt.s32.f32 %v265_v42  ;;  %v343_v28 = vcvt.s32.f32 %v327_v14  ;;  %v390_v29 = vmul.f32 %v726_v9, %v969_v47 }
  0x18   :  { %v410_v30 = vmul.f32 %v742_v12, %v972_v48  ;;  %v361_v31 = vmul.f32 0.125, %v345_v13  ;;  %v332_v32 = vsub.s32 %v284_v16, %v268_v15  ;;  %v398_v33 = vmul.f32 %v734_v18, %v969_v47 }
  0x19   :  { %v418_v35 = vmul.f32 %v750_v19, %v972_v48  ;;  %v287_v36 = vcvt.s32.f32 %v255_v51  ;;  %v351_v37 = vmul.f32 0.125, %v335_v20  ;;  %v997_v39 = vsel %vm622_vm2, 1, %v884_v25  ;;  %v1021_v19 = vld [vmem:[%s1444_s2] ss:$0 sm:$0xff] }
  0x1a   :  { %v729_v40 = vadd.f32 -0.5, %v289_v22  ;;  %v340_v41 = vcvt.s32.f32 %v324_v24  ;;  %v745_v42 = vadd.f32 -0.5, %v353_v23  ;;  %v737_v43 = vadd.f32 -0.5, %v297_v27 }
  0x1b   :  { %v295_v44 = vcvt.s32.f32 %v263_v59  ;;  %v359_v45 = vmul.f32 0.125, %v343_v28  ;;  %v999_v46 = vadd.f32 %v410_v30, %v390_v29  ;;  %v753_v49 = vadd.f32 -0.5, %v361_v31 }
  0x1c   :  { %v348_v50 = vcvt.s32.f32 %v332_v32  ;;  %v225_v52 = vadd.s32 32, %v949_v11  ;;  %v727_v53 = vadd.f32 -0.5, %v287_v36  ;;  %v743_v51 = vadd.f32 -0.5, %v351_v37 }
  0x1d   :  { %v292_v54 = vcvt.s32.f32 %v260_v7  ;;  %v300_v55 = vcvt.s32.f32 %v268_v15  ;;  %v393_v57 = vmul.f32 %v729_v40, %v969_v47  ;;  %v356_v58 = vmul.f32 0.125, %v340_v41 }
  0x1e   :  { %v233_v60 = vadd.s32 96, %v949_v11  ;;  %v413_v59 = vmul.f32 %v745_v42, %v972_v48  ;;  %v401_v61 = vmul.f32 %v737_v43, %v969_v47  ;;  %v735_v62 = vadd.f32 -0.5, %v295_v44 }
  0x1f   :  { %v751_v63 = vadd.f32 -0.5, %v359_v45  ;;  %v421_v0 = vmul.f32 %v753_v49, %v972_v48  ;;  %v364_v1 = vmul.f32 0.125, %v348_v50  ;;  %v258_v2 = vand.u32 7, %v225_v52 }
  0x20   :  { %v274_v3 = vand.u32 63, %v225_v52  ;;  %v391_v4 = vmul.f32 %v727_v53, %v969_v47  ;;  %v411_v5 = vmul.f32 %v743_v51, %v972_v48  ;;  %v732_v6 = vadd.f32 -0.5, %v292_v54 }
  0x21   :  { %v740_v7 = vadd.f32 -0.5, %v300_v55  ;;  %v748_v8 = vadd.f32 -0.5, %v356_v58  ;;  %v290_v9 = vcvt.s32.f32 %v258_v2  ;;  %v266_v12 = vand.u32 7, %v233_v60 }
  0x22   :  { %v282_v13 = vand.u32 63, %v233_v60  ;;  %v1011_v14 = vadd.f32 %v418_v35, %v398_v33  ;;  %v399_v15 = vmul.f32 %v735_v62, %v969_v47  ;;  %v419_v16 = vmul.f32 %v751_v63, %v972_v48 }
  0x23   :  { %v1016_v18 = vadd.s32 56, %v949_v11  ;;  %v1024_v20 = vand.u32 127, %v220_v10  ;;  %v756_v22 = vadd.f32 -0.5, %v364_v1  ;;  %v1026_v23 = vsub.s32 %v274_v3, %v258_v2 }
  0x24   :  { %v298_v24 = vcvt.s32.f32 %v266_v12  ;;  %v1028_v25 = vadd.f32 %v413_v59, %v393_v57  ;;  %v1030_v27 = vadd.f32 %v421_v0, %v401_v61  ;;  %v1033_v28 = vmul.f32 %v732_v6, %v969_v47 }
  0x25   :  { %v1036_v29 = vmul.f32 %v740_v7, %v969_v47  ;;  %v1038_v32 = vadd.f32 %v411_v5, %v391_v4  ;;  %v1041_v10 = vmul.f32 %v748_v8, %v972_v48  ;;  %v730_v33 = vadd.f32 -0.5, %v290_v9 }
  0x26   :  { %v1043_v35 = vsub.s32 %v282_v13, %v266_v12  ;;  %v1051_v40 = vadd.f32 %v419_v16, %v399_v15  ;;  %v261_v41 = vand.u32 7, %v1016_v18  ;;  %v1055_v44 = vmul.f32 %v756_v22, %v972_v48 }
  0x27   :  { %v338_v45 = vcvt.s32.f32 %v1026_v23  ;;  %v1058_v49 = vadd.f32 -0.5, %v298_v24  ;;  %v1061_v50 = vadd.s32 120, %v949_v11  ;;  %v1072_v58 = vmul.f32 %v730_v33, %v969_v47 }
  0x28   :  { %v346_v60 = vcvt.s32.f32 %v1043_v35  ;;  %v277_v59 = vand.u32 63, %v1016_v18  ;;  %v1076_v61 = vcvt.s32.f32 %v261_v41  ;;  %v1088_v5 = vadd.s32 40, %v949_v11 }
  0x29   :  { %v269_v4 = vand.u32 7, %v1061_v50  ;;  %v285_v15 = vand.u32 63, %v1061_v50  ;;  %v1100_v16 = vadd.s32 104, %v949_v11  ;;  %vm670_vm5 = vcmp.lt.s32.totalorder %v1024_v20, 64 }
  0x2a   :  { %v733_v23 = vadd.f32 -0.5, %v1076_v61 }
  0xca   :  { %v791_v30 = vpop.f32.mrf.mxu0  ;;  %v799_v31 = vpop.f32.mrf.mxu1 }
  0xcb   :  { %v1046_v36 = vadd.f32 %v791_v30, %v1021_v19  ;;  %v1049_v37 = vadd.f32 %v799_v31, %v1021_v19 }
  0xcc   :  { %v156_v42 = vpop.f32.mrf.mxu0  ;;  %v188_v43 = vpop.f32.mrf.mxu1 }
  0xcd   :  { %v760_v52 = vmul.f32 -1.442695, %v1046_v36  ;;  %v768_v53 = vmul.f32 -1.442695, %v1049_v37  ;;  %v1066_v51 = vadd.f32 %v1021_v19, %v156_v42  ;;  %v1069_v54 = vadd.f32 %v1021_v19, %v188_v43 }
  0xce   :  { %v792_v55 = vpop.f32.mrf.mxu0  ;;  %v800_v57 = vpop.f32.mrf.mxu1  ;;  %v259_v42 = vand.u32 7, %v1088_v5  ;;  %v275_v43 = vand.u32 63, %v1088_v5 }
  0xcf   :  { %820 = vpow2.f32 %v760_v52  ;;  %v758_v62 = vmul.f32 -1.442695, %v1066_v51  ;;  %v766_v63 = vmul.f32 -1.442695, %v1069_v54  ;;  %v1081_v0 = vadd.f32 %v792_v55, %v1021_v19 }
  0xd0   :  { %822 = vpow2.f32 %v768_v53  ;;  %v1084_v1 = vadd.f32 %v800_v57, %v1021_v19  ;;  %v159_v2 = vpop.f32.mrf.mxu0  ;;  %v191_v3 = vpop.f32.mrf.mxu1 }
  0xd1   :  { %824 = vpow2.f32 %v758_v62  ;;  %v761_v6 = vmul.f32 -1.442695, %v1081_v0  ;;  %v1092_v7 = vadd.f32 %v1021_v19, %v159_v2  ;;  %v1095_v8 = vadd.f32 %v1021_v19, %v191_v3 }
  0xd2   :  { %826 = vpow2.f32 %v766_v63  ;;  %v769_v9 = vmul.f32 -1.442695, %v1084_v1  ;;  %v795_v12 = vpop.f32.mrf.mxu0  ;;  %v803_v13 = vpop.f32.mrf.mxu1  ;;  %v267_v63 = vand.u32 7, %v1100_v16  ;;  %v283_v2 = vand.u32 63, %v1100_v16 }
  0xd3   :  { %828 = vpow2.f32 %v761_v6  ;;  %v759_v18 = vmul.f32 -1.442695, %v1092_v7  ;;  %v767_v22 = vmul.f32 -1.442695, %v1095_v8  ;;  %v1105_v24 = vadd.f32 %v795_v12, %v1021_v19 }
  0xd4   :  { %830 = vpow2.f32 %v769_v9  ;;  %v1108_v30 = vadd.f32 %v803_v13, %v1021_v19  ;;  %v172_v31 = vpop.f32.mrf.mxu0  ;;  %v204_v33 = vpop.f32.mrf.mxu1  ;;  %v325_v9 = vsub.s32 %v277_v59, %v261_v41  ;;  %v333_v13 = vsub.s32 %v285_v15, %v269_v4 }
  0xd5   :  { %832 = vpow2.f32 %v759_v18  ;;  %v764_v11 = vmul.f32 -1.442695, %v1105_v24  ;;  %v1114_v52 = vadd.f32 %v1021_v19, %v172_v31  ;;  %v1117_v53 = vadd.f32 %v1021_v19, %v204_v33 }
  0xd6   :  { %834 = vpow2.f32 %v767_v22  ;;  %v772_v55 = vmul.f32 -1.442695, %v1108_v30  ;;  %v796_v57 = vpop.f32.mrf.mxu0  ;;  %v804_v62 = vpop.f32.mrf.mxu1  ;;  %v323_v59 = vsub.s32 %v275_v43, %v259_v42 }
  0xd7   :  { %836 = vpow2.f32 %v764_v11  ;;  %v762_v3 = vmul.f32 -1.442695, %v1114_v52  ;;  %v770_v5 = vmul.f32 -1.442695, %v1117_v53  ;;  %v1125_v6 = vadd.f32 %v796_v57, %v1021_v19 }
  0xd8   :  { %838 = vpow2.f32 %v772_v55  ;;  %v1128_v12 = vadd.f32 %v804_v62, %v1021_v19  ;;  %v175_v18 = vpop.f32.mrf.mxu0  ;;  %v207_v22 = vpop.f32.mrf.mxu1  ;;  %v331_v11 = vsub.s32 %v283_v2, %v267_v63  ;;  %v354_v55 = vmul.f32 0.125, %v338_v45 }
  0xd9   :  { %840 = vpow2.f32 %v762_v3  ;;  %v765_v16 = vmul.f32 -1.442695, %v1125_v6  ;;  %v1134_v31 = vadd.f32 %v1021_v19, %v175_v18  ;;  %v1137_v33 = vadd.f32 %v1021_v19, %v207_v22 }
  0xda   :  { %842 = vpow2.f32 %v770_v5  ;;  %v773_v41 = vmul.f32 -1.442695, %v1128_v12  ;;  %v362_v3 = vmul.f32 0.125, %v346_v60  ;;  %v1148_v19 = vmul.f32 %v1058_v49, %v969_v47 }
  0xdb   :  { %1448 = vst [vmem:[#allocation2_spill] sm:$0xff] %v1134_v31  ;;  %1449 = vst [vmem:[#allocation3_spill] sm:$0xff] %v1137_v33  ;;  %844 = vpow2.f32 %v765_v16  ;;  %v763_v15 = vmul.f32 -1.442695, %v1134_v31  ;;  %v771_v57 = vmul.f32 -1.442695, %v1137_v33  ;;  %v341_v5 = vcvt.s32.f32 %v325_v9 }
  0xdc   :  { %v821_v62 = vpop.eup %820  ;;  %846 = vpow2.f32 %v773_v41  ;;  %v349_v45 = vcvt.s32.f32 %v333_v13  ;;  %v339_v16 = vcvt.s32.f32 %v323_v59  ;;  %v347_v56 = vcvt.s32.f32 %v331_v11 }
  0xdd   :  { %v823_v43 = vpop.eup %822  ;;  %v492_v2 = vadd.f32 1.0, %v821_v62  ;;  %848 = vpow2.f32 %v763_v15  ;;  %v746_v60 = vadd.f32 -0.5, %v354_v55  ;;  %v301_v49 = vcvt.s32.f32 %v269_v4 }
  0xde   :  { %v825_v18 = vpop.eup %824  ;;  %v500_v22 = vadd.f32 1.0, %v823_v43  ;;  %850 = vpow2.f32 %v771_v57  ;;  %v357_v62 = vmul.f32 0.125, %v341_v5  ;;  %v291_v33 = vcvt.s32.f32 %v259_v42 }
  0xdf   :  { %v827_v38 = vpop.eup %826  ;;  %852 = vrcp.f32 %v492_v2  ;;  %v490_v35 = vadd.f32 1.0, %v825_v18  ;;  %v365_v15 = vmul.f32 0.125, %v349_v45  ;;  %v299_v43 = vcvt.s32.f32 %v267_v63 }
  0xe0   :  { %v829_v9 = vpop.eup %828  ;;  %854 = vrcp.f32 %v500_v22  ;;  %v498_v41 = vadd.f32 1.0, %v827_v38  ;;  %v355_v57 = vmul.f32 0.125, %v339_v16  ;;  %v363_v2 = vmul.f32 0.125, %v347_v56 }
  0xe1   :  { %v831_v61 = vpop.eup %830  ;;  %856 = vrcp.f32 %v490_v35  ;;  %v493_v13 = vadd.f32 1.0, %v829_v9  ;;  %v754_v50 = vadd.f32 -0.5, %v362_v3  ;;  %v397_v4 = vmul.f32 %v733_v23, %v969_v47 }
  0xe2   :  { %v833_v59 = vpop.eup %832  ;;  %858 = vrcp.f32 %v498_v41  ;;  %v501_v11 = vadd.f32 1.0, %v831_v61  ;;  %v749_v5 = vadd.f32 -0.5, %v357_v62  ;;  %v741_v42 = vadd.f32 -0.5, %v301_v49 }
  0xe3   :  { %v835_v18 = vpop.eup %834  ;;  %860 = vrcp.f32 %v493_v13  ;;  %v491_v55 = vadd.f32 1.0, %v833_v59  ;;  %v731_v31 = vadd.f32 -0.5, %v291_v33  ;;  %v757_v63 = vadd.f32 -0.5, %v365_v15 }
  0xe4   :  { %v837_v22 = vpop.eup %836  ;;  %v499_v38 = vadd.f32 1.0, %v835_v18  ;;  %862 = vrcp.f32 %v501_v11  ;;  %v739_v9 = vadd.f32 -0.5, %v299_v43  ;;  %v747_v56 = vadd.f32 -0.5, %v355_v57 }
  0xe5   :  { %v839_v35 = vpop.eup %838  ;;  %v496_v45 = vadd.f32 1.0, %v837_v22  ;;  %864 = vrcp.f32 %v491_v55  ;;  %v755_v61 = vadd.f32 -0.5, %v363_v2  ;;  %v414_v3 = vmul.f32 %v746_v60, %v972_v48 }
  0xe6   :  { %v841_v41 = vpop.eup %840  ;;  %v504_v16 = vadd.f32 1.0, %v839_v35  ;;  %866 = vrcp.f32 %v499_v38  ;;  %v422_v59 = vmul.f32 %v754_v50, %v972_v48  ;;  %v1450_v33 = vrot.slane %v989_v26, %v962_v34 }
  0xe7   :  { %v843_v13 = vpop.eup %842  ;;  %v494_v23 = vadd.f32 1.0, %v841_v41  ;;  %868 = vrcp.f32 %v496_v45  ;;  %v417_v43 = vmul.f32 %v749_v5, %v972_v48  ;;  %v405_v11 = vmul.f32 %v741_v42, %v969_v47 }
  0xe8   :  { %v845_v62 = vpop.eup %844  ;;  %vm1159_vm3 = vcmp.eq.s32.totalorder %v1450_v33, 1  ;;  %v502_v15 = vadd.f32 1.0, %v843_v13  ;;  %v1453_v60 = vrot.slane %v997_v39, %v962_v34  ;;  %870 = vrcp.f32 %v504_v16 }
  0xe9   :  { %v847_v57 = vpop.eup %846  ;;  %v497_v26 = vadd.f32 1.0, %v845_v62  ;;  %v425_v18 = vmul.f32 %v757_v63, %v972_v48  ;;  %v395_v55 = vmul.f32 %v731_v31, %v969_v47  ;;  %v415_v38 = vmul.f32 %v747_v56, %v972_v48 }
  0xea   :  { %vm1168_vm4 = vcmp.eq.s32.totalorder %v1453_v60, 1  ;;  %v849_v50 = vpop.eup %848  ;;  %v505_v22 = vadd.f32 1.0, %v847_v57  ;;  %v403_v5 = vmul.f32 %v739_v9, %v969_v47  ;;  %v423_v34 = vmul.f32 %v755_v61, %v972_v48 }
  0xeb   :  { %v851_v39 = vpop.eup %850  ;;  %v1180_v42 = vadd.f32 %v1041_v10, %v1033_v28  ;;  %v1184_v35 = vadd.f32 %v1055_v44, %v1036_v29  ;;  %872 = vrcp.f32 %v494_v23  ;;  %v495_v31 = vadd.f32 1.0, %v849_v50  ;;  %v1199_v10 = vld [vmem:[%s1443_s3 + $0x2] ss:$0 sm:$0xff] }
  0xec   :  { %v853_v45 = vpop.eup %852  ;;  %v1187_v63 = vadd.f32 %v414_v3, %v1072_v58  ;;  %v1190_v41 = vadd.f32 %v422_v59, %v1148_v19  ;;  %874 = vrcp.f32 %v502_v15  ;;  %v503_v47 = vadd.f32 1.0, %v851_v39 }
  0xed   :  { %v855_v48 = vpop.eup %854  ;;  %v540_v9 = vmul.f32 2.0, %v853_v45  ;;  %v1192_v16 = vadd.f32 %v417_v43, %v397_v4  ;;  %876 = vrcp.f32 %v497_v26  ;;  %v1194_v28 = vadd.f32 %v425_v18, %v405_v11 }
  0xee   :  { %v857_v29 = vpop.eup %856  ;;  %v548_v44 = vmul.f32 2.0, %v855_v48  ;;  %878 = vrcp.f32 %v505_v22  ;;  %v1201_v58 = vadd.f32 %v415_v38, %v395_v55  ;;  %v1203_v19 = vadd.f32 %v423_v34, %v403_v5 }
  0xef   :  { %v859_v56 = vpop.eup %858  ;;  %v556_v61 = vadd.f32 %v540_v9, %v985_v17  ;;  %v588_v4 = vmul.f32 %v540_v9, %v540_v9  ;;  %v538_v13 = vmul.f32 2.0, %v857_v29  ;;  %880 = vrcp.f32 %v495_v31 }
  0xf0   :  { %v861_v3 = vpop.eup %860  ;;  %v564_v23 = vadd.f32 %v548_v44, %v987_v21  ;;  %v596_v59 = vmul.f32 %v548_v44, %v548_v44  ;;  %v546_v62 = vmul.f32 2.0, %v859_v56  ;;  %882 = vrcp.f32 %v503_v47 }
  0xf1   :  { %v572_v33 = vmul.f32 8.0, %v556_v61  ;;  %v608_v15 = vmul.f32 %v1199_v10, %v588_v4  ;;  %v554_v43 = vadd.f32 %v538_v13, %v999_v46  ;;  %v586_v11 = vmul.f32 %v538_v13, %v538_v13  ;;  %v1209_v57 = vpop.eup %862 }
  0xf2   :  { %v580_v60 = vmul.f32 8.0, %v564_v23  ;;  %v616_v17 = vmul.f32 %v1199_v10, %v596_v59  ;;  %v562_v26 = vadd.f32 %v546_v62, %v1011_v14  ;;  %v594_v18 = vmul.f32 %v546_v62, %v546_v62  ;;  %v1213_v55 = vpop.eup %864 }
  0xf3   :  { %v632_v21 = vsel %vm1159_vm3, %v608_v15, %v853_v45  ;;  %v570_v50 = vmul.f32 8.0, %v554_v43  ;;  %v606_v22 = vmul.f32 %v1199_v10, %v586_v11  ;;  %v541_v38 = vmul.f32 2.0, %v861_v3  ;;  %v1218_v5 = vpop.eup %866 }
  0xf4   :  { %v654_v46 = vsel %vm1168_vm4, %v572_v33, %v632_v21  ;;  %v640_v34 = vsel %vm1159_vm3, %v616_v17, %v855_v48  ;;  %v578_v39 = vmul.f32 8.0, %v562_v26  ;;  %v614_v14 = vmul.f32 %v1199_v10, %v594_v18  ;;  %v1225_v31 = vpop.eup %868 }
  0xf5   :  { %v673_v45 = vsel %vm670_vm5, %v1046_v36, %v654_v46  ;;  %v662_v47 = vsel %vm1168_vm4, %v580_v60, %v640_v34  ;;  %v630_v9 = vsel %vm1159_vm3, %v606_v22, %v857_v29  ;;  %v557_v44 = vadd.f32 %v541_v38, %v1028_v25  ;;  %v1235_v61 = vpop.eup %870 }
  0xf6   :  { %689 = vst [vmem:[%s1445_s4 + $0x10] sm:$0xff] %v673_v45  ;;  %v681_v48 = vsel %vm670_vm5, %v1049_v37, %v662_v47  ;;  %v652_v36 = vsel %vm1168_vm4, %v570_v50, %v630_v9  ;;  %v638_v4 = vsel %vm1159_vm3, %v614_v14, %v859_v56  ;;  %v589_v13 = vmul.f32 %v541_v38, %v541_v38 }
  0xf7   :  { %697 = vst [vmem:[%s1445_s4 + $0x50] sm:$0xff] %v681_v48  ;;  %v671_v25 = vsel %vm670_vm5, %v1066_v51, %v652_v36  ;;  %v660_v29 = vsel %vm1168_vm4, %v578_v39, %v638_v4  ;;  %v573_v23 = vmul.f32 8.0, %v557_v44  ;;  %v549_v37 = vmul.f32 2.0, %v1209_v57 }
  0xf8   :  { %v1256_v59 = vpop.eup %872  ;;  %687 = vst [vmem:[%s1445_s4] sm:$0xff] %v671_v25  ;;  %v679_v56 = vsel %vm670_vm5, %v1069_v54, %v660_v29  ;;  %v609_v62 = vmul.f32 %v1199_v10, %v589_v13  ;;  %v539_v51 = vmul.f32 2.0, %v1213_v55  ;;  %v547_v33 = vmul.f32 2.0, %v1218_v5 }
  0xf9   :  { %v1267_v15 = vpop.eup %874  ;;  %695 = vst [vmem:[%s1445_s4 + $0x40] sm:$0xff] %v679_v56  ;;  %v565_v43 = vadd.f32 %v549_v37, %v1030_v27  ;;  %v597_v11 = vmul.f32 %v549_v37, %v549_v37  ;;  %v544_v60 = vmul.f32 2.0, %v1225_v31  ;;  %v552_v17 = vmul.f32 2.0, %v1235_v61 }
  0xfa   :  { %v1275_v54 = vpop.eup %876  ;;  %v633_v26 = vsel %vm1159_vm3, %v609_v62, %v861_v3  ;;  %v555_v18 = vadd.f32 %v539_v51, %v1038_v32  ;;  %v587_v21 = vmul.f32 %v539_v51, %v539_v51  ;;  %v563_v50 = vadd.f32 %v547_v33, %v1051_v40 }
  0xfb   :  { %v1281_v22 = vpop.eup %878  ;;  %v655_v27 = vsel %vm1168_vm4, %v573_v23, %v633_v26  ;;  %v581_v38 = vmul.f32 8.0, %v565_v43  ;;  %v617_v46 = vmul.f32 %v1199_v10, %v597_v11  ;;  %v595_v34 = vmul.f32 %v547_v33, %v547_v33 }
  0xfc   :  { %v1286_v39 = vpop.eup %880  ;;  %v674_v3 = vsel %vm670_vm5, %v1081_v0, %v655_v27  ;;  %v571_v14 = vmul.f32 8.0, %v555_v18  ;;  %v607_v32 = vmul.f32 %v1199_v10, %v587_v21  ;;  %v579_v45 = vmul.f32 8.0, %v563_v50 }
  0xfd   :  { %v1292_v40 = vpop.eup %882  ;;  %690 = vst [vmem:[%s1445_s4 + $0x18] sm:$0xff] %v674_v3  ;;  %v641_v47 = vsel %vm1159_vm3, %v617_v46, %v1209_v57  ;;  %v615_v9 = vmul.f32 %v1199_v10, %v595_v34  ;;  %v560_v44 = vadd.f32 %v544_v60, %v1180_v42  ;;  %v592_v48 = vmul.f32 %v544_v60, %v544_v60 }
  0xfe   :  { %v663_v0 = vsel %vm1168_vm4, %v581_v38, %v641_v47  ;;  %v631_v36 = vsel %vm1159_vm3, %v607_v32, %v1213_v55  ;;  %v568_v4 = vadd.f32 %v552_v17, %v1184_v35  ;;  %v600_v13 = vmul.f32 %v552_v17, %v552_v17 }
  0xff   :  { %v682_v25 = vsel %vm670_vm5, %v1084_v1, %v663_v0  ;;  %v653_v57 = vsel %vm1168_vm4, %v571_v14, %v631_v36  ;;  %v639_v42 = vsel %vm1159_vm3, %v615_v9, %v1218_v5  ;;  %v576_v29 = vmul.f32 8.0, %v560_v44 }
 0x100   :  { %698 = vst [vmem:[%s1445_s4 + $0x58] sm:$0xff] %v682_v25  ;;  %v672_v35 = vsel %vm670_vm5, %v1092_v7, %v653_v57  ;;  %v661_v55 = vsel %vm1168_vm4, %v579_v45, %v639_v42  ;;  %v612_v1 = vmul.f32 %v1199_v10, %v592_v48  ;;  %v584_v23 = vmul.f32 8.0, %v568_v4 }
 0x101   :  { %688 = vst [vmem:[%s1445_s4 + $0x8] sm:$0xff] %v672_v35  ;;  %v680_v5 = vsel %vm670_vm5, %v1095_v8, %v661_v55  ;;  %v620_v37 = vmul.f32 %v1199_v10, %v600_v13  ;;  %v542_v56 = vmul.f32 2.0, %v1256_v59  ;;  %v550_v7 = vmul.f32 2.0, %v1267_v15  ;;  %v1457_v55 = vld [vmem:[#allocation3_spill] sm:$0xff] }
 0x102   :  { %696 = vst [vmem:[%s1445_s4 + $0x48] sm:$0xff] %v680_v5  ;;  %v636_v62 = vsel %vm1159_vm3, %v612_v1, %v1225_v31  ;;  %v545_v51 = vmul.f32 2.0, %v1275_v54  ;;  %v553_v33 = vmul.f32 2.0, %v1281_v22  ;;  %v543_v8 = vmul.f32 2.0, %v1286_v39 }
 0x103   :  { %v658_v43 = vsel %vm1168_vm4, %v576_v29, %v636_v62  ;;  %v644_v11 = vsel %vm1159_vm3, %v620_v37, %v1235_v61  ;;  %v558_v60 = vadd.f32 %v542_v56, %v1187_v63  ;;  %v590_v17 = vmul.f32 %v542_v56, %v542_v56  ;;  %v1456_v29 = vld [vmem:[#allocation2_spill] sm:$0xff] }
 0x104   :  { %v677_v31 = vsel %vm670_vm5, %v1105_v24, %v658_v43  ;;  %v666_v26 = vsel %vm1168_vm4, %v584_v23, %v644_v11  ;;  %v566_v18 = vadd.f32 %v550_v7, %v1190_v41  ;;  %v598_v21 = vmul.f32 %v550_v7, %v550_v7 }
 0x105   :  { %693 = vst [vmem:[%s1445_s4 + $0x30] sm:$0xff] %v677_v31  ;;  %v685_v61 = vsel %vm670_vm5, %v1108_v30, %v666_v26  ;;  %v574_v63 = vmul.f32 8.0, %v558_v60  ;;  %v610_v50 = vmul.f32 %v1199_v10, %v590_v17  ;;  %v561_v27 = vadd.f32 %v545_v51, %v1192_v16 }
 0x106   :  { %701 = vst [vmem:[%s1445_s4 + $0x70] sm:$0xff] %v685_v61  ;;  %v582_v24 = vmul.f32 8.0, %v566_v18  ;;  %v618_v41 = vmul.f32 %v1199_v10, %v598_v21  ;;  %v593_v38 = vmul.f32 %v545_v51, %v545_v51  ;;  %v569_v46 = vadd.f32 %v553_v33, %v1194_v28 }
 0x107   :  { %v634_v34 = vsel %vm1159_vm3, %v610_v50, %v1256_v59  ;;  %v577_v30 = vmul.f32 8.0, %v561_v27  ;;  %v601_v3 = vmul.f32 %v553_v33, %v553_v33  ;;  %v559_v14 = vadd.f32 %v543_v8, %v1201_v58 }
 0x108   :  { %v656_v16 = vsel %vm1168_vm4, %v574_v63, %v634_v34  ;;  %v642_v32 = vsel %vm1159_vm3, %v618_v41, %v1267_v15  ;;  %v613_v45 = vmul.f32 %v1199_v10, %v593_v38  ;;  %v585_v47 = vmul.f32 8.0, %v569_v46 }
 0x109   :  { %v675_v28 = vsel %vm670_vm5, %v1114_v52, %v656_v16  ;;  %v664_v59 = vsel %vm1168_vm4, %v582_v24, %v642_v32  ;;  %v621_v9 = vmul.f32 %v1199_v10, %v601_v3  ;;  %v591_v44 = vmul.f32 %v543_v8, %v543_v8 }
 0x10a   :  { %691 = vst [vmem:[%s1445_s4 + $0x20] sm:$0xff] %v675_v28  ;;  %v683_v58 = vsel %vm670_vm5, %v1117_v53, %v664_v59  ;;  %v637_v15 = vsel %vm1159_vm3, %v613_v45, %v1275_v54  ;;  %v551_v52 = vmul.f32 2.0, %v1292_v40  ;;  %v575_v36 = vmul.f32 8.0, %v559_v14 }
 0x10b   :  { %699 = vst [vmem:[%s1445_s4 + $0x60] sm:$0xff] %v683_v58  ;;  %v659_v48 = vsel %vm1168_vm4, %v577_v30, %v637_v15  ;;  %v645_v0 = vsel %vm1159_vm3, %v621_v9, %v1281_v22  ;;  %v611_v4 = vmul.f32 %v1199_v10, %v591_v44 }
 0x10c   :  { %v678_v53 = vsel %vm670_vm5, %v1125_v6, %v659_v48  ;;  %v667_v54 = vsel %vm1168_vm4, %v585_v47, %v645_v0  ;;  %v567_v13 = vadd.f32 %v551_v52, %v1203_v19  ;;  %v599_v25 = vmul.f32 %v551_v52, %v551_v52 }
 0x10d   :  { %694 = vst [vmem:[%s1445_s4 + $0x38] sm:$0xff] %v678_v53  ;;  %v686_v22 = vsel %vm670_vm5, %v1128_v12, %v667_v54  ;;  %v635_v6 = vsel %vm1159_vm3, %v611_v4, %v1286_v39 }
 0x10e   :  { %702 = vst [vmem:[%s1445_s4 + $0x78] sm:$0xff] %v686_v22  ;;  %v583_v57 = vmul.f32 8.0, %v567_v13  ;;  %v657_v19 = vsel %vm1168_vm4, %v575_v36, %v635_v6  ;;  %v619_v42 = vmul.f32 %v1199_v10, %v599_v25 }
 0x10f   :  { %v676_v35 = vsel %vm670_vm5, %v1456_v29, %v657_v19 }
 0x110   :  { %692 = vst [vmem:[%s1445_s4 + $0x28] sm:$0xff] %v676_v35  ;;  %v643_v12 = vsel %vm1159_vm3, %v619_v42, %v1292_v40 }
 0x111   :  { %v665_v39 = vsel %vm1168_vm4, %v583_v57, %v643_v12 }
 0x112   :  { %v684_v1 = vsel %vm670_vm5, %v1457_v55, %v665_v39 }
 0x113   :  { %700 = vst [vmem:[%s1445_s4 + $0x68] sm:$0xff] %v684_v1 }

</bundles_post_ra>
